<compile_context>
chip_gen: v6e
topology: v6e:2x2x1
jax: 0.10.0
libtpu: 0.0.40
codegen_flags: <defaults>
</compile_context>

<pallas_src>
import functools

import jax
import jax.numpy as jnp
from jax.experimental import pallas as pl
from jax.experimental.pallas import tpu as pltpu

# ---------------- fixed small synthetic config ----------------
D3D = 41       # node_attr_3DProDTA_dim (matches the real model)
DLANG = 128    # node_attr_Language_dim (small stand-in for 1280)
N_ROWS = 300   # number of (protein-node) rows; deliberately not a tile multiple


def _round_up(v, m):
    return ((v + m - 1) // m) * m


# ------------------------------ Pallas kernel ------------------------------
def _mixer_kernel(x_ref, w_ref, b_ref, o_ref, *, d3d):
    """Fused Node_Attr_Mixer: pass-through + (Linear∘BN∘ReLU), one store.

    x_ref : (tm, d3d + dlang)    input row tile (float32)
    w_ref : (d3d + dlang, 2*d3d) augmented, BN-folded weight
            (rows [:d3d] zero; rows [d3d:] hold W*scale in cols [d3d:])
    b_ref : (1, 2*d3d)           augmented, BN-folded bias (zeros in cols [:d3d])
    o_ref : (tm, 2*d3d)          output row tile
    """
    x = x_ref[...]                                                  # (tm, f)

    # Sanitize the matmul operand: zero the 3D-feature columns so NaN/Inf in
    # them can never propagate into the mixed half via 0*NaN (the reference
    # Linear never touches those columns).  Pure VPU select; free under the
    # HBM bound.  The pass-through below still uses the untouched `x`.
    colx = jax.lax.broadcasted_iota(jnp.int32, x.shape, 1)
    x_mm = jnp.where(colx < d3d, 0.0, x)

    # Mixed half: full-width, lane-dense MXU matmul + bias + ReLU.  HIGHEST
    # precision is hidden under the input DMA time.
    y = jnp.dot(x_mm, w_ref[...],
                preferred_element_type=jnp.float32,
                precision=jax.lax.Precision.HIGHEST)                # (tm, 2*d3d)
    y = jnp.maximum(y + b_ref[...], 0.0)

    # Pass-through half: bit-exact copy of the first d3d input columns.  The
    # aligned prefix slice x[:, :2*d3d] has those columns in positions [:d3d];
    # the iota mask keeps them there and takes the mixed result elsewhere.
    col = jax.lax.broadcasted_iota(jnp.int32, y.shape, 1)
    o_ref[...] = jnp.where(col < d3d, x[:, : 2 * d3d], y).astype(o_ref.dtype)


def node_attr_mixer(x, w_aug, b_aug, d3d, *, tile_rows=512):
    """Apply the fused Node_Attr_Mixer kernel.

    x : (n, d3d + dlang) float32 = [3DProDTA features | language embedding]
    Returns (n, 2*d3d) float32 = concat([x[:, :d3d], ReLU(BN(Linear(x[:, d3d:])))], 1)
    """
    n, f = x.shape
    dlang = f - d3d
    out_w = 2 * d3d
    assert w_aug.shape == (f, out_w) and b_aug.shape == (out_w,)
    # Pass-through prefix-slice trick needs dlang >= d3d (true for the real
    # model: 1280 >= 41).  TODO(synk): pad the feature axis if ever dlang < d3d.
    assert dlang >= d3d

    # ---- row-tile selection (HBM-bound kernel: big, MXU-aligned tiles) -----
    #  * >= 512 rows amortizes the ~0.35 us per-grid-step overhead,
    #  * multiples of 256 avoid partial MXU M-passes (also multiples of 128
    #    for v5e's 4x128 MXU),
    #  * keep >= 2 grid steps when n allows it so both v7x TCs get work.
    if n <= 256:
        tm = _round_up(max(n, 8), 8)                   # tiny batch: one tile
    else:
        tm = min(tile_rows, _round_up(pl.cdiv(n, 2), 256))
        tm = max(tm, 256)
    grid = (pl.cdiv(n, tm),)
    # No jnp.pad / out[:n]: those were full HBM round-trips of x and out.
    # Pallas masks out-of-bounds stores on the ragged last tile; the padded
    # read rows only affect their own (discarded) output rows.

    flops = 2 * n * f * out_w
    bytes_accessed = 4 * (n * f + f * out_w + out_w + n * out_w)

    return pl.pallas_call(
        functools.partial(_mixer_kernel, d3d=d3d),
        out_shape=jax.ShapeDtypeStruct((n, out_w), jnp.float32),
        grid=grid,
        in_specs=[
            pl.BlockSpec((tm, f), lambda i: (i, 0)),          # streamed row tile
            pl.BlockSpec((f, out_w), lambda i: (0, 0)),       # resident fused weight
            pl.BlockSpec((1, out_w), lambda i: (0, 0)),       # resident fused bias
        ],
        out_specs=pl.BlockSpec((tm, out_w), lambda i: (i, 0)),
        compiler_params=pltpu.CompilerParams(
            dimension_semantics=("parallel",),                # shard rows over TCs
            vmem_limit_bytes=48 * 1024 * 1024,                # fits v7x 64 MiB/TC
        ),
        cost_estimate=pl.CostEstimate(
            flops=flops, transcendentals=0, bytes_accessed=bytes_accessed),
    )(x, w_aug, b_aug.reshape(1, out_w))


# --------------------------- parameter preparation ---------------------------
def build_fused_params(w, b, gamma, beta, running_mean, running_var, eps=1e-5):
    """Fold eval-mode BatchNorm1d into the Linear and embed it in an augmented
    weight/bias so the kernel needs a single lane-dense matmul (no concat)."""
    dlang, d3d = w.shape
    scale = gamma / jnp.sqrt(running_var + eps)
    w_fold = w * scale[None, :]                        # (dlang, d3d)
    b_fold = (b - running_mean) * scale + beta         # (d3d,)
    f = d3d + dlang
    w_aug = jnp.zeros((f, 2 * d3d), jnp.float32).at[d3d:, d3d:].set(w_fold)
    b_aug = jnp.zeros((2 * d3d,), jnp.float32).at[d3d:].set(b_fold)
    return w_aug, b_aug


# ----------------------------------- main ------------------------------------
if __name__ == "__main__":
    key = jax.random.PRNGKey(0)
    kx, kw, kb, kg, kbt, km, kv = jax.random.split(key, 7)

    # Module parameters (Linear(DLANG -> D3D) + BatchNorm1d(D3D), eval mode).
    w = jax.random.normal(kw, (DLANG, D3D), jnp.float32) / jnp.sqrt(
        jnp.float32(DLANG))
    b = 0.01 * jax.random.normal(kb, (D3D,), jnp.float32)
    gamma = 1.0 + 0.1 * jax.random.normal(kg, (D3D,), jnp.float32)
    beta = 0.1 * jax.random.normal(kbt, (D3D,), jnp.float32)
    running_mean = 0.1 * jax.random.normal(km, (D3D,), jnp.float32)
    running_var = jnp.abs(1.0 + 0.1 * jax.random.normal(kv, (D3D,), jnp.float32))

    # Input: [3DProDTA node features | language-model node embedding].
    x = jax.random.normal(kx, (N_ROWS, D3D + DLANG), jnp.float32)

    w_aug, b_aug = build_fused_params(w, b, gamma, beta, running_mean,
                                      running_var)

    out = node_attr_mixer(x, w_aug, b_aug, D3D)
    out = jax.block_until_ready(out)

    # ---------------- reference (pure JAX, PyTorch eval semantics) ----------
    x3d = x[:, :D3D]
    xlang = x[:, D3D:]
    lin = jnp.dot(xlang, w, precision=jax.lax.Precision.HIGHEST) + b
    bn = (lin - running_mean) * (gamma / jnp.sqrt(running_var + 1e-5)) + beta
    ref_mixed = jnp.maximum(bn, 0.0)

    assert out.shape == (N_ROWS, 2 * D3D) and out.dtype == jnp.float32
    # Pass-through half must be a bit-exact copy of the first D3D columns.
    assert bool(jnp.array_equal(out[:, :D3D], x3d))
    # Mixed half: generous tolerance kept for robustness across backends.
    assert bool(jnp.allclose(out[:, D3D:], ref_mixed, atol=5e-2, rtol=5e-2))

    print("KERNEL_OK")
</pallas_src>

<mosaic_0001>
module attributes {stable_mosaic.version = 11 : i64} {
  func.func @_mixer_kernel(%arg0: i32, %arg1: memref<256x169xf32, #tpu.memory_space<vmem>>, %arg2: memref<169x82xf32, #tpu.memory_space<vmem>>, %arg3: memref<1x82xf32, #tpu.memory_space<vmem>>, %arg4: memref<256x82xf32, #tpu.memory_space<vmem>>) attributes {dimension_semantics = [#tpu.dimension_semantics<parallel>], iteration_bounds = array<i64: 2>, scalar_prefetch = 0 : i64, scratch_operands = 0 : i64, tpu.core_type = #tpu.core_type<tc>, window_params = [{transform_indices = @transform_0, window_bounds = array<i64: 256, 169>}, {pipeline_mode = #tpu.pipeline_mode<synchronous>, transform_indices = @transform_1, window_bounds = array<i64: 169, 82>}, {pipeline_mode = #tpu.pipeline_mode<synchronous>, transform_indices = @transform_2, window_bounds = array<i64: 1, 82>}, {transform_indices = @transform_3, window_bounds = array<i64: 256, 82>}]} {
    %c0 = arith.constant 0 : index
    %c0_0 = arith.constant 0 : index
    %0 = vector.load %arg1[%c0, %c0_0] : memref<256x169xf32, #tpu.memory_space<vmem>>, vector<256x169xf32>
    %1 = tpu.iota {dimensions = array<i32: 1>} : vector<256x169xi32>
    %c41_i32 = arith.constant 41 : i32
    %2 = vector.broadcast %c41_i32 : i32 to vector<256x169xi32>
    %3 = arith.cmpi slt, %1, %2 : vector<256x169xi32>
    %cst = arith.constant 0.000000e+00 : f32
    %4 = vector.broadcast %cst : f32 to vector<256x169xf32>
    %5 = arith.select %3, %4, %0 : vector<256x169xi1>, vector<256x169xf32>
    %c0_1 = arith.constant 0 : index
    %c0_2 = arith.constant 0 : index
    %6 = vector.load %arg2[%c0_1, %c0_2] : memref<169x82xf32, #tpu.memory_space<vmem>>, vector<169x82xf32>
    %cst_3 = arith.constant dense<0.000000e+00> : vector<256x82xf32>
    %7 = tpu.matmul %5, %6, %cst_3 {dimension_numbers = #tpu.dot_dimension_numbers<[1], [0], [0], [1], [0, 0, 1, 1], [], []>, precision = #tpu.contract_precision<fp32>} : vector<256x169xf32>, vector<169x82xf32>, vector<256x82xf32> -> vector<256x82xf32>
    %c0_4 = arith.constant 0 : index
    %c0_5 = arith.constant 0 : index
    %8 = vector.load %arg3[%c0_4, %c0_5] : memref<1x82xf32, #tpu.memory_space<vmem>>, vector<1x82xf32>
    %9 = vector.broadcast %8 : vector<1x82xf32> to vector<256x82xf32>
    %10 = arith.addf %7, %9 : vector<256x82xf32>
    %cst_6 = arith.constant 0.000000e+00 : f32
    %11 = vector.broadcast %cst_6 : f32 to vector<256x82xf32>
    %12 = arith.maximumf %10, %11 : vector<256x82xf32>
    %13 = tpu.iota {dimensions = array<i32: 1>} : vector<256x82xi32>
    %c41_i32_7 = arith.constant 41 : i32
    %14 = vector.broadcast %c41_i32_7 : i32 to vector<256x82xi32>
    %15 = arith.cmpi slt, %13, %14 : vector<256x82xi32>
    %16 = vector.extract_strided_slice %0 {offsets = [0, 0], sizes = [256, 82], strides = [1, 1]} : vector<256x169xf32> to vector<256x82xf32>
    %17 = arith.select %15, %16, %12 : vector<256x82xi1>, vector<256x82xf32>
    %c0_8 = arith.constant 0 : index
    %c0_9 = arith.constant 0 : index
    %18 = vector.load %arg4[%c0_8, %c0_9] : memref<256x82xf32, #tpu.memory_space<vmem>>, vector<256x82xf32>
    tpu.vector_store %arg4[%c0_8, %c0_9], %17 {strides = array<i32>} : memref<256x82xf32, #tpu.memory_space<vmem>>, vector<256x82xf32>,
    return
  }
  func.func @transform_0(%arg0: i32) -> (i32, i32) {
    %c0_i32 = arith.constant 0 : i32
    %c0_i32_0 = arith.constant 0 : i32
    return %arg0, %c0_i32 : i32, i32
  }
  func.func @transform_1(%arg0: i32) -> (i32, i32) {
    %c0_i32 = arith.constant 0 : i32
    %c0_i32_0 = arith.constant 0 : i32
    %c0_i32_1 = arith.constant 0 : i32
    return %c0_i32, %c0_i32_0 : i32, i32
  }
  func.func @transform_2(%arg0: i32) -> (i32, i32) {
    %c0_i32 = arith.constant 0 : i32
    %c0_i32_0 = arith.constant 0 : i32
    %c0_i32_1 = arith.constant 0 : i32
    return %c0_i32, %c0_i32_0 : i32, i32
  }
  func.func @transform_3(%arg0: i32) -> (i32, i32) {
    %c0_i32 = arith.constant 0 : i32
    %c0_i32_0 = arith.constant 0 : i32
    return %arg0, %c0_i32 : i32, i32
  }
}

</mosaic_0001>

<bundles_post_ra>
// kernel: tpu_custom_call.1
= control target key start
LH: loop header
LB: loop body
LE: loop exit
PB: predicated region body
PF: predicated region fallthrough
CT: control target
= control target key end

     0   :  { %s3628_s12 = smov 0   ;;  %s3630_s13 = smov 0   ;;  %s5890_s0 = inlined_call_operand.vmem [shape: f32[300,169], index: 0, kind: input, shape index: {}]   ;;  %s5891_s1 = inlined_call_operand.vmem [shape: f32[169,82], index: 1, kind: input, shape index: {}]   ;;  %s5892_s2 = inlined_call_operand.vmem [shape: f32[1,82], index: 2, kind: input, shape index: {}]   ;;  %s5893_s3 = inlined_call_operand.vmem [shape: f32[300,82], index: 3, kind: output, shape index: {}]  }
   0x1   :  { %s3632_s14 = smov 0  }
   0x2 LB: > { %s3641_s15 = sadd.s32 4294967295, %s3573_s14   ;;  %s3643_s16 = sadd.s32 1, %s3573_s14   ;;  %s3573_s14 = sphi %s3632_s14, %s6589_s14   ;;  %s3569_s13 = sphi %s3630_s13, %s6588_s13   ;;  %s3565_s12 = sphi %s3628_s12, %s6587_s12  }
   0x3   : > { %s85_s17 = ssub.s32 %s3573_s14, %s3643_s16  ;;  %s88_s18 = sadd.s32 1, %s3569_s13 }
   0x4   : > { %p86_p0 = scmp.eq.s32.totalorder %s85_s17, 0  ;;  %p98_p1 = scmp.ne.s32.totalorder %s3569_s13, %s3565_s12 }
   0x5   : > { %p99_p2 = scmp.eq.s32.totalorder %s3641_s15, 1  ;;  %p3371_p3 = scmp.ge.s32.totalorder %s3573_s14, 1 }
   0x6   : > { %s3651_s19 = scalar_select %p86_p0, %s3569_s13, %s88_s18  }
   0x7   : > { %p3653_p4 = por %p99_p2, %p98_p1  ;;  %p149_p5 = scmp.lt.s32.totalorder %s3573_s14, 3 }
   0x9   : > { %p150_p6 = pnand %p3371_p3, %p149_p5 }
   0xb   : > { %153 = sbr.rel (%p150_p6) target bundleno = 698 (0x2ba), region = 32 }
  0x10   : > { %v348_v0 = vld [vmem:[%s5891_s1 + $0x78] sm:$0xff]  ;;  %v347_v1 = vld [vmem:[%s5891_s1 + $0x70] sm:$0xff]  ;;  %v346_v2 = vld [vmem:[%s5891_s1 + $0x68] sm:$0xff]  ;;  %v5912_v3 = vmov 0.0   ;;  %s3711_s14 = sshll.u32 %s3641_s15, 5  ;;  %vm459_vm0 = vcmask 1040384  }
  0x11   : > { %463 = vmatprep.subr.mxu0 %v5912_v3  ;;  %v3667_v4 = vand.u32 4294901760, %v348_v0  ;;  %v3669_v5 = vand.u32 4294901760, %v347_v1  ;;  %v3671_v6 = vand.u32 4294901760, %v346_v2  ;;  %v345_v7 = vld [vmem:[%s5891_s1 + $0x60] sm:$0xff]  ;;  %1030 = vmatprep.subr.mxu1 %v5912_v3  ;;  %v344_v8 = vld [vmem:[%s5891_s1 + $0x58] sm:$0xff]  ;;  %v343_v9 = vld [vmem:[%s5891_s1 + $0x50] sm:$0xff] }
  0x12   : > { %v3683_v10 = vand.u32 4294901760, %v345_v7  ;;  %v3685_v11 = vand.u32 4294901760, %v344_v8  ;;  %v3687_v12 = vand.u32 4294901760, %v343_v9  ;;  %v342_v13 = vld [vmem:[%s5891_s1 + $0x48] sm:$0xff]  ;;  %v341_v14 = vld [vmem:[%s5891_s1 + $0x40] sm:$0xff]  ;;  %v340_v19 = vld [vmem:[%s5891_s1 + $0x38] sm:$0xff] }
  0x13   : > { %465 = vmatpush1.msra.mxu0 %v3667_v4  ;;  %v3697_v15 = vsub.f32 %v348_v0, %v3667_v4  ;;  %v3700_v16 = vsub.f32 %v347_v1, %v3669_v5  ;;  %v3702_v17 = vand.u32 4294901760, %v342_v13  ;;  %v3705_v18 = vsub.f32 %v346_v2, %v3671_v6  ;;  %v339_v26 = vld [vmem:[%s5891_s1 + $0x30] sm:$0xff]  ;;  %v338_v31 = vld [vmem:[%s5891_s1 + $0x28] sm:$0xff]  ;;  %p184_p7 = scmp.lt.s32.totalorder %s3711_s14, 37  ;;  %v337_v38 = vld [vmem:[%s5891_s1 + $0x20] sm:$0xff]  ;;  %s175_s5 = sand.u32 1, %s3565_s12  }
  0x14   : > { %6165 = vst [vmem:[#allocation3_spill] sm:$0xff] %v3685_v11  ;;  %466 = vmatprep.subr.mxu0 %v5912_v3  ;;  %v3715_v20 = vsub.f32 %v345_v7, %v3683_v10  ;;  %v3718_v21 = vsub.f32 %v344_v8, %v3685_v11  ;;  %v3724_v25 = vand.u32 4294901760, %v341_v14  ;;  %v3731_v28 = vand.u32 4294901760, %v340_v19  ;;  %v336_v43 = vld [vmem:[%s5891_s1 + $0x18] sm:$0xff]  ;;  %v354_v53 = vld [vmem:[%s5891_s1 + $0xa8] sm:$0x1] }
  0x15   : > { %468 = vmatpush1.msra.mxu0 %v3669_v5  ;;  %v5906_v22 = vand.u32 4294901760, %v3697_v15  ;;  %v5905_v23 = vand.u32 4294901760, %v3700_v16  ;;  %v5904_v24 = vand.u32 4294901760, %v3705_v18  ;;  %v3735_v30 = vsub.f32 %v343_v9, %v3687_v12  ;;  %s3780_s27 = scalar_select %p184_p7, %s3711_s14, 37  ;;  %v335_v57 = vld [vmem:[%s5891_s1 + $0x10] sm:$0xff]  ;;  %v334_v60 = vld [vmem:[%s5891_s1 + $0x8] sm:$0xff] }
  0x16   : > { %469 = vmatprep.subr.mxu0 %v5912_v3  ;;  %v5903_v27 = vand.u32 4294901760, %v3715_v20  ;;  %v5902_v29 = vand.u32 4294901760, %v3718_v21  ;;  %v3752_v35 = vsub.f32 %v342_v13, %v3702_v17  ;;  %v3755_v36 = vand.u32 4294901760, %v339_v26  ;;  %v333_v61 = vld [vmem:[%s5891_s1] sm:$0xff]  ;;  %s3372_s6 = sshll.u32 %s175_s5, 8  ;;  %s3036_s7 = ssub.s32 (%p3653_p4), 38, %s3711_s14 }
  0x17   : > { %471 = vmatpush1.msra.mxu0 %v3671_v6  ;;  %v1034_v32 = vsub.f32 %v3697_v15, %v5906_v22  ;;  %v1041_v33 = vsub.f32 %v3700_v16, %v5905_v23  ;;  %v1048_v34 = vsub.f32 %v3705_v18, %v5904_v24  ;;  %v5901_v37 = vand.u32 4294901760, %v3735_v30  ;;  %s3394_s9 = sshll.u32 %s3780_s27, 4  ;;  %v353_v2 = vld [vmem:[%s5891_s1 + $0xa0] sm:$0xff]  ;;  %s5562_s12 = scalar_lea.vmem [#allocation2], %s3372_s6  }
  0x18   : > { %472 = vmatprep.subr.mxu0 %v5912_v3  ;;  %6166 = vst [vmem:[#allocation4_spill] sm:$0xff] %v3755_v36  ;;  %v1055_v41 = vsub.f32 %v3715_v20, %v5903_v27  ;;  %v3765_v42 = vand.u32 4294901760, %v338_v31  ;;  %v1062_v44 = vsub.f32 %v3718_v21, %v5902_v29  ;;  %v3775_v45 = vsub.f32 %v341_v14, %v3724_v25  ;;  %s3854_s21 = scalar_lea.vmem %s5890_s0, %s3394_s9  ;;  %s3395_s8 = sshll.u32 (%p3653_p4), %s3641_s15, 8 }
  0x19   : > { %474 = vmatpush1.msra.mxu0 %v3683_v10  ;;  %v1035_v39 = vand.u32 4294901760, %v1034_v32  ;;  %v1042_v40 = vand.u32 4294901760, %v1041_v33  ;;  %v1049_v46 = vand.u32 4294901760, %v1048_v34  ;;  %v5900_v47 = vand.u32 4294901760, %v3752_v35  ;;  %v205_v23 = vld [vmem:[%s3854_s21 + $0x28] sm:$0xff]  ;;  %p3037_p8 = scmp.lt.s32.totalorder (%p3653_p4), %s3036_s7, 32  ;;  %s5758_s11 = scalar_lea.vmem (%p3653_p4), %s5893_s3, %s3395_s8  }
  0x1a   : > { %6167 = vst [vmem:[#allocation5_spill] sm:$0xff] %v3765_v42  ;;  %475 = vmatprep.subr.mxu0 %v5912_v3  ;;  %v3784_v48 = vand.u32 4294901760, %v337_v38  ;;  %v3787_v49 = vsub.f32 %v340_v19, %v3731_v28  ;;  %v1069_v50 = vsub.f32 %v3735_v30, %v5901_v37  ;;  %v3794_v51 = vand.u32 4294901760, %v336_v43 }
  0x1b   : > { %477 = vmatpush1.msra.mxu0 %v3685_v11  ;;  %1036 = vmatpush1.msra.mxu1 %v1035_v39  ;;  %v3797_v52 = vsub.f32 %v339_v26, %v3755_v36  ;;  %v1056_v54 = vand.u32 4294901760, %v1055_v41  ;;  %v5899_v55 = vand.u32 4294901760, %v3775_v45  ;;  %v3809_v58 = vsub.f32 %v338_v31, %v3765_v42 }
  0x1c   : > { %6168 = vst [vmem:[#allocation6_spill] sm:$0xff] %v3784_v48  ;;  %478 = vmatprep.subr.mxu0 %v5912_v3  ;;  %1037 = vmatprep.subr.mxu1 %v5912_v3  ;;  %6169 = vst [vmem:[#allocation7_spill] sm:$0xff] %v3794_v51  ;;  %v5898_v56 = vand.u32 4294901760, %v3787_v49  ;;  %v1063_v62 = vand.u32 4294901760, %v1062_v44  ;;  %v1076_v63 = vsub.f32 %v3752_v35, %v5900_v47  ;;  %v461_v1 = vsel %vm459_vm0, %v354_v53, 0 }
  0x1d   : > { %480 = vmatpush1.msra.mxu0 %v3687_v12  ;;  %1043 = vmatpush1.msra.mxu1 %v1042_v40  ;;  %v5896_v59 = vand.u32 4294901760, %v3797_v52  ;;  %v3826_v0 = vsub.f32 %v337_v38, %v3784_v48  ;;  %v1070_v7 = vand.u32 4294901760, %v1069_v50  ;;  %v3834_v8 = vand.u32 4294901760, %v335_v57  ;;  %v201_v50 = vld [vmem:[%s3854_s21 + $0x8] sm:$0xff] }
  0x1e   : > { %481 = vmatprep.subr.mxu0 %v5912_v3  ;;  %1044 = vmatprep.subr.mxu1 %v5912_v3  ;;  %v5894_v9 = vand.u32 4294901760, %v3809_v58  ;;  %v3838_v13 = vsub.f32 %v336_v43, %v3794_v51  ;;  %v1083_v14 = vsub.f32 %v3775_v45, %v5899_v55  ;;  %v1090_v19 = vsub.f32 %v3787_v49, %v5898_v56  ;;  %v202_v56 = vld [vmem:[%s3854_s21 + $0x10] sm:$0xff] }
  0x1f   : > { %483 = vmatpush1.msra.mxu0 %v3702_v17  ;;  %1050 = vmatpush1.msra.mxu1 %v1049_v46  ;;  %6170 = vst [vmem:[#allocation8_spill] sm:$0xff] %v3826_v0  ;;  %6171 = vst [vmem:[#allocation9_spill] sm:$0xff] %v3834_v8  ;;  %v3847_v26 = vand.u32 4294901760, %v334_v60  ;;  %v3849_v31 = vand.u32 4294901760, %v333_v61  ;;  %v3861_v32 = vsub.f32 %v3797_v52, %v5896_v59  ;;  %v3863_v33 = vand.u32 4294901760, %v461_v1  ;;  %v352_v46 = vld [vmem:[%s5891_s1 + $0x98] sm:$0xff] }
  0x20   : > { %484 = vmatprep.subr.mxu0 %v5912_v3  ;;  %1051 = vmatprep.subr.mxu1 %v5912_v3  ;;  %6172 = vst [vmem:[#allocation10_spill] sm:$0xff] %v3838_v13  ;;  %v3865_v34 = vand.u32 4294901760, %v353_v2  ;;  %v1077_v38 = vand.u32 4294901760, %v1076_v63  ;;  %v5895_v39 = vand.u32 4294901760, %v3826_v0  ;;  %v264_v40 = vlaneseq }
  0x21   : > { %486 = vmatpush1.msra.mxu0 %v3724_v25  ;;  %1057 = vmatpush1.msra.mxu1 %v1056_v54  ;;  %6173 = vst [vmem:[#allocation11_spill] sm:$0xff] %v3847_v26  ;;  %6174 = vst [vmem:[#allocation12_spill] sm:$0xff] %v3849_v31  ;;  %v3874_v41 = vsub.f32 %v3809_v58, %v5894_v9  ;;  %v5897_v43 = vand.u32 4294901760, %v3838_v13  ;;  %v3878_v44 = vsub.f32 %v335_v57, %v3834_v8  ;;  %vm362_vm1 = vcmask 334848  }
  0x22   : > { %487 = vmatprep.subr.mxu0 %v5912_v3  ;;  %1058 = vmatprep.subr.mxu1 %v5912_v3  ;;  %6175 = vst [vmem:[#allocation13_spill] sm:$0xff] %v3863_v33  ;;  %6176 = vst [vmem:[#allocation14_spill] sm:$0xff] %v3865_v34  ;;  %v1084_v53 = vand.u32 4294901760, %v1083_v14  ;;  %v1091_v54 = vand.u32 4294901760, %v1090_v19  ;;  %v3889_v63 = vsub.f32 %v333_v61, %v3849_v31  ;;  %v1098_v57 = vand.u32 4294901760, %v3861_v32  ;;  %v203_v14 = vld [vmem:[%s3854_s21 + $0x18] sm:$0xff] }
  0x23   : > { %489 = vmatpush1.msra.mxu0 %v3731_v28  ;;  %1064 = vmatpush1.msra.mxu1 %v1063_v62  ;;  %6177 = vst [vmem:[#allocation15_spill] sm:$0xff] %v3878_v44  ;;  %v3886_v62 = vsub.f32 %v334_v60, %v3847_v26  ;;  %v3895_v9 = vsub.f32 %v461_v1, %v3863_v33  ;;  %v3907_v61 = vand.u32 4294901760, %v352_v46  ;;  %v364_v19 = vsel %vm362_vm1, %v201_v50, 0  ;;  %v200_v1 = vld [vmem:[%s3854_s21] sm:$0xff]  ;;  %v351_v50 = vld [vmem:[%s5891_s1 + $0x90] sm:$0xff] }
  0x24   : > { %490 = vmatprep.subr.mxu0 %v5912_v3  ;;  %1065 = vmatprep.subr.mxu1 %v5912_v3  ;;  %6179 = vst [vmem:[#allocation17_spill] sm:$0xff] %v3889_v63  ;;  %v3905_v60 = vsub.f32 %v3826_v0, %v5895_v39  ;;  %v3911_v32 = vand.u32 127, %v264_v40  ;;  %v5907_v39 = vand.u32 4294901760, %v3878_v44  ;;  %v3925_v59 = vand.u32 4294901760, %v364_v19 }
  0x25   : > { %492 = vmatpush1.msra.mxu0 %v3755_v36  ;;  %1071 = vmatpush1.msra.mxu1 %v1070_v7  ;;  %6178 = vst [vmem:[#allocation16_spill] sm:$0xff] %v3886_v62  ;;  %6180 = vst [vmem:[#allocation18_spill] sm:$0xff] %v3895_v9  ;;  %v3898_v7 = vsub.f32 %v353_v2, %v3865_v34  ;;  %v1105_v2 = vand.u32 4294901760, %v3874_v41  ;;  %v5909_v40 = vand.u32 4294901760, %v3886_v62  ;;  %v5908_v41 = vand.u32 4294901760, %v3889_v63 }
  0x26   : > { %493 = vmatprep.subr.mxu0 %v5912_v3  ;;  %1072 = vmatprep.subr.mxu1 %v5912_v3  ;;  %6182 = vst [vmem:[#allocation20_spill] sm:$0xff] %v3907_v61  ;;  %6183 = vst [vmem:[#allocation21_spill] sm:$0xff] %v3911_v32  ;;  %vm267_vm2 = vcmp.lt.s32.totalorder %v3911_v32, 41  ;;  %v5914_v55 = vand.u32 4294901760, %v3895_v9  ;;  %v3937_v47 = vsub.f32 %v364_v19, %v3925_v59  ;;  %v3943_v29 = vand.u32 4294901760, %v351_v50 }
  0x27   : > { %6181 = vst [vmem:[#allocation19_spill] sm:$0xff] %v3898_v7  ;;  %495 = vmatpush1.msra.mxu0 %v3765_v42  ;;  %1078 = vmatpush1.msra.mxu1 %v1077_v38  ;;  %v3919_v38 = vsub.f32 %v3838_v13, %v5897_v43  ;;  %6184 = vst [vmem:[#allocation22_spill] sm:$0xff] %v3925_v59  ;;  %v367_v43 = vsel %vm362_vm1, %v203_v14, 0  ;;  %v269_v37 = vsel %vm267_vm2, 0.0, %v200_v1  ;;  %v1112_v19 = vand.u32 4294901760, %v3905_v60  ;;  %v350_v60 = vld [vmem:[%s5891_s1 + $0x88] sm:$0xff] }
  0x28   : > { %496 = vmatprep.subr.mxu0 %v5912_v3  ;;  %1079 = vmatprep.subr.mxu1 %v5912_v3  ;;  %6185 = vst [vmem:[#allocation23_spill] sm:$0xff] %v3937_v47  ;;  %6186 = vst [vmem:[#allocation24_spill] sm:$0xff] %v3943_v29  ;;  %v3945_v14 = vand.u32 4294901760, %v269_v37  ;;  %v3948_v27 = vsub.f32 %v352_v46, %v3907_v61  ;;  %v3950_v24 = vand.u32 4294901760, %v367_v43  ;;  %v271_v1 = vsel %vm267_vm2, 0.0, %v202_v56  ;;  %v349_v56 = vld [vmem:[%s5891_s1 + $0x80] sm:$0xff] }
  0x29   : > { %498 = vmatpush1.msra.mxu0 %v3784_v48  ;;  %1085 = vmatpush1.msra.mxu1 %v1084_v53  ;;  %v5917_v53 = vand.u32 4294901760, %v3898_v7  ;;  %v3965_v46 = vsub.f32 %v3886_v62, %v5909_v40  ;;  %v3970_v22 = vsub.f32 %v3889_v63, %v5908_v41  ;;  %v3987_v41 = vsub.f32 %v3895_v9, %v5914_v55 }
  0x2a   : > { %499 = vmatprep.subr.mxu0 %v5912_v3  ;;  %1086 = vmatprep.subr.mxu1 %v5912_v3  ;;  %6187 = vst [vmem:[#allocation25_spill] sm:$0xff] %v3945_v14  ;;  %6188 = vst [vmem:[#allocation26_spill] sm:$0xff] %v3948_v27  ;;  %v3994_v63 = vand.u32 4294901760, %v271_v1  ;;  %v4001_v55 = vsub.f32 %v367_v43, %v3950_v24  ;;  %v4004_v9 = vsub.f32 %v351_v50, %v3943_v29  ;;  %vm2995_vm3 = vcmask 670720  }
  0x2b   : > { %501 = vmatpush1.msra.mxu0 %v3794_v51  ;;  %1092 = vmatpush1.msra.mxu1 %v1091_v54  ;;  %6189 = vst [vmem:[#allocation27_spill] sm:$0xff] %v3950_v24  ;;  %v1125_v54 = vsub.f32 %v3878_v44, %v5907_v39  ;;  %v3980_v39 = vsub.f32 %v269_v37, %v3945_v14  ;;  %v1119_v37 = vand.u32 4294901760, %v3919_v38  ;;  %v4009_v62 = vand.u32 4294901760, %v350_v60  ;;  %v207_v44 = vld [vmem:[%s3854_s21 + $0x38] sm:$0xff] }
  0x2c   : > { %502 = vmatprep.subr.mxu0 %v5912_v3  ;;  %1093 = vmatprep.subr.mxu1 %v5912_v3  ;;  %v3992_v40 = vsub.f32 %v3898_v7, %v5917_v53  ;;  %6191 = vst [vmem:[#allocation29_spill] sm:$0xff] %v3994_v63  ;;  %6192 = vst [vmem:[#allocation30_spill] sm:$0xff] %v4001_v55  ;;  %v204_v53 = vld [vmem:[%s3854_s21 + $0x20] sm:$0xff]  ;;  %v6194_v7 = vmov 0.0   ;;  %v1133_v43 = vand.u32 4294901760, %v3965_v46  ;;  %v1140_v50 = vand.u32 4294901760, %v3970_v22 }
  0x2d   : > { %504 = vmatpush1.msra.mxu0 %v3834_v8  ;;  %1099 = vmatpush1.msra.mxu1 %v1098_v57  ;;  %6190 = vst [vmem:[#allocation28_spill] sm:$0xff] %v3980_v39  ;;  %v370_v57 = vsel %vm362_vm1, %v205_v23, 0  ;;  %6193 = vst [vmem:[#allocation31_spill] sm:$0xff] %v4004_v9  ;;  %v1126_v23 = vand.u32 4294901760, %v1125_v54  ;;  %v4030_v46 = vsub.f32 %v271_v1, %v3994_v63  ;;  %v206_v22 = vld [vmem:[%s3854_s21 + $0x30] sm:$0xff]  ;;  %v6200_v54 = vand.u32 4294901760, %v3948_v27 }
  0x2e   : > { %505 = vmatprep.subr.mxu0 %v5912_v3  ;;  %1100 = vmatprep.subr.mxu1 %v5912_v3  ;;  %6195 = vst [vmem:[#allocation32_spill] sm:$0xff] %v4009_v62  ;;  %v4013_v38 = vand.u32 4294901760, %v370_v57  ;;  %v6198_v3 = vand.u32 4294901760, %v3937_v47  ;;  %v209_v8 = vld [vmem:[%s3854_s21 + $0x48] sm:$0xff] }
  0x2f   : > { %507 = vmatpush1.msra.mxu0 %v3847_v26  ;;  %1106 = vmatpush1.msra.mxu1 %v1105_v2  ;;  %v4011_v2 = vand.u32 4294901760, %v349_v56  ;;  %6199 = vst [vmem:[#allocation35_spill] sm:$0xff] %v4030_v46 }
  0x30   : > { %508 = vmatprep.subr.mxu0 %v6194_v7  ;;  %1107 = vmatprep.subr.mxu1 %v6194_v7  ;;  %6197 = vst [vmem:[#allocation34_spill] sm:$0xff] %v4013_v38  ;;  %v4021_v26 = vsub.f32 %v3937_v47, %v6198_v3  ;;  %v273_v3 = vsel %vm267_vm2, 0.0, %v204_v53  ;;  %v4039_v47 = vsub.f32 %v3948_v27, %v6200_v54  ;;  %v6205_v27 = vand.u32 4294901760, %v3980_v39 }
  0x31   : > { %6196 = vst [vmem:[#allocation33_spill] sm:$0xff] %v4011_v2  ;;  %510 = vmatpush1.msra.mxu0 %v3849_v31  ;;  %1113 = vmatpush1.msra.mxu1 %v1112_v19  ;;  %v1167_v31 = vand.u32 4294901760, %v3987_v41  ;;  %v4044_v1 = vsub.f32 %v370_v57, %v4013_v38  ;;  %v4050_v53 = vsub.f32 %v350_v60, %v4009_v62  ;;  %v4055_v54 = vand.u32 4294901760, %v273_v3  ;;  %v208_v19 = vld [vmem:[%s3854_s21 + $0x40] sm:$0xff] }
  0x32   : > { %531 = vmatprep.subr.mxu0 %v6194_v7  ;;  %1114 = vmatprep.subr.mxu1 %v6194_v7  ;;  %v373_v41 = vsel %vm362_vm1, %v207_v44, 0  ;;  %v553_v57 = vand.u32 4294901760, %v4021_v26 }
  0x33   : > { %533 = vmatpush2.msra.mxu0 %v3863_v33  ;;  %1120 = vmatpush1.msra.mxu1 %v1119_v37  ;;  %6201 = vst [vmem:[#allocation36_spill] sm:$0xff] %v4044_v1  ;;  %6202 = vst [vmem:[#allocation37_spill] sm:$0xff] %v4050_v53  ;;  %v4053_v37 = vsub.f32 %v349_v56, %v4011_v2  ;;  %v558_v33 = vsub.f32 %v3980_v39, %v6205_v27  ;;  %v4064_v60 = vand.u32 4294901760, %v373_v41  ;;  %v211_v27 = vld [vmem:[%s3854_s21 + $0x58] sm:$0xff] }
  0x34   : > { %534 = vmatprep.subr.mxu0 %v6194_v7  ;;  %1121 = vmatprep.subr.mxu1 %v6194_v7  ;;  %6204 = vst [vmem:[#allocation39_spill] sm:$0xff] %v4055_v54  ;;  %v275_v56 = vsel %vm267_vm2, 0.0, %v206_v22  ;;  %v6208_v22 = vand.u32 4294901760, %v4001_v55 }
  0x35   : > { %6203 = vst [vmem:[#allocation38_spill] sm:$0xff] %v4053_v37  ;;  %536 = vmatpush2.msra.mxu0 %v3865_v34  ;;  %1127 = vmatpush1.msra.mxu1 %v1126_v23  ;;  %6206 = vst [vmem:[#allocation40_spill] sm:$0xff] %v4064_v60  ;;  %v4072_v34 = vsub.f32 %v273_v3, %v4055_v54  ;;  %v4074_v26 = vand.u32 4294901760, %v275_v56  ;;  %v376_v23 = vsel %vm362_vm1, %v209_v8, 0  ;;  %v277_v3 = vsel %vm267_vm2, 0.0, %v208_v19 }
  0x36   : > { %537 = vmatprep.subr.mxu0 %v6194_v7  ;;  %1128 = vmatprep.subr.mxu1 %v6194_v7  ;;  %v567_v39 = vsub.f32 %v4001_v55, %v6208_v22  ;;  %v4083_v44 = vand.u32 4294901760, %v376_v23  ;;  %v6210_v8 = vand.u32 4294901760, %v4004_v9  ;;  %v4097_v13 = vsub.f32 %v373_v41, %v4064_v60  ;;  %v210_v55 = vld [vmem:[%s3854_s21 + $0x50] sm:$0xff] }
  0x37   : > { %6207 = vst [vmem:[#allocation41_spill] sm:$0xff] %v4074_v26  ;;  %539 = vmatpush2.msra.mxu0 %v3907_v61  ;;  %1134 = vmatpush1.msra.mxu1 %v1133_v43  ;;  %v4103_v51 = vsub.f32 %v275_v56, %v4074_v26  ;;  %v4105_v0 = vand.u32 4294901760, %v277_v3  ;;  %v213_v61 = vld [vmem:[%s3854_s21 + $0x68] sm:$0xff]  ;;  %v559_v41 = vand.u32 4294901760, %v558_v33  ;;  %v1181_v22 = vand.u32 4294901760, %v4039_v47  ;;  %v212_v33 = vld [vmem:[%s3854_s21 + $0x60] sm:$0xff] }
  0x38   : > { %6209 = vst [vmem:[#allocation42_spill] sm:$0xff] %v4083_v44  ;;  %540 = vmatprep.subr.mxu0 %v6194_v7  ;;  %1135 = vmatprep.subr.mxu1 %v6194_v7  ;;  %v4092_v43 = vsub.f32 %v4004_v9, %v6210_v8  ;;  %v379_v8 = vsel %vm362_vm1, %v211_v27, 0  ;;  %v4116_v56 = vsub.f32 %v376_v23, %v4083_v44  ;;  %v568_v9 = vand.u32 4294901760, %v567_v39 }
  0x39   : > { %542 = vmatpush2.msra.mxu0 %v3943_v29  ;;  %1141 = vmatpush1.msra.mxu1 %v1140_v50  ;;  %6211 = vst [vmem:[#allocation43_spill] sm:$0xff] %v4103_v51  ;;  %6212 = vst [vmem:[#allocation44_spill] sm:$0xff] %v4105_v0  ;;  %v6213_v50 = vand.u32 4294901760, %v4030_v46  ;;  %v6215_v27 = vand.u32 4294901760, %v4044_v1  ;;  %v4122_v48 = vand.u32 4294901760, %v379_v8  ;;  %v279_v47 = vsel %vm267_vm2, 0.0, %v210_v55 }
  0x3a   : > { %543 = vmatprep.subr.mxu0 %v6194_v7  ;;  %1162 = vmatprep.subr.mxu1 %v6194_v7  ;;  %6214 = vst [vmem:[#allocation45_spill] sm:$0xff] %v4116_v56  ;;  %v6217_v23 = vand.u32 4294901760, %v4050_v53  ;;  %v6218_v39 = vand.u32 4294901760, %v4053_v37  ;;  %v1188_v55 = vand.u32 4294901760, %v4092_v43  ;;  %v281_v43 = vsel %vm267_vm2, 0.0, %v212_v33 }
  0x3b   : > { %v573_v19 = vsub.f32 %v4030_v46, %v6213_v50  ;;  %545 = vmatpush2.msra.mxu0 %v4009_v62  ;;  %1168 = vmatpush2.msra.mxu1 %v1167_v31  ;;  %v582_v29 = vsub.f32 %v4044_v1, %v6215_v27  ;;  %6216 = vst [vmem:[#allocation46_spill] sm:$0xff] %v4122_v48  ;;  %v382_v1 = vsel %vm362_vm1, %v213_v61, 0  ;;  %v6219_v46 = vand.u32 4294901760, %v4072_v34 }
  0x3c   : > { %546 = vmatprep.subr.mxu0 %v6194_v7  ;;  %1169 = vmatprep.subr.mxu1 %v6194_v7  ;;  %v1194_v31 = vsub.f32 %v4050_v53, %v6217_v23  ;;  %v1201_v50 = vsub.f32 %v4053_v37, %v6218_v39  ;;  %v4144_v53 = vsub.f32 %v277_v3, %v4105_v0  ;;  %v215_v39 = vld [vmem:[%s3854_s21 + $0x78] sm:$0xff]  ;;  %v6221_v27 = vand.u32 4294901760, %v3992_v40  ;;  %v214_v40 = vld [vmem:[%s3854_s21 + $0x70] sm:$0xff] }
  0x3d   : > { %548 = vmatpush2.msra.mxu0 %v4011_v2  ;;  %554 = vmatprep.mubr.f32.mxu0 %v553_v57  ;;  %v588_v62 = vsub.f32 %v4072_v34, %v6219_v46  ;;  %v574_v61 = vand.u32 4294901760, %v573_v19  ;;  %v4150_v37 = vand.u32 4294901760, %v279_v47  ;;  %v583_v46 = vand.u32 4294901760, %v582_v29 }
  0x3e   : > { %6220 = vst [vmem:[#allocation47_spill] sm:$0xff] %v4144_v53  ;;  %1175 = vmatpush2.msra.mxu1 %v6221_v27  ;;  %560 = vmatmul.mubr.f32.vlgmr.msra.gmra.mxu0 %v559_v41  ;;  %v4156_v3 = vsub.f32 %v379_v8, %v4122_v48  ;;  %v4158_v23 = vand.u32 4294901760, %v382_v1  ;;  %v1195_v19 = vand.u32 4294901760, %v1194_v31  ;;  %v1202_v41 = vand.u32 4294901760, %v1201_v50  ;;  %v217_v50 = vld [vmem:[%s3854_s21 + $0x88] sm:$0xff] }
  0x3f   : > { %6222 = vst [vmem:[#allocation48_spill] sm:$0xff] %v4150_v37  ;;  %1176 = vmatprep.subr.mxu1 %v6194_v7  ;;  %569 = vmatprep.mubr.f32.mxu0 %v568_v9  ;;  %v6225_v27 = vand.u32 4294901760, %v4097_v13  ;;  %v385_v57 = vsel %vm362_vm1, %v215_v39, 0  ;;  %v589_v29 = vand.u32 4294901760, %v588_v62  ;;  %v6226_v9 = vand.u32 4294901760, %v4103_v51 }
  0x40   : > { %6223 = vst [vmem:[#allocation49_spill] sm:$0xff] %v4156_v3  ;;  %6224 = vst [vmem:[#allocation50_spill] sm:$0xff] %v4158_v23  ;;  %1182 = vmatpush2.msra.mxu1 %v1181_v22  ;;  %1429 = vmatprep.subr.mxu0 %v6194_v7  ;;  %v4172_v31 = vand.u32 4294901760, %v281_v43  ;;  %v6228_v39 = vand.u32 4294901760, %v4116_v56  ;;  %v4181_v62 = vand.u32 4294901760, %v385_v57 }
  0x41   : > { %v597_v33 = vsub.f32 %v4097_v13, %v6225_v27  ;;  %1183 = vmatprep.subr.mxu1 %v6194_v7  ;;  %1205 = vmatprep.mubr.f32.mxu1 %v3925_v59  ;;  %v603_v22 = vsub.f32 %v4103_v51, %v6226_v9  ;;  %v4179_v59 = vsub.f32 %v279_v47, %v4150_v37  ;;  %v283_v9 = vsel %vm267_vm2, 0.0, %v214_v40 }
  0x42   : > { %6227 = vst [vmem:[#allocation51_spill] sm:$0xff] %v4172_v31  ;;  %1189 = vmatpush2.msra.mxu1 %v1188_v55  ;;  %575 = vmatmul.mubr.f32.gmra.mxu0 %v574_v61  ;;  %v612_v27 = vsub.f32 %v4116_v56, %v6228_v39  ;;  %6229 = vst [vmem:[#allocation52_spill] sm:$0xff] %v4181_v62  ;;  %v4188_v55 = vsub.f32 %v382_v1, %v4158_v23  ;;  %v216_v61 = vld [vmem:[%s3854_s21 + $0x80] sm:$0xff]  ;;  %v388_v47 = vsel %vm362_vm1, %v217_v50, 0  ;;  %v219_v56 = vld [vmem:[%s3854_s21 + $0x98] sm:$0xff] }
  0x43   : > { %1190 = vmatprep.subr.mxu1 %v6194_v7  ;;  %584 = vmatprep.mubr.f32.mxu0 %v583_v46  ;;  %v598_v39 = vand.u32 4294901760, %v597_v33  ;;  %v604_v51 = vand.u32 4294901760, %v603_v22  ;;  %v6231_v46 = vand.u32 4294901760, %v4144_v53  ;;  %v4200_v1 = vsub.f32 %v281_v43, %v4172_v31 }
  0x44   : > { %6230 = vst [vmem:[#allocation53_spill] sm:$0xff] %v4188_v55  ;;  %1196 = vmatpush2.msra.mxu1 %v1195_v19  ;;  %1432 = vmatpush1.msra.mxu0 %v3697_v15  ;;  %v4202_v19 = vand.u32 4294901760, %v283_v9  ;;  %v613_v33 = vand.u32 4294901760, %v612_v27  ;;  %v4206_v8 = vsub.f32 %v385_v57, %v4181_v62  ;;  %v285_v22 = vsel %vm267_vm2, 0.0, %v216_v61  ;;  %v218_v57 = vld [vmem:[%s3854_s21 + $0x90] sm:$0xff] }
  0x45   : > { %1197 = vmatprep.subr.mxu1 %v6194_v7  ;;  %1433 = vmatprep.subr.mxu0 %v6194_v7  ;;  %v618_v40 = vsub.f32 %v4144_v53, %v6231_v46  ;;  %6232 = vst [vmem:[#allocation54_spill] sm:$0xff] %v4200_v1  ;;  %v6235_v43 = vand.u32 4294901760, %v4156_v3  ;;  %v391_v27 = vsel %vm362_vm1, %v219_v56, 0  ;;  %v6239_v56 = vand.u32 4294901760, %v4179_v59 }
  0x46   : > { %6233 = vst [vmem:[#allocation55_spill] sm:$0xff] %v4202_v19  ;;  %1203 = vmatpush2.msra.mxu1 %v1202_v41  ;;  %590 = vmatmul.mubr.f32.gmra.mxu0 %v589_v29  ;;  %6234 = vst [vmem:[#allocation56_spill] sm:$0xff] %v4206_v8  ;;  %v4216_v29 = vand.u32 4294901760, %v388_v47  ;;  %v221_v41 = vld [vmem:[%s3854_s21 + $0xa8] sm:$0xff] }
  0x47   : > { %1207 = vmatmul.mubr.f32.vlgmr.msra.gmra.mxu1 %v3945_v14  ;;  %1826 = vmatprep.subr.mxu1 %v6194_v7  ;;  %v627_v46 = vsub.f32 %v4156_v3, %v6235_v43  ;;  %v619_v61 = vand.u32 4294901760, %v618_v40  ;;  %v4225_v14 = vsub.f32 %v283_v9, %v4202_v19  ;;  %v4227_v43 = vand.u32 4294901760, %v285_v22 }
  0x48   : > { %6236 = vst [vmem:[#allocation57_spill] sm:$0xff] %v4216_v29  ;;  %1828 = vmatpush1.msra.mxu1 %v3667_v4  ;;  %599 = vmatprep.mubr.f32.mxu0 %v598_v39  ;;  %v633_v39 = vsub.f32 %v4179_v59, %v6239_v56  ;;  %v4235_v3 = vand.u32 4294901760, %v391_v27  ;;  %v287_v40 = vsel %vm267_vm2, 0.0, %v218_v57  ;;  %v4244_v53 = vsub.f32 %v388_v47, %v4216_v29 }
  0x49   : > { %1212 = vmatprep.mubr.f32.mxu1 %v3950_v24  ;;  %1436 = vmatpush1.msra.mxu0 %v3700_v16  ;;  %6237 = vst [vmem:[#allocation58_spill] sm:$0xff] %v4225_v14  ;;  %6238 = vst [vmem:[#allocation59_spill] sm:$0xff] %v4227_v43  ;;  %v628_v9 = vand.u32 4294901760, %v627_v46  ;;  %v394_v56 = vsel %vm362_vm1, %v221_v41, 0  ;;  %v220_v24 = vld [vmem:[%s3854_s21 + $0xa0] sm:$0xff]  ;;  %v4257_v47 = vsub.f32 %v285_v22, %v4227_v43 }
  0x4a   : > { %605 = vmatmul.mubr.f32.gmra.mxu0 %v604_v51  ;;  %1829 = vmatprep.subr.mxu1 %v6194_v7  ;;  %6240 = vst [vmem:[#allocation60_spill] sm:$0xff] %v4235_v3  ;;  %v6241_v51 = vand.u32 4294901760, %v4188_v55  ;;  %6242 = vst [vmem:[#allocation61_spill] sm:$0xff] %v4244_v53  ;;  %v634_v41 = vand.u32 4294901760, %v633_v39  ;;  %v222_v39 = vld [vmem:[%s3854_s21 + $0xb0] sm:$0xff] }
  0x4b   : > { %1214 = vmatmul.mubr.f32.gmra.mxu1 %v3994_v63  ;;  %614 = vmatprep.mubr.f32.mxu0 %v613_v33  ;;  %v6243_v33 = vand.u32 4294901760, %v4200_v1  ;;  %6244 = vst [vmem:[#allocation62_spill] sm:$0xff] %v4257_v47  ;;  %v6246_v63 = vand.u32 4294901760, %v4206_v8 }
  0x4c   : > { %v642_v50 = vsub.f32 %v4188_v55, %v6241_v51  ;;  %1219 = vmatprep.mubr.f32.mxu1 %v4013_v38  ;;  %1831 = vmatpush1.msra.mxu1 %v3669_v5  ;;  %v4259_v51 = vand.u32 4294901760, %v287_v40  ;;  %v223_v38 = vld [vmem:[%s3854_s21 + $0xb8] sm:$0xff] }
  0x4d   : > { %1437 = vmatprep.subr.mxu0 %v6194_v7  ;;  %1832 = vmatprep.subr.mxu1 %v6194_v7  ;;  %v648_v46 = vsub.f32 %v4200_v1, %v6243_v33  ;;  %v657_v55 = vsub.f32 %v4206_v8, %v6246_v63  ;;  %v4267_v33 = vsub.f32 %v391_v27, %v4235_v3  ;;  %v4271_v1 = vand.u32 4294901760, %v394_v56  ;;  %v225_v27 = vld [vmem:[%s3854_s21 + $0xc8] sm:$0xff] }
  0x4e   : > { %6245 = vst [vmem:[#allocation63_spill] sm:$0xff] %v4259_v51  ;;  %620 = vmatmul.mubr.f32.gmra.mxu0 %v619_v61  ;;  %1834 = vmatpush1.msra.mxu1 %v3671_v6  ;;  %v643_v22 = vand.u32 4294901760, %v642_v50  ;;  %v289_v61 = vsel %vm267_vm2, 0.0, %v220_v24  ;;  %v397_v63 = vsel %vm362_vm1, %v223_v38, 0  ;;  %v6249_v50 = vand.u32 4294901760, %v4225_v14  ;;  %v224_v24 = vld [vmem:[%s3854_s21 + $0xc0] sm:$0xff] }
  0x4f   : > { %6247 = vst [vmem:[#allocation64_spill] sm:$0xff] %v4267_v33  ;;  %1221 = vmatmul.mubr.f32.gmra.mxu1 %v4055_v54  ;;  %629 = vmatprep.mubr.f32.mxu0 %v628_v9  ;;  %6248 = vst [vmem:[#allocation65_spill] sm:$0xff] %v4271_v1  ;;  %v649_v8 = vand.u32 4294901760, %v648_v46  ;;  %v4287_v57 = vsub.f32 %v287_v40, %v4259_v51  ;;  %v4291_v46 = vand.u32 4294901760, %v289_v61  ;;  %v291_v54 = vsel %vm267_vm2, 0.0, %v222_v39 }
  0x50   : > { %1226 = vmatprep.mubr.f32.mxu1 %v4064_v60  ;;  %1440 = vmatpush1.msra.mxu0 %v3705_v18  ;;  %v663_v9 = vsub.f32 %v4225_v14, %v6249_v50  ;;  %v658_v60 = vand.u32 4294901760, %v657_v55  ;;  %v6251_v50 = vand.u32 4294901760, %v4244_v53  ;;  %v4302_v55 = vand.u32 4294901760, %v397_v63 }
  0x51   : > { %1441 = vmatprep.subr.mxu0 %v6194_v7  ;;  %1835 = vmatprep.subr.mxu1 %v6194_v7  ;;  %6250 = vst [vmem:[#allocation66_spill] sm:$0xff] %v4291_v46  ;;  %v400_v38 = vsel %vm362_vm1, %v225_v27, 0  ;;  %v227_v27 = vld [vmem:[%s3854_s21 + $0xd8] sm:$0xff] }
  0x52   : > { %635 = vmatmul.mubr.f32.gmra.mxu0 %v634_v41  ;;  %1837 = vmatpush1.msra.mxu1 %v3683_v10  ;;  %v672_v40 = vsub.f32 %v4244_v53, %v6251_v50  ;;  %v4300_v41 = vsub.f32 %v394_v56, %v4271_v1  ;;  %6253 = vst [vmem:[#allocation68_spill] sm:$0xff] %v4302_v55  ;;  %v664_v39 = vand.u32 4294901760, %v663_v9  ;;  %v4314_v50 = vand.u32 4294901760, %v291_v54 }
  0x53   : > { %1228 = vmatmul.mubr.f32.gmra.mxu1 %v4074_v26  ;;  %644 = vmatprep.mubr.f32.mxu0 %v643_v22  ;;  %v6254_v22 = vand.u32 4294901760, %v4257_v47  ;;  %v6256_v9 = vand.u32 4294901760, %v4267_v33  ;;  %v4322_v53 = vsub.f32 %v289_v61, %v4291_v46  ;;  %v4331_v14 = vsub.f32 %v397_v63, %v4302_v55 }
  0x54   : > { %6252 = vst [vmem:[#allocation67_spill] sm:$0xff] %v4300_v41  ;;  %1233 = vmatprep.mubr.f32.mxu1 %v4083_v44  ;;  %1444 = vmatpush1.msra.mxu0 %v3715_v20  ;;  %6255 = vst [vmem:[#allocation69_spill] sm:$0xff] %v4314_v50  ;;  %v673_v56 = vand.u32 4294901760, %v672_v40  ;;  %v403_v61 = vsel %vm362_vm1, %v227_v27, 0 }
  0x55   : > { %1445 = vmatprep.subr.mxu0 %v6194_v7  ;;  %v678_v26 = vsub.f32 %v4257_v47, %v6254_v22  ;;  %1838 = vmatprep.subr.mxu1 %v6194_v7  ;;  %v687_v44 = vsub.f32 %v4267_v33, %v6256_v9  ;;  %6257 = vst [vmem:[#allocation70_spill] sm:$0xff] %v4322_v53  ;;  %v4324_v22 = vand.u32 4294901760, %v400_v38  ;;  %v293_v47 = vsel %vm267_vm2, 0.0, %v224_v24  ;;  %v229_v9 = vld [vmem:[%s3854_s21 + $0xe8] sm:$0xff] }
  0x56   : > { %650 = vmatmul.mubr.f32.gmra.mxu0 %v649_v8  ;;  %1840 = vmatpush1.msra.mxu1 %v3685_v11  ;;  %v6011_v8 = vand.u32 4294901760, %v4300_v41  ;;  %6259 = vst [vmem:[#allocation72_spill] sm:$0xff] %v4331_v14  ;;  %v226_v11 = vld [vmem:[%s3854_s21 + $0xd0] sm:$0xff]  ;;  %v6260_v24 = vand.u32 4294901760, %v4287_v57  ;;  %v4346_v63 = vand.u32 4294901760, %v293_v47 }
  0x57   : > { %6258 = vst [vmem:[#allocation71_spill] sm:$0xff] %v4324_v22  ;;  %1235 = vmatmul.mubr.f32.gmra.mxu1 %v4105_v0  ;;  %659 = vmatprep.mubr.f32.mxu0 %v658_v60  ;;  %v679_v33 = vand.u32 4294901760, %v678_v26  ;;  %v4344_v60 = vsub.f32 %v291_v54, %v4314_v50  ;;  %v688_v40 = vand.u32 4294901760, %v687_v44  ;;  %v4351_v27 = vsub.f32 %v400_v38, %v4324_v22  ;;  %v231_v44 = vld [vmem:[%s3854_s21 + $0xf8] sm:$0xff] }
  0x58   : > { %1240 = vmatprep.mubr.f32.mxu1 %v4122_v48  ;;  %1448 = vmatpush1.msra.mxu0 %v3718_v21  ;;  %v693_v0 = vsub.f32 %v4287_v57, %v6260_v24  ;;  %6262 = vst [vmem:[#allocation74_spill] sm:$0xff] %v4346_v63  ;;  %v295_v24 = vsel %vm267_vm2, 0.0, %v226_v11  ;;  %v702_v54 = vsub.f32 %v4300_v41, %v6011_v8  ;;  %v406_v26 = vsel %vm362_vm1, %v229_v9, 0  ;;  %v228_v48 = vld [vmem:[%s3854_s21 + $0xe0] sm:$0xff] }
  0x59   : > { %1449 = vmatprep.subr.mxu0 %v6194_v7  ;;  %1841 = vmatprep.subr.mxu1 %v6194_v7  ;;  %6261 = vst [vmem:[#allocation73_spill] sm:$0xff] %v4344_v60  ;;  %6263 = vst [vmem:[#allocation75_spill] sm:$0xff] %v4351_v27  ;;  %v4372_v8 = vand.u32 4294901760, %v295_v24  ;;  %v6267_v9 = vand.u32 4294901760, %v4322_v53  ;;  %v297_v38 = vsel %vm267_vm2, 0.0, %v228_v48  ;;  %v6271_v48 = vand.u32 4294901760, %v4344_v60 }
  0x5a   : > { %665 = vmatmul.mubr.f32.gmra.mxu0 %v664_v39  ;;  %1843 = vmatpush1.msra.mxu1 %v3687_v12  ;;  %v4360_v39 = vand.u32 4294901760, %v403_v61  ;;  %v694_v11 = vand.u32 4294901760, %v693_v0  ;;  %v409_v0 = vsel %vm362_vm1, %v231_v44, 0 }
  0x5b   : > { %1242 = vmatmul.mubr.f32.gmra.mxu1 %v4150_v37  ;;  %674 = vmatprep.mubr.f32.mxu0 %v673_v56  ;;  %v4370_v56 = vsub.f32 %v293_v47, %v4346_v63  ;;  %6266 = vst [vmem:[#allocation78_spill] sm:$0xff] %v4372_v8  ;;  %v4380_v37 = vand.u32 4294901760, %v406_v26  ;;  %v703_v47 = vand.u32 4294901760, %v702_v54  ;;  %v4404_v54 = vand.u32 4294901760, %v297_v38 }
  0x5c   : > { %6264 = vst [vmem:[#allocation76_spill] sm:$0xff] %v4360_v39  ;;  %1247 = vmatprep.mubr.f32.mxu1 %v4158_v23  ;;  %1452 = vmatpush1.msra.mxu0 %v3735_v30  ;;  %v708_v23 = vsub.f32 %v4322_v53, %v6267_v9  ;;  %v4389_v9 = vsub.f32 %v403_v61, %v4360_v39  ;;  %v230_v53 = vld [vmem:[%s3854_s21 + $0xf0] sm:$0xff] }
  0x5d   : > { %1453 = vmatprep.subr.mxu0 %v6194_v7  ;;  %1844 = vmatprep.subr.mxu1 %v6194_v7  ;;  %6265 = vst [vmem:[#allocation77_spill] sm:$0xff] %v4370_v56  ;;  %6268 = vst [vmem:[#allocation79_spill] sm:$0xff] %v4380_v37  ;;  %v4402_v61 = vsub.f32 %v295_v24, %v4372_v8 }
  0x5e   : > { %680 = vmatmul.mubr.f32.gmra.mxu0 %v679_v33  ;;  %1846 = vmatpush1.msra.mxu1 %v3702_v17  ;;  %v6269_v33 = vand.u32 4294901760, %v4331_v14  ;;  %6270 = vst [vmem:[#allocation80_spill] sm:$0xff] %v4389_v9  ;;  %6273 = vst [vmem:[#allocation82_spill] sm:$0xff] %v4404_v54  ;;  %v709_v44 = vand.u32 4294901760, %v708_v23  ;;  %v299_v23 = vsel %vm267_vm2, 0.0, %v230_v53  ;;  %v4432_v53 = vsub.f32 %v297_v38, %v4404_v54 }
  0x5f   : > { %1249 = vmatmul.mubr.f32.gmra.mxu1 %v4172_v31  ;;  %689 = vmatprep.mubr.f32.mxu0 %v688_v40  ;;  %v723_v31 = vsub.f32 %v4344_v60, %v6271_v48  ;;  %6272 = vst [vmem:[#allocation81_spill] sm:$0xff] %v4402_v61  ;;  %v4412_v40 = vsub.f32 %v406_v26, %v4380_v37  ;;  %v235_v26 = vld [vmem:[%s3854_s21 + $0x118] sm:$0xff] }
  0x60   : > { %v717_v41 = vsub.f32 %v4331_v14, %v6269_v33  ;;  %1254 = vmatprep.mubr.f32.mxu1 %v4181_v62  ;;  %1456 = vmatpush1.msra.mxu0 %v3752_v35  ;;  %v233_v33 = vld [vmem:[%s3854_s21 + $0x108] sm:$0xff]  ;;  %v6274_v62 = vand.u32 4294901760, %v4351_v27  ;;  %v4416_v14 = vand.u32 4294901760, %v409_v0  ;;  %6278 = vst [vmem:[#allocation85_spill] sm:$0xff] %v4432_v53 }
  0x61   : > { %1457 = vmatprep.subr.mxu0 %v6194_v7  ;;  %1847 = vmatprep.subr.mxu1 %v6194_v7  ;;  %6275 = vst [vmem:[#allocation83_spill] sm:$0xff] %v4412_v40 }
  0x62   : > { %695 = vmatmul.mubr.f32.gmra.mxu0 %v694_v11  ;;  %v732_v48 = vsub.f32 %v4351_v27, %v6274_v62  ;;  %1849 = vmatpush1.msra.mxu1 %v3724_v25  ;;  %v718_v24 = vand.u32 4294901760, %v717_v41  ;;  %6276 = vst [vmem:[#allocation84_spill] sm:$0xff] %v4416_v14  ;;  %v232_v11 = vld [vmem:[%s3854_s21 + $0x100] sm:$0xff]  ;;  %v412_v62 = vsel %vm362_vm1, %v233_v33, 0  ;;  %v724_v27 = vand.u32 4294901760, %v723_v31 }
  0x63   : > { %1256 = vmatmul.mubr.f32.gmra.mxu1 %v4202_v19  ;;  %704 = vmatprep.mubr.f32.mxu0 %v703_v47  ;;  %v6277_v19 = vand.u32 4294901760, %v4370_v56  ;;  %v4436_v31 = vand.u32 4294901760, %v299_v23  ;;  %v6280_v47 = vand.u32 4294901760, %v4389_v9  ;;  %v415_v33 = vsel %vm362_vm1, %v235_v26, 0  ;;  %v237_v26 = vld [vmem:[%s3854_s21 + $0x128] sm:$0xff] }
  0x64   : > { %1261 = vmatprep.mubr.f32.mxu1 %v4216_v29  ;;  %1460 = vmatpush1.msra.mxu0 %v3775_v45  ;;  %v733_v60 = vand.u32 4294901760, %v732_v48  ;;  %v4447_v48 = vand.u32 4294901760, %v412_v62  ;;  %v234_v29 = vld [vmem:[%s3854_s21 + $0x110] sm:$0xff] }
  0x65   : > { %v738_v41 = vsub.f32 %v4370_v56, %v6277_v19  ;;  %1461 = vmatprep.subr.mxu0 %v6194_v7  ;;  %1850 = vmatprep.subr.mxu1 %v6194_v7  ;;  %6279 = vst [vmem:[#allocation86_spill] sm:$0xff] %v4436_v31  ;;  %v301_v19 = vsel %vm267_vm2, 0.0, %v232_v11  ;;  %v747_v38 = vsub.f32 %v4389_v9, %v6280_v47  ;;  %v6285_v47 = vand.u32 4294901760, %v4412_v40 }
  0x66   : > { %710 = vmatmul.mubr.f32.gmra.mxu0 %v709_v44  ;;  %1852 = vmatpush1.msra.mxu1 %v3731_v28  ;;  %v4445_v44 = vsub.f32 %v409_v0, %v4416_v14  ;;  %6282 = vst [vmem:[#allocation88_spill] sm:$0xff] %v4447_v48  ;;  %v4459_v0 = vand.u32 4294901760, %v301_v19  ;;  %v303_v56 = vsel %vm267_vm2, 0.0, %v234_v29  ;;  %v4476_v9 = vsub.f32 %v412_v62, %v4447_v48 }
  0x67   : > { %1263 = vmatmul.mubr.f32.gmra.mxu1 %v4227_v43  ;;  %719 = vmatprep.mubr.f32.mxu0 %v718_v24  ;;  %v739_v11 = vand.u32 4294901760, %v738_v41  ;;  %v6283_v43 = vand.u32 4294901760, %v4402_v61  ;;  %v762_v41 = vsub.f32 %v4412_v40, %v6285_v47  ;;  %v236_v47 = vld [vmem:[%s3854_s21 + $0x120] sm:$0xff]  ;;  %v239_v40 = vld [vmem:[%s3854_s21 + $0x138] sm:$0xff]  ;;  %v6289_v29 = vand.u32 4294901760, %v4432_v53 }
  0x68   : > { %6281 = vst [vmem:[#allocation87_spill] sm:$0xff] %v4445_v44  ;;  %1268 = vmatprep.mubr.f32.mxu1 %v4235_v3  ;;  %1464 = vmatpush1.msra.mxu0 %v3787_v49  ;;  %6284 = vst [vmem:[#allocation89_spill] sm:$0xff] %v4459_v0  ;;  %v4466_v3 = vsub.f32 %v299_v23, %v4436_v31  ;;  %v418_v23 = vsel %vm362_vm1, %v237_v26, 0  ;;  %v4491_v62 = vand.u32 4294901760, %v303_v56  ;;  %v238_v26 = vld [vmem:[%s3854_s21 + $0x130] sm:$0xff] }
  0x69   : > { %v753_v24 = vsub.f32 %v4402_v61, %v6283_v43  ;;  %1465 = vmatprep.subr.mxu0 %v6194_v7  ;;  %1853 = vmatprep.subr.mxu1 %v6194_v7  ;;  %v4469_v43 = vand.u32 4294901760, %v415_v33  ;;  %v748_v61 = vand.u32 4294901760, %v747_v38  ;;  %6288 = vst [vmem:[#allocation92_spill] sm:$0xff] %v4476_v9  ;;  %v763_v38 = vand.u32 4294901760, %v762_v41 }
  0x6a   : > { %725 = vmatmul.mubr.f32.gmra.mxu0 %v724_v27  ;;  %6286 = vst [vmem:[#allocation90_spill] sm:$0xff] %v4466_v3  ;;  %1855 = vmatpush1.msra.mxu1 %v3755_v36  ;;  %v6051_v27 = vand.u32 4294901760, %v4445_v44  ;;  %6291 = vst [vmem:[#allocation94_spill] sm:$0xff] %v4491_v62  ;;  %v4505_v41 = vand.u32 4294901760, %v418_v23 }
  0x6b   : > { %6287 = vst [vmem:[#allocation91_spill] sm:$0xff] %v4469_v43  ;;  %1270 = vmatmul.mubr.f32.gmra.mxu1 %v4259_v51  ;;  %734 = vmatprep.mubr.f32.mxu0 %v733_v60  ;;  %v754_v36 = vand.u32 4294901760, %v753_v24  ;;  %v768_v51 = vsub.f32 %v4432_v53, %v6289_v29  ;;  %v4487_v60 = vsub.f32 %v301_v19, %v4459_v0  ;;  %v305_v19 = vsel %vm267_vm2, 0.0, %v236_v47 }
  0x6c   : > { %1275 = vmatprep.mubr.f32.mxu1 %v4271_v1  ;;  %1468 = vmatpush1.msra.mxu0 %v3797_v52  ;;  %v4495_v24 = vsub.f32 %v415_v33, %v4469_v43  ;;  %v777_v29 = vsub.f32 %v4445_v44, %v6051_v27  ;;  %6293 = vst [vmem:[#allocation96_spill] sm:$0xff] %v4505_v41  ;;  %v421_v33 = vsel %vm362_vm1, %v239_v40, 0  ;;  %v4516_v27 = vand.u32 4294901760, %v305_v19 }
  0x6d   : > { %6290 = vst [vmem:[#allocation93_spill] sm:$0xff] %v4487_v60  ;;  %1469 = vmatprep.subr.mxu0 %v6194_v7  ;;  %1856 = vmatprep.subr.mxu1 %v6194_v7  ;;  %v769_v47 = vand.u32 4294901760, %v768_v51  ;;  %v6296_v40 = vand.u32 4294901760, %v4466_v3  ;;  %v4525_v1 = vand.u32 4294901760, %v421_v33  ;;  %v6301_v51 = vld [vmem:[#allocation8_spill] sm:$0xff] }
  0x6e   : > { %740 = vmatmul.mubr.f32.gmra.mxu0 %v739_v11  ;;  %6292 = vst [vmem:[#allocation95_spill] sm:$0xff] %v4495_v24  ;;  %1858 = vmatpush1.msra.mxu1 %v3765_v42  ;;  %6295 = vst [vmem:[#allocation98_spill] sm:$0xff] %v4516_v27  ;;  %v241_v11 = vld [vmem:[%s3854_s21 + $0x148] sm:$0xff]  ;;  %v778_v44 = vand.u32 4294901760, %v777_v29  ;;  %v4545_v29 = vsub.f32 %v305_v19, %v4516_v27  ;;  %v6307_v19 = vld [vmem:[#allocation7_spill] sm:$0xff] }
  0x6f   : > { %1277 = vmatmul.mubr.f32.gmra.mxu1 %v4291_v46  ;;  %749 = vmatprep.mubr.f32.mxu0 %v748_v61  ;;  %v4513_v61 = vsub.f32 %v303_v56, %v4491_v62  ;;  %v6297_v46 = vld [vmem:[#allocation6_spill] sm:$0xff]  ;;  %6298 = vst [vmem:[#allocation99_spill] sm:$0xff] %v4525_v1  ;;  %v307_v56 = vsel %vm267_vm2, 0.0, %v238_v26  ;;  %v6302_v26 = vand.u32 4294901760, %v4487_v60  ;;  %v249_v42 = vld [vmem:[%s3854_s21 + $0x188] sm:$0xff] }
  0x70   : > { %1282 = vmatprep.mubr.f32.mxu1 %v4302_v55  ;;  %1472 = vmatpush1.msra.mxu0 %v3809_v58  ;;  %v783_v55 = vsub.f32 %v4466_v3, %v6296_v40  ;;  %v4534_v40 = vsub.f32 %v418_v23, %v4505_v41  ;;  %v424_v3 = vsel %vm362_vm1, %v241_v11, 0  ;;  %6303 = vst [vmem:[#allocation101_spill] sm:$0xff] %v4545_v29  ;;  %v243_v23 = vld [vmem:[%s3854_s21 + $0x158] sm:$0xff] }
  0x71   : > { %6294 = vst [vmem:[#allocation97_spill] sm:$0xff] %v4513_v61  ;;  %1473 = vmatprep.subr.mxu0 %v6194_v7  ;;  %1859 = vmatprep.subr.mxu1 %v6194_v7 }
  0x72   : > { %755 = vmatmul.mubr.f32.gmra.mxu0 %v754_v36  ;;  %1861 = vmatpush1.msra.mxu1 %v6297_v46  ;;  %v6299_v36 = vand.u32 4294901760, %v4476_v9  ;;  %6300 = vst [vmem:[#allocation100_spill] sm:$0xff] %v4534_v40  ;;  %v240_v46 = vld [vmem:[%s3854_s21 + $0x140] sm:$0xff]  ;;  %v784_v11 = vand.u32 4294901760, %v783_v55 }
  0x73   : > { %1284 = vmatmul.mubr.f32.gmra.mxu1 %v4314_v50  ;;  %764 = vmatprep.mubr.f32.mxu0 %v763_v38  ;;  %v798_v50 = vsub.f32 %v4487_v60, %v6302_v26  ;;  %v4556_v38 = vsub.f32 %v421_v33, %v4525_v1  ;;  %v309_v55 = vsel %vm267_vm2, 0.0, %v240_v46  ;;  %v427_v33 = vsel %vm362_vm1, %v243_v23, 0 }
  0x74   : > { %v792_v53 = vsub.f32 %v4476_v9, %v6299_v36  ;;  %1289 = vmatprep.mubr.f32.mxu1 %v4324_v22  ;;  %1476 = vmatpush1.msra.mxu0 %v6301_v51  ;;  %v4547_v36 = vand.u32 4294901760, %v307_v56  ;;  %v6305_v22 = vand.u32 4294901760, %v4495_v24  ;;  %v4561_v51 = vand.u32 4294901760, %v424_v3 }
  0x75   : > { %1477 = vmatprep.subr.mxu0 %v6194_v7  ;;  %1862 = vmatprep.subr.mxu1 %v6194_v7  ;;  %6306 = vst [vmem:[#allocation103_spill] sm:$0xff] %v4556_v38 }
  0x76   : > { %6304 = vst [vmem:[#allocation102_spill] sm:$0xff] %v4547_v36  ;;  %770 = vmatmul.mubr.f32.gmra.mxu0 %v769_v47  ;;  %v807_v26 = vsub.f32 %v4495_v24, %v6305_v22  ;;  %1864 = vmatpush1.msra.mxu1 %v6307_v19  ;;  %v793_v60 = vand.u32 4294901760, %v792_v53  ;;  %6308 = vst [vmem:[#allocation104_spill] sm:$0xff] %v4561_v51  ;;  %v242_v47 = vld [vmem:[%s3854_s21 + $0x150] sm:$0xff]  ;;  %v6309_v22 = vld [vmem:[#allocation10_spill] sm:$0xff]  ;;  %v799_v19 = vand.u32 4294901760, %v798_v50 }
  0x77   : > { %1291 = vmatmul.mubr.f32.gmra.mxu1 %v4346_v63  ;;  %779 = vmatprep.mubr.f32.mxu0 %v778_v44  ;;  %v245_v24 = vld [vmem:[%s3854_s21 + $0x168] sm:$0xff]  ;;  %v6310_v63 = vand.u32 4294901760, %v4513_v61  ;;  %v4575_v9 = vsub.f32 %v307_v56, %v4547_v36  ;;  %v311_v50 = vsel %vm267_vm2, 0.0, %v242_v47  ;;  %v6314_v56 = vand.u32 4294901760, %v4534_v40  ;;  %v6317_v47 = vld [vmem:[#allocation15_spill] sm:$0xff] }
  0x78   : > { %1296 = vmatprep.mubr.f32.mxu1 %v4360_v39  ;;  %1480 = vmatpush1.msra.mxu0 %v6309_v22  ;;  %v808_v46 = vand.u32 4294901760, %v807_v26  ;;  %v4580_v39 = vand.u32 4294901760, %v309_v55  ;;  %v4592_v26 = vand.u32 4294901760, %v427_v33  ;;  %v430_v23 = vsel %vm362_vm1, %v245_v24, 0 }
  0x79   : > { %v813_v53 = vsub.f32 %v4513_v61, %v6310_v63  ;;  %6311 = vst [vmem:[#allocation105_spill] sm:$0xff] %v4575_v9  ;;  %1481 = vmatprep.subr.mxu0 %v6194_v7  ;;  %1865 = vmatprep.subr.mxu1 %v6194_v7  ;;  %v6313_v63 = vld [vmem:[#allocation9_spill] sm:$0xff]  ;;  %v822_v44 = vsub.f32 %v4534_v40, %v6314_v56  ;;  %v244_v61 = vld [vmem:[%s3854_s21 + $0x160] sm:$0xff]  ;;  %v4602_v56 = vand.u32 4294901760, %v311_v50  ;;  %v6320_v24 = vand.u32 4294901760, %v4556_v38 }
  0x7a   : > { %785 = vmatmul.mubr.f32.gmra.mxu0 %v784_v11  ;;  %6312 = vst [vmem:[#allocation106_spill] sm:$0xff] %v4580_v39  ;;  %1867 = vmatpush1.msra.mxu1 %v6313_v63  ;;  %v4590_v11 = vsub.f32 %v424_v3, %v4561_v51  ;;  %6316 = vst [vmem:[#allocation108_spill] sm:$0xff] %v4592_v26  ;;  %v247_v3 = vld [vmem:[%s3854_s21 + $0x178] sm:$0xff]  ;;  %v313_v22 = vsel %vm267_vm2, 0.0, %v244_v61 }
  0x7b   : > { %1298 = vmatmul.mubr.f32.gmra.mxu1 %v4372_v8  ;;  %794 = vmatprep.mubr.f32.mxu0 %v793_v60  ;;  %v814_v63 = vand.u32 4294901760, %v813_v53  ;;  %v6318_v8 = vand.u32 4294901760, %v4545_v29  ;;  %6319 = vst [vmem:[#allocation109_spill] sm:$0xff] %v4602_v56  ;;  %v837_v53 = vsub.f32 %v4556_v38, %v6320_v24  ;;  %v823_v40 = vand.u32 4294901760, %v822_v44  ;;  %v246_v24 = vld [vmem:[%s3854_s21 + $0x170] sm:$0xff] }
  0x7c   : > { %6315 = vst [vmem:[#allocation107_spill] sm:$0xff] %v4590_v11  ;;  %1303 = vmatprep.mubr.f32.mxu1 %v4380_v37  ;;  %1484 = vmatpush1.msra.mxu0 %v6317_v47  ;;  %v4611_v37 = vsub.f32 %v309_v55, %v4580_v39  ;;  %v4621_v47 = vsub.f32 %v427_v33, %v4592_v26  ;;  %v6325_v55 = vld [vmem:[#allocation16_spill] sm:$0xff]  ;;  %v433_v38 = vsel %vm362_vm1, %v247_v3, 0  ;;  %v248_v3 = vld [vmem:[%s3854_s21 + $0x180] sm:$0xff] }
  0x7d   : > { %v828_v60 = vsub.f32 %v4545_v29, %v6318_v8  ;;  %1485 = vmatprep.subr.mxu0 %v6194_v7  ;;  %1868 = vmatprep.subr.mxu1 %v6194_v7  ;;  %v4613_v8 = vand.u32 4294901760, %v430_v23  ;;  %v6323_v29 = vld [vmem:[#allocation11_spill] sm:$0xff]  ;;  %v4632_v44 = vsub.f32 %v311_v50, %v4602_v56  ;;  %v838_v33 = vand.u32 4294901760, %v837_v53  ;;  %v6330_v50 = vld [vmem:[#allocation12_spill] sm:$0xff] }
  0x7e   : > { %800 = vmatmul.mubr.f32.gmra.mxu0 %v799_v19  ;;  %6321 = vst [vmem:[#allocation110_spill] sm:$0xff] %v4611_v37  ;;  %1870 = vmatpush1.msra.mxu1 %v6323_v29  ;;  %v6097_v19 = vand.u32 4294901760, %v4590_v11  ;;  %6324 = vst [vmem:[#allocation112_spill] sm:$0xff] %v4621_v47  ;;  %v6326_v29 = vand.u32 4294901760, %v4575_v9  ;;  %v4650_v53 = vand.u32 4294901760, %v433_v38 }
  0x7f   : > { %6322 = vst [vmem:[#allocation111_spill] sm:$0xff] %v4613_v8  ;;  %1305 = vmatmul.mubr.f32.gmra.mxu1 %v4404_v54  ;;  %809 = vmatprep.mubr.f32.mxu0 %v808_v46  ;;  %v829_v61 = vand.u32 4294901760, %v828_v60  ;;  %6327 = vst [vmem:[#allocation113_spill] sm:$0xff] %v4632_v44  ;;  %v4634_v46 = vand.u32 4294901760, %v313_v22  ;;  %v4640_v60 = vsub.f32 %v430_v23, %v4613_v8  ;;  %v436_v23 = vsel %vm362_vm1, %v249_v42, 0 }
  0x80   : > { %1310 = vmatprep.mubr.f32.mxu1 %v4416_v14  ;;  %1488 = vmatpush1.msra.mxu0 %v6325_v55  ;;  %v843_v54 = vsub.f32 %v4575_v9, %v6326_v29  ;;  %v315_v29 = vsel %vm267_vm2, 0.0, %v246_v24  ;;  %v852_v14 = vsub.f32 %v4590_v11, %v6097_v19  ;;  %v6331_v9 = vld [vmem:[#allocation17_spill] sm:$0xff]  ;;  %v251_v19 = vld [vmem:[%s3854_s21 + $0x198] sm:$0xff]  ;;  %v6333_v42 = vand.u32 4294901760, %v4611_v37 }
  0x81   : > { %6328 = vst [vmem:[#allocation114_spill] sm:$0xff] %v4634_v46  ;;  %1489 = vmatprep.subr.mxu0 %v6194_v7  ;;  %1871 = vmatprep.subr.mxu1 %v6194_v7  ;;  %6329 = vst [vmem:[#allocation115_spill] sm:$0xff] %v4640_v60  ;;  %v6338_v55 = vld [vmem:[#allocation18_spill] sm:$0xff] }
  0x82   : > { %815 = vmatmul.mubr.f32.gmra.mxu0 %v814_v63  ;;  %1873 = vmatpush1.msra.mxu1 %v6330_v50  ;;  %v844_v24 = vand.u32 4294901760, %v843_v54  ;;  %v858_v63 = vsub.f32 %v4611_v37, %v6333_v42  ;;  %v6335_v50 = vld [vmem:[#allocation13_spill] sm:$0xff]  ;;  %v853_v11 = vand.u32 4294901760, %v852_v14  ;;  %v4679_v42 = vsub.f32 %v433_v38, %v4650_v53  ;;  %v253_v38 = vld [vmem:[%s3854_s21 + $0x1a8] sm:$0xff] }
  0x83   : > { %1312 = vmatmul.mubr.f32.gmra.mxu1 %v4436_v31  ;;  %824 = vmatprep.mubr.f32.mxu0 %v823_v40  ;;  %v4658_v40 = vsub.f32 %v313_v22, %v4634_v46  ;;  %v4660_v31 = vand.u32 4294901760, %v315_v29  ;;  %v317_v22 = vsel %vm267_vm2, 0.0, %v248_v3  ;;  %v439_v54 = vsel %vm362_vm1, %v251_v19, 0  ;;  %v250_v37 = vld [vmem:[%s3854_s21 + $0x190] sm:$0xff] }
  0x84   : > { %1317 = vmatprep.mubr.f32.mxu1 %v4447_v48  ;;  %1492 = vmatpush1.msra.mxu0 %v6331_v9  ;;  %v4669_v48 = vand.u32 4294901760, %v436_v23  ;;  %6337 = vst [vmem:[#allocation118_spill] sm:$0xff] %v4679_v42  ;;  %v6339_v3 = vand.u32 4294901760, %v4632_v44  ;;  %v859_v19 = vand.u32 4294901760, %v858_v63  ;;  %v319_v63 = vsel %vm267_vm2, 0.0, %v250_v37 }
  0x85   : > { %6332 = vst [vmem:[#allocation116_spill] sm:$0xff] %v4658_v40  ;;  %1513 = vmatprep.subr.mxu0 %v6194_v7  ;;  %1894 = vmatprep.subr.mxu1 %v6194_v7 }
  0x86   : > { %830 = vmatmul.mubr.f32.gmra.mxu0 %v829_v61  ;;  %6334 = vst [vmem:[#allocation117_spill] sm:$0xff] %v4669_v48  ;;  %1896 = vmatpush2.msra.mxu1 %v6335_v50  ;;  %v6336_v61 = vand.u32 4294901760, %v4621_v47  ;;  %v4701_v14 = vsub.f32 %v436_v23, %v4669_v48  ;;  %v4706_v50 = vand.u32 4294901760, %v439_v54  ;;  %v6344_v23 = vld [vmem:[#allocation19_spill] sm:$0xff] }
  0x87   : > { %1319 = vmatmul.mubr.f32.gmra.mxu1 %v4459_v0  ;;  %839 = vmatprep.mubr.f32.mxu0 %v838_v33  ;;  %v873_v0 = vsub.f32 %v4632_v44, %v6339_v3  ;;  %v4690_v33 = vsub.f32 %v315_v29, %v4660_v31  ;;  %v6343_v29 = vld [vmem:[#allocation14_spill] sm:$0xff] }
  0x88   : > { %v867_v9 = vsub.f32 %v4621_v47, %v6336_v61  ;;  %1324 = vmatprep.mubr.f32.mxu1 %v4469_v43  ;;  %1516 = vmatpush2.msra.mxu0 %v6338_v55  ;;  %v4692_v61 = vand.u32 4294901760, %v317_v22  ;;  %v6341_v43 = vand.u32 4294901760, %v4640_v60  ;;  %6342 = vst [vmem:[#allocation120_spill] sm:$0xff] %v4701_v14  ;;  %v6356_v55 = vld [vmem:[#allocation31_spill] sm:$0xff] }
  0x89   : > { %6340 = vst [vmem:[#allocation119_spill] sm:$0xff] %v4690_v33  ;;  %1517 = vmatprep.subr.mxu0 %v6194_v7  ;;  %1897 = vmatprep.subr.mxu1 %v6194_v7 }
  0x8a   : > { %845 = vmatmul.mubr.f32.gmra.mxu0 %v844_v24  ;;  %v882_v3 = vsub.f32 %v4640_v60, %v6341_v43  ;;  %1899 = vmatpush2.msra.mxu1 %v6343_v29  ;;  %v868_v44 = vand.u32 4294901760, %v867_v9  ;;  %v252_v24 = vld [vmem:[%s3854_s21 + $0x1a0] sm:$0xff]  ;;  %v442_v43 = vsel %vm362_vm1, %v253_v38, 0  ;;  %v255_v60 = vld [vmem:[%s3854_s21 + $0x1b8] sm:$0xff]  ;;  %v874_v29 = vand.u32 4294901760, %v873_v0 }
  0x8b   : > { %1326 = vmatmul.mubr.f32.gmra.mxu1 %v4491_v62  ;;  %854 = vmatprep.mubr.f32.mxu0 %v853_v11  ;;  %v6345_v62 = vand.u32 4294901760, %v4658_v40  ;;  %v4720_v47 = vsub.f32 %v317_v22, %v4692_v61  ;;  %v321_v0 = vsel %vm267_vm2, 0.0, %v252_v24  ;;  %v6348_v22 = vand.u32 4294901760, %v4679_v42  ;;  %v6350_v24 = vld [vmem:[#allocation26_spill] sm:$0xff] }
  0x8c   : > { %1331 = vmatprep.mubr.f32.mxu1 %v4505_v41  ;;  %1520 = vmatpush2.msra.mxu0 %v6344_v23  ;;  %v883_v37 = vand.u32 4294901760, %v882_v3  ;;  %v4725_v41 = vand.u32 4294901760, %v319_v63  ;;  %v4737_v3 = vand.u32 4294901760, %v442_v43  ;;  %v445_v38 = vsel %vm362_vm1, %v255_v60, 0 }
  0x8d   : > { %v888_v9 = vsub.f32 %v4658_v40, %v6345_v62  ;;  %6346 = vst [vmem:[#allocation121_spill] sm:$0xff] %v4720_v47  ;;  %1521 = vmatprep.subr.mxu0 %v6194_v7  ;;  %1900 = vmatprep.subr.mxu1 %v6194_v7  ;;  %v6347_v62 = vld [vmem:[#allocation20_spill] sm:$0xff]  ;;  %v897_v11 = vsub.f32 %v4679_v42, %v6348_v22  ;;  %v254_v40 = vld [vmem:[%s3854_s21 + $0x1b0] sm:$0xff]  ;;  %v4747_v22 = vand.u32 4294901760, %v321_v0  ;;  %v6352_v60 = vand.u32 4294901760, %v4701_v14 }
  0x8e   : > { %860 = vmatmul.mubr.f32.gmra.mxu0 %v859_v19  ;;  %1902 = vmatpush2.msra.mxu1 %v6347_v62  ;;  %v4735_v19 = vsub.f32 %v439_v54, %v4706_v50  ;;  %v257_v54 = vld [vmem:[%s3854_s21 + $0x1c8] sm:$0xff]  ;;  %v323_v23 = vsel %vm267_vm2, 0.0, %v254_v40 }
  0x8f   : > { %1333 = vmatmul.mubr.f32.gmra.mxu1 %v4516_v27  ;;  %869 = vmatprep.mubr.f32.mxu0 %v868_v44  ;;  %v889_v62 = vand.u32 4294901760, %v888_v9  ;;  %v6351_v27 = vand.u32 4294901760, %v4690_v33  ;;  %v912_v9 = vsub.f32 %v4701_v14, %v6352_v60  ;;  %v898_v42 = vand.u32 4294901760, %v897_v11  ;;  %v256_v60 = vld [vmem:[%s3854_s21 + $0x1c0] sm:$0xff]  ;;  %v259_v14 = vld [vmem:[%s3854_s21 + $0x1d8] sm:$0xff] }
  0x90   : > { %6349 = vst [vmem:[#allocation122_spill] sm:$0xff] %v4735_v19  ;;  %1338 = vmatprep.mubr.f32.mxu1 %v4525_v1  ;;  %1524 = vmatpush2.msra.mxu0 %v6350_v24  ;;  %v4756_v1 = vsub.f32 %v319_v63, %v4725_v41  ;;  %v4766_v24 = vsub.f32 %v442_v43, %v4737_v3  ;;  %v448_v63 = vsel %vm362_vm1, %v257_v54, 0  ;;  %v451_v54 = vsel %vm362_vm1, %v259_v14, 0 }
  0x91   : > { %v903_v44 = vsub.f32 %v4690_v33, %v6351_v27  ;;  %1525 = vmatprep.subr.mxu0 %v6194_v7  ;;  %1903 = vmatprep.subr.mxu1 %v6194_v7  ;;  %v4758_v27 = vand.u32 4294901760, %v445_v38  ;;  %v6354_v33 = vld [vmem:[#allocation24_spill] sm:$0xff]  ;;  %v4777_v11 = vsub.f32 %v321_v0, %v4747_v22  ;;  %v913_v43 = vand.u32 4294901760, %v912_v9 }
  0x92   : > { %875 = vmatmul.mubr.f32.gmra.mxu0 %v874_v29  ;;  %6353 = vst [vmem:[#allocation123_spill] sm:$0xff] %v4756_v1  ;;  %1905 = vmatpush2.msra.mxu1 %v6354_v33  ;;  %v6138_v29 = vand.u32 4294901760, %v4735_v19  ;;  %6355 = vst [vmem:[#allocation124_spill] sm:$0xff] %v4766_v24  ;;  %v6357_v33 = vand.u32 4294901760, %v4720_v47  ;;  %v6360_v0 = vld [vmem:[#allocation32_spill] sm:$0xff]  ;;  %v4795_v9 = vand.u32 4294901760, %v448_v63 }
  0x93   : > { %1340 = vmatmul.mubr.f32.gmra.mxu1 %v4547_v36  ;;  %884 = vmatprep.mubr.f32.mxu0 %v883_v37  ;;  %v904_v40 = vand.u32 4294901760, %v903_v44  ;;  %6358 = vst [vmem:[#allocation31_spill] sm:$0xff] %v4777_v11  ;;  %v4779_v37 = vand.u32 4294901760, %v323_v23  ;;  %v4785_v44 = vsub.f32 %v445_v38, %v4758_v27  ;;  %v258_v38 = vld [vmem:[%s3854_s21 + $0x1d0] sm:$0xff] }
  0x94   : > { %1345 = vmatprep.mubr.f32.mxu1 %v4561_v51  ;;  %1528 = vmatpush2.msra.mxu0 %v6356_v55  ;;  %v918_v36 = vsub.f32 %v4720_v47, %v6357_v33  ;;  %v325_v33 = vsel %vm267_vm2, 0.0, %v256_v60  ;;  %v927_v51 = vsub.f32 %v4735_v19, %v6138_v29  ;;  %v6361_v47 = vld [vmem:[#allocation37_spill] sm:$0xff]  ;;  %v6362_v29 = vand.u32 4294901760, %v4756_v1 }
  0x95   : > { %1529 = vmatprep.subr.mxu0 %v6194_v7  ;;  %1906 = vmatprep.subr.mxu1 %v6194_v7  ;;  %6359 = vst [vmem:[#allocation125_spill] sm:$0xff] %v4785_v44  ;;  %v4814_v60 = vand.u32 4294901760, %v451_v54  ;;  %v6363_v19 = vand.u32 4294901760, %v4766_v24 }
  0x96   : > { %890 = vmatmul.mubr.f32.gmra.mxu0 %v889_v62  ;;  %1908 = vmatpush2.msra.mxu1 %v6360_v0  ;;  %v261_v0 = vld [vmem:[%s3854_s21 + $0x1e8] sm:$0xff]  ;;  %v919_v14 = vand.u32 4294901760, %v918_v36  ;;  %v933_v62 = vsub.f32 %v4756_v1, %v6362_v29  ;;  %v4822_v36 = vsub.f32 %v448_v63, %v4795_v9  ;;  %v327_v29 = vsel %vm267_vm2, 0.0, %v258_v38  ;;  %v260_v1 = vld [vmem:[%s3854_s21 + $0x1e0] sm:$0xff]  ;;  %v263_v63 = vld [vmem:[%s3854_s21 + $0x1f8] sm:$0xff] }
  0x97   : > { %1347 = vmatmul.mubr.f32.gmra.mxu1 %v4580_v39  ;;  %899 = vmatprep.mubr.f32.mxu0 %v898_v42  ;;  %v4803_v39 = vsub.f32 %v323_v23, %v4779_v37  ;;  %v4805_v42 = vand.u32 4294901760, %v325_v33  ;;  %v928_v23 = vand.u32 4294901760, %v927_v51  ;;  %v6366_v38 = vand.u32 4294901760, %v4785_v44 }
  0x98   : > { %1352 = vmatprep.mubr.f32.mxu1 %v4592_v26  ;;  %1532 = vmatpush2.msra.mxu0 %v6361_v47  ;;  %v454_v26 = vsel %vm362_vm1, %v261_v0, 0  ;;  %v934_v0 = vand.u32 4294901760, %v933_v62  ;;  %v329_v62 = vsel %vm267_vm2, 0.0, %v260_v1 }
  0x99   : > { %1533 = vmatprep.subr.mxu0 %v6194_v7  ;;  %1909 = vmatprep.subr.mxu1 %v6194_v7  ;;  %v4865_v1 = vand.u32 4294901760, %v329_v62 }
  0x9a   : > { %905 = vmatmul.mubr.f32.gmra.mxu0 %v904_v40  ;;  %1911 = vmatpush2.msra.mxu1 %v4011_v2  ;;  %v942_v40 = vsub.f32 %v4766_v24, %v6363_v19  ;;  %v6364_v2 = vld [vmem:[#allocation38_spill] sm:$0xff]  ;;  %v4835_v19 = vsub.f32 %v325_v33, %v4805_v42  ;;  %v4844_v24 = vsub.f32 %v451_v54, %v4814_v60 }
  0x9b   : > { %1354 = vmatmul.mubr.f32.gmra.mxu1 %v4602_v56  ;;  %914 = vmatprep.mubr.f32.mxu0 %v913_v43  ;;  %v6365_v43 = vand.u32 4294901760, %v4777_v11 }
  0x9c   : > { %1359 = vmatprep.mubr.f32.mxu1 %v4613_v8  ;;  %1536 = vmatpush2.msra.mxu0 %v6364_v2  ;;  %v957_v8 = vsub.f32 %v4785_v44, %v6366_v38  ;;  %v943_v33 = vand.u32 4294901760, %v942_v40  ;;  %v262_v38 = vld [vmem:[%s3854_s21 + $0x1f0] sm:$0xff]  ;;  %v6367_v44 = vand.u32 4294901760, %v4803_v39 }
  0x9d   : > { %v948_v51 = vsub.f32 %v4777_v11, %v6365_v43  ;;  %2265 = vmatprep.subr.mxu0 %v6194_v7  ;;  %2620 = vmatprep.subr.mxu1 %v6194_v7  ;;  %v4846_v43 = vand.u32 4294901760, %v327_v29  ;;  %v4850_v11 = vand.u32 4294901760, %v454_v26 }
  0x9e   : > { %920 = vmatmul.mubr.f32.gmra.mxu0 %v919_v14  ;;  %v457_v14 = vsel %vm362_vm1, %v263_v63, 0  ;;  %v963_v2 = vsub.f32 %v4803_v39, %v6367_v44  ;;  %v958_v40 = vand.u32 4294901760, %v957_v8  ;;  %v331_v8 = vsel %vm267_vm2, 0.0, %v262_v38 }
  0x9f   : > { %1361 = vmatmul.mubr.f32.gmra.mxu1 %v4634_v46  ;;  %929 = vmatprep.mubr.f32.mxu0 %v928_v23  ;;  %v949_v54 = vand.u32 4294901760, %v948_v51  ;;  %v4863_v46 = vsub.f32 %v327_v29, %v4846_v43  ;;  %v6368_v51 = vand.u32 4294901760, %v4822_v36  ;;  %v4872_v44 = vsub.f32 %v454_v26, %v4850_v11 }
  0xa0   : > { %1366 = vmatprep.mubr.f32.mxu1 %v4650_v53  ;;  %v4874_v23 = vand.u32 4294901760, %v457_v14  ;;  %v964_v29 = vand.u32 4294901760, %v963_v2  ;;  %v4886_v26 = vand.u32 4294901760, %v331_v8  ;;  %v6370_v38 = vand.u32 4294901760, %v4844_v24 }
  0xa1   : > { %v972_v63 = vsub.f32 %v4822_v36, %v6368_v51  ;;  %v6162_v56 = vand.u32 4294901760, %v4863_v46  ;;  %v4884_v51 = vsub.f32 %v329_v62, %v4865_v1 }
  0xa2   : > { %935 = vmatmul.mubr.f32.gmra.mxu0 %v934_v0  ;;  %v6369_v0 = vand.u32 4294901760, %v4835_v19  ;;  %v987_v2 = vsub.f32 %v4844_v24, %v6370_v38 }
  0xa3   : > { %1368 = vmatmul.mubr.f32.gmra.mxu1 %v4660_v31  ;;  %944 = vmatprep.mubr.f32.mxu0 %v943_v33  ;;  %v973_v32 = vand.u32 4294901760, %v972_v63  ;;  %v4902_v63 = vsub.f32 %v331_v8, %v4886_v26 }
  0xa4   : > { %1373 = vmatprep.mubr.f32.mxu1 %v4669_v48  ;;  %v978_v33 = vsub.f32 %v4835_v19, %v6369_v0  ;;  %v4894_v48 = vsub.f32 %v457_v14, %v4874_v23  ;;  %v993_v0 = vsub.f32 %v4863_v46, %v6162_v56  ;;  %v988_v38 = vand.u32 4294901760, %v987_v2 }
  0xa5   : > { %v1022_v8 = vand.u32 4294901760, %v4902_v63 }
  0xa6   : > { %950 = vmatmul.mubr.f32.gmra.mxu0 %v949_v54  ;;  %v6163_v54 = vand.u32 4294901760, %v4872_v44  ;;  %v979_v62 = vand.u32 4294901760, %v978_v33  ;;  %v994_v33 = vand.u32 4294901760, %v993_v0 }
  0xa7   : > { %1375 = vmatmul.mubr.f32.gmra.mxu1 %v4692_v61  ;;  %959 = vmatprep.mubr.f32.mxu0 %v958_v40  ;;  %v1007_v40 = vand.u32 4294901760, %v4884_v51 }
  0xa8   : > { %1380 = vmatprep.mubr.f32.mxu1 %v4706_v50  ;;  %v1002_v14 = vsub.f32 %v4872_v44, %v6163_v54 }
  0xa9   : > { %v1008_v56 = vsub.f32 %v4884_v51, %v1007_v40 }
  0xaa   : > { %965 = vmatmul.mubr.f32.gmra.mxu0 %v964_v29  ;;  %v1016_v29 = vand.u32 4294901760, %v4894_v48 }
  0xab   : > { %1382 = vmatmul.mubr.f32.gmra.mxu1 %v4725_v41  ;;  %974 = vmatprep.mubr.f32.mxu0 %v973_v32  ;;  %v1003_v32 = vand.u32 4294901760, %v1002_v14  ;;  %v1009_v54 = vand.u32 4294901760, %v1008_v56  ;;  %v6371_v56 = vld [vmem:[#allocation23_spill] sm:$0xff]  ;;  %v6372_v14 = vld [vmem:[#allocation28_spill] sm:$0xff] }
  0xac   : > { %1387 = vmatprep.mubr.f32.mxu1 %v4737_v3  ;;  %v1017_v2 = vsub.f32 %v4894_v48, %v1016_v29 }
  0xae   : > { %980 = vmatmul.mubr.f32.gmra.mxu0 %v979_v62  ;;  %v1023_v62 = vsub.f32 %v4902_v63, %v1022_v8  ;;  %v1018_v0 = vand.u32 4294901760, %v1017_v2  ;;  %v6376_v2 = vld [vmem:[#allocation36_spill] sm:$0xff] }
  0xaf   : > { %1389 = vmatmul.mubr.f32.gmra.mxu1 %v4747_v22  ;;  %989 = vmatprep.mubr.f32.mxu0 %v988_v38 }
  0xb0   : > { %1394 = vmatprep.mubr.f32.mxu1 %v4758_v27  ;;  %v1024_v38 = vand.u32 4294901760, %v1023_v62  ;;  %v6377_v62 = vand.u32 4294901760, %v6371_v56 }
  0xb2   : > { %995 = vmatmul.mubr.f32.gmra.mxu0 %v994_v33  ;;  %v6373_v33 = vld [vmem:[#allocation30_spill] sm:$0xff] }
  0xb3   : > { %1396 = vmatmul.mubr.f32.gmra.mxu1 %v4779_v37  ;;  %1004 = vmatprep.mubr.f32.mxu0 %v1003_v32  ;;  %v6375_v32 = vld [vmem:[#allocation35_spill] sm:$0xff] }
  0xb4   : > { %1401 = vmatprep.mubr.f32.mxu1 %v4795_v9 }
  0xb6   : > { %1010 = vmatmul.mubr.f32.gmra.mxu0 %v1009_v54  ;;  %v6374_v54 = vand.u32 4294901760, %v3697_v15  ;;  %v6379_v15 = vand.u32 4294901760, %v6372_v14 }
  0xb7   : > { %1403 = vmatmul.mubr.f32.gmra.mxu1 %v4805_v42  ;;  %1019 = vmatprep.mubr.f32.mxu0 %v1018_v0  ;;  %v6378_v0 = vand.u32 4294901760, %v3700_v16  ;;  %v6382_v16 = vld [vmem:[#allocation43_spill] sm:$0xff] }
  0xb8   : > { %1408 = vmatprep.mubr.f32.mxu1 %v4814_v60 }
  0xba   : > { %1025 = vmatmul.mubr.f32.gmra.mxu0 %v1024_v38  ;;  %v6380_v38 = vand.u32 4294901760, %v6373_v33 }
  0xbb   : > { %1410 = vmatmul.mubr.f32.gmra.mxu1 %v4846_v43  ;;  %1539 = vmatprep.mubr.f32.mxu0 %v6371_v56  ;;  %v6381_v56 = vand.u32 4294901760, %v3705_v18  ;;  %v6388_v18 = vld [vmem:[#allocation49_spill] sm:$0xff] }
  0xbc   : > { %1415 = vmatprep.mubr.f32.mxu1 %v4850_v11 }
  0xbe   : > { %1542 = vmatmul.mubr.f32.vlgmr.msra.gmra.mxu0 %v6372_v14  ;;  %v6384_v14 = vld [vmem:[#allocation45_spill] sm:$0xff] }
  0xbf   : > { %1417 = vmatmul.mubr.f32.gmra.mxu1 %v4865_v1  ;;  %1548 = vmatprep.mubr.f32.mxu0 %v6373_v33  ;;  %v6389_v33 = vand.u32 4294901760, %v4097_v13 }
  0xc0   : > { %1422 = vmatprep.mubr.f32.mxu1 %v4874_v23  ;;  %2269 = vmatpush1.msra.mxu0 %v6374_v54  ;;  %v6383_v54 = vand.u32 4294901760, %v6375_v32 }
  0xc1   : > { %2270 = vmatprep.subr.mxu0 %v6194_v7 }
  0xc2   : > { %1551 = vmatmul.mubr.f32.gmra.mxu0 %v6375_v32  ;;  %v6390_v32 = vand.u32 4294901760, %v3715_v20  ;;  %v6395_v20 = vld [vmem:[#allocation3_spill] sm:$0xff] }
  0xc3   : > { %1424 = vmatmul.mubr.f32.gmra.mxu1 %v4886_v26  ;;  %1557 = vmatprep.mubr.f32.mxu0 %v6376_v2 }
  0xc4   : > { %1915 = vmatprep.mubr.f32.mxu1 %v6377_v62  ;;  %2274 = vmatpush1.msra.mxu0 %v6378_v0  ;;  %v6385_v62 = vand.u32 4294901760, %v6376_v2  ;;  %v6393_v2 = vand.u32 4294901760, %v6384_v14 }
  0xc5   : > { %2275 = vmatprep.subr.mxu0 %v6194_v7 }
  0xc6   : > { %1560 = vmatmul.mubr.f32.gmra.mxu0 %v4072_v34 }
  0xc7   : > { %1919 = vmatmul.mubr.f32.vlgmr.msra.gmra.mxu1 %v6379_v15  ;;  %1566 = vmatprep.mubr.f32.mxu0 %v4097_v13  ;;  %v6394_v13 = vand.u32 4294901760, %v3718_v21  ;;  %v6398_v15 = vld [vmem:[#allocation56_spill] sm:$0xff]  ;;  %v6401_v21 = vld [vmem:[#allocation58_spill] sm:$0xff] }
  0xc8   : > { %2622 = vmatpush1.msra.mxu1 %v3667_v4  ;;  %1926 = vmatprep.mubr.f32.mxu1 %v6380_v38  ;;  %v6386_v4 = vld [vmem:[#allocation47_spill] sm:$0xff]  ;;  %v6399_v38 = vand.u32 4294901760, %v6388_v18 }
  0xc9   : > { %2623 = vmatprep.subr.mxu1 %v6194_v7  ;;  %2279 = vmatpush1.msra.mxu0 %v6381_v56  ;;  %v6397_v0 = vand.u32 4294901760, %v6386_v4  ;;  %v6400_v56 = vand.u32 4294901760, %v3735_v30 }
  0xca   : > { %1569 = vmatmul.mubr.f32.gmra.mxu0 %v6382_v16  ;;  %2625 = vmatpush1.msra.mxu1 %v3669_v5  ;;  %v6387_v5 = vand.u32 4294901760, %v4072_v34  ;;  %v6392_v34 = vld [vmem:[#allocation53_spill] sm:$0xff] }
  0xcb   : > { %1930 = vmatmul.mubr.f32.gmra.mxu1 %v6383_v54  ;;  %1575 = vmatprep.mubr.f32.mxu0 %v6384_v14  ;;  %v6403_v54 = vld [vmem:[#allocation61_spill] sm:$0xff]  ;;  %v6404_v14 = vand.u32 4294901760, %v6392_v34 }
  0xcc   : > { %1937 = vmatprep.mubr.f32.mxu1 %v6385_v62  ;;  %2626 = vmatprep.subr.mxu1 %v6194_v7  ;;  %v6405_v62 = vand.u32 4294901760, %v3752_v35  ;;  %v6412_v35 = vld [vmem:[#allocation67_spill] sm:$0xff] }
  0xcd   : > { %2628 = vmatpush1.msra.mxu1 %v3671_v6  ;;  %2280 = vmatprep.subr.mxu0 %v6194_v7  ;;  %v6391_v6 = vand.u32 4294901760, %v6382_v16  ;;  %v6402_v16 = vand.u32 4294901760, %v4179_v59 }
  0xce   : > { %1578 = vmatmul.mubr.f32.gmra.mxu0 %v6386_v4  ;;  %2629 = vmatprep.subr.mxu1 %v6194_v7  ;;  %v6409_v4 = vand.u32 4294901760, %v6398_v15 }
  0xcf   : > { %1941 = vmatmul.mubr.f32.gmra.mxu1 %v6387_v5  ;;  %1584 = vmatprep.mubr.f32.mxu0 %v6388_v18  ;;  %v6410_v5 = vand.u32 4294901760, %v3775_v45  ;;  %v6413_v18 = vand.u32 4294901760, %v6403_v54 }
  0xd0   : > { %1948 = vmatprep.mubr.f32.mxu1 %v6389_v33  ;;  %2284 = vmatpush1.msra.mxu0 %v6390_v32  ;;  %v6414_v33 = vand.u32 4294901760, %v3787_v49  ;;  %v6417_v32 = vld [vmem:[#allocation72_spill] sm:$0xff] }
  0xd1   : > { %2631 = vmatpush1.msra.mxu1 %v3683_v10  ;;  %2285 = vmatprep.subr.mxu0 %v6194_v7  ;;  %v6396_v10 = vld [vmem:[#allocation54_spill] sm:$0xff]  ;;  %v6420_v49 = vld [vmem:[#allocation4_spill] sm:$0xff] }
  0xd2   : > { %1587 = vmatmul.mubr.f32.gmra.mxu0 %v4179_v59  ;;  %2632 = vmatprep.subr.mxu1 %v6194_v7  ;;  %v6407_v30 = vand.u32 4294901760, %v6396_v10  ;;  %v6408_v59 = vld [vmem:[#allocation64_spill] sm:$0xff] }
  0xd3   : > { %1952 = vmatmul.mubr.f32.gmra.mxu1 %v6391_v6  ;;  %1593 = vmatprep.mubr.f32.mxu0 %v6392_v34  ;;  %v6418_v6 = vand.u32 4294901760, %v6408_v59  ;;  %v6419_v34 = vand.u32 4294901760, %v3797_v52  ;;  %v6426_v52 = vld [vmem:[#allocation5_spill] sm:$0xff] }
  0xd4   : > { %1959 = vmatprep.mubr.f32.mxu1 %v6393_v2  ;;  %2289 = vmatpush1.msra.mxu0 %v6394_v13  ;;  %v6422_v2 = vand.u32 4294901760, %v4287_v57  ;;  %v6423_v13 = vld [vmem:[#allocation75_spill] sm:$0xff] }
  0xd5   : > { %2634 = vmatpush1.msra.mxu1 %v6395_v20  ;;  %2290 = vmatprep.subr.mxu0 %v6194_v7  ;;  %v6424_v20 = vand.u32 4294901760, %v6412_v35 }
  0xd6   : > { %1596 = vmatmul.mubr.f32.gmra.mxu0 %v6396_v10  ;;  %2635 = vmatprep.subr.mxu1 %v6194_v7  ;;  %v6425_v10 = vand.u32 4294901760, %v3809_v58  ;;  %v6433_v58 = vld [vmem:[#allocation6_spill] sm:$0xff] }
  0xd7   : > { %1963 = vmatmul.mubr.f32.gmra.mxu1 %v6397_v0  ;;  %1602 = vmatprep.mubr.f32.mxu0 %v6398_v15  ;;  %v6427_v0 = vld [vmem:[#allocation77_spill] sm:$0xff] }
  0xd8   : > { %1970 = vmatprep.mubr.f32.mxu1 %v6399_v38  ;;  %2294 = vmatpush1.msra.mxu0 %v6400_v56  ;;  %v6430_v38 = vand.u32 4294901760, %v6417_v32  ;;  %v6431_v56 = vld [vmem:[#allocation8_spill] sm:$0xff] }
  0xd9   : > { %2637 = vmatpush1.msra.mxu1 %v3687_v12  ;;  %2295 = vmatprep.subr.mxu0 %v6194_v7  ;;  %v6406_v12 = vld [vmem:[#allocation62_spill] sm:$0xff] }
  0xda   : > { %1605 = vmatmul.mubr.f32.gmra.mxu0 %v6401_v21  ;;  %2638 = vmatprep.subr.mxu1 %v6194_v7  ;;  %v6416_v45 = vand.u32 4294901760, %v6406_v12 }
  0xdb   : > { %1974 = vmatmul.mubr.f32.gmra.mxu1 %v6402_v16  ;;  %1611 = vmatprep.mubr.f32.mxu0 %v6403_v54  ;;  %v6434_v16 = vld [vmem:[#allocation81_spill] sm:$0xff] }
  0xdc   : > { %1981 = vmatprep.mubr.f32.mxu1 %v6404_v14  ;;  %2299 = vmatpush1.msra.mxu0 %v6405_v62  ;;  %v6436_v14 = vld [vmem:[#allocation83_spill] sm:$0xff]  ;;  %v6437_v62 = vand.u32 4294901760, %v6423_v13 }
  0xdd   : > { %2640 = vmatpush1.msra.mxu1 %v3702_v17  ;;  %2300 = vmatprep.subr.mxu0 %v6194_v7  ;;  %v6411_v17 = vand.u32 4294901760, %v6401_v21  ;;  %v6432_v21 = vand.u32 4294901760, %v6431_v56  ;;  %v5108_v56 = vld [vmem:[%s5892_s2] ss:$0 sm:$0xff] }
  0xde   : > { %1614 = vmatmul.mubr.f32.gmra.mxu0 %v6406_v12  ;;  %2641 = vmatprep.subr.mxu1 %v6194_v7  ;;  %v6438_v12 = vld [vmem:[#allocation10_spill] sm:$0xff] }
  0xdf   : > { %1985 = vmatmul.mubr.f32.gmra.mxu1 %v6407_v30  ;;  %1620 = vmatprep.mubr.f32.mxu0 %v6408_v59  ;;  %v6439_v30 = vand.u32 4294901760, %v6438_v12  ;;  %v6440_v59 = vld [vmem:[#allocation7_spill] sm:$0xff] }
  0xe0   : > { %1992 = vmatprep.mubr.f32.mxu1 %v6409_v4  ;;  %2304 = vmatpush1.msra.mxu0 %v6410_v5  ;;  %v6441_v4 = vld [vmem:[#allocation85_spill] sm:$0xff]  ;;  %v6442_v5 = vand.u32 4294901760, %v6427_v0 }
  0xe1   : > { %2643 = vmatpush1.msra.mxu1 %v3724_v25  ;;  %2305 = vmatprep.subr.mxu0 %v6194_v7  ;;  %v6415_v25 = vld [vmem:[#allocation70_spill] sm:$0xff] }
  0xe2   : > { %1623 = vmatmul.mubr.f32.gmra.mxu0 %v4287_v57  ;;  %2644 = vmatprep.subr.mxu1 %v6194_v7  ;;  %v6428_v15 = vand.u32 4294901760, %v6415_v25  ;;  %v6429_v57 = vld [vmem:[#allocation80_spill] sm:$0xff] }
  0xe3   : > { %1996 = vmatmul.mubr.f32.gmra.mxu1 %v6411_v17  ;;  %1629 = vmatprep.mubr.f32.mxu0 %v6412_v35  ;;  %v6443_v17 = vld [vmem:[#allocation87_spill] sm:$0xff]  ;;  %v6444_v35 = vand.u32 4294901760, %v6429_v57 }
  0xe4   : > { %2003 = vmatprep.mubr.f32.mxu1 %v6413_v18  ;;  %2309 = vmatpush1.msra.mxu0 %v6414_v33  ;;  %v6445_v18 = vld [vmem:[#allocation15_spill] sm:$0xff] }
  0xe5   : > { %2646 = vmatpush1.msra.mxu1 %v3731_v28  ;;  %2310 = vmatprep.subr.mxu0 %v6194_v7  ;;  %v6421_v28 = vld [vmem:[#allocation73_spill] sm:$0xff]  ;;  %v6446_v33 = vand.u32 4294901760, %v6445_v18 }
  0xe6   : > { %1632 = vmatmul.mubr.f32.gmra.mxu0 %v6415_v25  ;;  %2647 = vmatprep.subr.mxu1 %v6194_v7  ;;  %v6435_v54 = vand.u32 4294901760, %v6421_v28  ;;  %v6447_v25 = vld [vmem:[#allocation9_spill] sm:$0xff] }
  0xe7   : > { %2007 = vmatmul.mubr.f32.gmra.mxu1 %v6416_v45  ;;  %1638 = vmatprep.mubr.f32.mxu0 %v6417_v32  ;;  %v6448_v45 = vld [vmem:[#allocation90_spill] sm:$0xff]  ;;  %v6449_v32 = vand.u32 4294901760, %v6434_v16 }
  0xe8   : > { %2014 = vmatprep.mubr.f32.mxu1 %v6418_v6  ;;  %2314 = vmatpush1.msra.mxu0 %v6419_v34  ;;  %v6450_v6 = vld [vmem:[#allocation92_spill] sm:$0xff]  ;;  %v6451_v34 = vand.u32 4294901760, %v6436_v14 }
  0xe9   : > { %2649 = vmatpush1.msra.mxu1 %v6420_v49  ;;  %2315 = vmatprep.subr.mxu0 %v6194_v7  ;;  %v6452_v49 = vld [vmem:[#allocation16_spill] sm:$0xff] }
  0xea   : > { %1641 = vmatmul.mubr.f32.gmra.mxu0 %v6421_v28  ;;  %2650 = vmatprep.subr.mxu1 %v6194_v7  ;;  %v6453_v28 = vand.u32 4294901760, %v6452_v49  ;;  %v6473_v49 = vld [vmem:[#allocation19_spill] sm:$0xff] }
  0xeb   : > { %2018 = vmatmul.mubr.f32.gmra.mxu1 %v6422_v2  ;;  %1647 = vmatprep.mubr.f32.mxu0 %v6423_v13  ;;  %v6454_v2 = vld [vmem:[#allocation11_spill] sm:$0xff] }
  0xec   : > { %2025 = vmatprep.mubr.f32.mxu1 %v6424_v20  ;;  %2319 = vmatpush1.msra.mxu0 %v6425_v10  ;;  %v6455_v20 = vld [vmem:[#allocation93_spill] sm:$0xff]  ;;  %v6456_v10 = vand.u32 4294901760, %v6441_v4 }
  0xed   : > { %2652 = vmatpush1.msra.mxu1 %v6426_v52  ;;  %2320 = vmatprep.subr.mxu0 %v6194_v7  ;;  %v6457_v52 = vld [vmem:[#allocation95_spill] sm:$0xff] }
  0xee   : > { %1650 = vmatmul.mubr.f32.gmra.mxu0 %v6427_v0  ;;  %2653 = vmatprep.subr.mxu1 %v6194_v7 }
  0xef   : > { %2029 = vmatmul.mubr.f32.gmra.mxu1 %v6428_v15  ;;  %1656 = vmatprep.mubr.f32.mxu0 %v6429_v57  ;;  %v6458_v15 = vand.u32 4294901760, %v6443_v17  ;;  %v6459_v57 = vld [vmem:[#allocation17_spill] sm:$0xff] }
  0xf0   : > { %2036 = vmatprep.mubr.f32.mxu1 %v6430_v38  ;;  %2324 = vmatpush1.msra.mxu0 %v6432_v21  ;;  %v6460_v38 = vand.u32 4294901760, %v6459_v57  ;;  %v6461_v21 = vld [vmem:[#allocation12_spill] sm:$0xff]  ;;  %v6478_v57 = vld [vmem:[#allocation107_spill] sm:$0xff] }
  0xf1   : > { %2655 = vmatpush1.msra.mxu1 %v6433_v58  ;;  %2325 = vmatprep.subr.mxu0 %v6194_v7 }
  0xf2   : > { %1659 = vmatmul.mubr.f32.gmra.mxu0 %v6434_v16  ;;  %2656 = vmatprep.subr.mxu1 %v6194_v7  ;;  %v6462_v16 = vld [vmem:[#allocation97_spill] sm:$0xff] }
  0xf3   : > { %2040 = vmatmul.mubr.f32.gmra.mxu1 %v6435_v54  ;;  %1665 = vmatprep.mubr.f32.mxu0 %v6436_v14  ;;  %v6463_v54 = vand.u32 4294901760, %v6448_v45  ;;  %v6464_v14 = vld [vmem:[#allocation100_spill] sm:$0xff] }
  0xf4   : > { %2047 = vmatprep.mubr.f32.mxu1 %v6437_v62  ;;  %2329 = vmatpush1.msra.mxu0 %v6439_v30  ;;  %v6465_v30 = vand.u32 4294901760, %v6450_v6 }
  0xf5   : > { %2658 = vmatpush1.msra.mxu1 %v6440_v59  ;;  %2330 = vmatprep.subr.mxu0 %v6194_v7  ;;  %v6466_v59 = vld [vmem:[#allocation18_spill] sm:$0xff] }
  0xf6   : > { %1668 = vmatmul.mubr.f32.gmra.mxu0 %v6441_v4  ;;  %2659 = vmatprep.subr.mxu1 %v6194_v7  ;;  %v6467_v4 = vand.u32 4294901760, %v6466_v59  ;;  %v6483_v59 = vld [vmem:[#allocation110_spill] sm:$0xff] }
  0xf7   : > { %2051 = vmatmul.mubr.f32.gmra.mxu1 %v6442_v5  ;;  %1674 = vmatprep.mubr.f32.mxu0 %v6443_v17  ;;  %v6468_v5 = vld [vmem:[#allocation13_spill] sm:$0xff] }
  0xf8   : > { %2058 = vmatprep.mubr.f32.mxu1 %v6444_v35  ;;  %2334 = vmatpush1.msra.mxu0 %v6446_v33  ;;  %v6469_v35 = vld [vmem:[#allocation101_spill] sm:$0xff]  ;;  %v6470_v33 = vand.u32 4294901760, %v6455_v20 }
  0xf9   : > { %2661 = vmatpush1.msra.mxu1 %v6447_v25  ;;  %2335 = vmatprep.subr.mxu0 %v6194_v7  ;;  %v6471_v25 = vld [vmem:[#allocation103_spill] sm:$0xff] }
  0xfa   : > { %1677 = vmatmul.mubr.f32.gmra.mxu0 %v6448_v45  ;;  %2662 = vmatprep.subr.mxu1 %v6194_v7 }
  0xfb   : > { %2062 = vmatmul.mubr.f32.gmra.mxu1 %v6449_v32  ;;  %1683 = vmatprep.mubr.f32.mxu0 %v6450_v6 }
  0xfc   : > { %2069 = vmatprep.mubr.f32.mxu1 %v6451_v34  ;;  %2339 = vmatpush1.msra.mxu0 %v6453_v28  ;;  %v6472_v34 = vand.u32 4294901760, %v6457_v52  ;;  %v6474_v28 = vand.u32 4294901760, %v6473_v49  ;;  %v6488_v49 = vld [vmem:[#allocation24_spill] sm:$0xff] }
  0xfd   : > { %2664 = vmatpush1.msra.mxu1 %v6454_v2  ;;  %2340 = vmatprep.subr.mxu0 %v6194_v7 }
  0xfe   : > { %v561_v13 = vpop.f32.mrf.mxu0  ;;  %1686 = vmatmul.mubr.f32.gmra.mxu0 %v6455_v20  ;;  %2665 = vmatprep.subr.mxu1 %v6194_v7 }
  0xff   : > { %2073 = vmatmul.mubr.f32.gmra.mxu1 %v6456_v10  ;;  %1692 = vmatprep.mubr.f32.mxu0 %v6457_v52  ;;  %v562_v62 = vadd.f32 %v5108_v56, %v561_v13  ;;  %v6475_v13 = vld [vmem:[#allocation14_spill] sm:$0xff]  ;;  %v6476_v10 = vld [vmem:[#allocation105_spill] sm:$0xff] }
 0x100   : > { %v563_v0 = vpop.f32.mrf.mxu0  ;;  %2080 = vmatprep.mubr.f32.mxu1 %v6458_v15  ;;  %2344 = vmatpush1.msra.mxu0 %v6460_v38  ;;  %v6477_v15 = vand.u32 4294901760, %v6462_v16 }
 0x101   : > { %2667 = vmatpush1.msra.mxu1 %v6461_v21  ;;  %2365 = vmatprep.subr.mxu0 %v6194_v7 }
 0x102   : > { %v576_v58 = vpop.f32.mrf.mxu0  ;;  %1695 = vmatmul.mubr.f32.gmra.mxu0 %v6462_v16  ;;  %2688 = vmatprep.subr.mxu1 %v6194_v7 }
 0x103   : > { %2084 = vmatmul.mubr.f32.gmra.mxu1 %v6463_v54  ;;  %1701 = vmatprep.mubr.f32.mxu0 %v6464_v14  ;;  %v577_v45 = vadd.f32 %v5108_v56, %v576_v58  ;;  %v6479_v58 = vand.u32 4294901760, %v6464_v14  ;;  %v6480_v54 = vld [vmem:[#allocation26_spill] sm:$0xff] }
 0x104   : > { %v578_v12 = vpop.f32.mrf.mxu0  ;;  %2091 = vmatprep.mubr.f32.mxu1 %v6465_v30  ;;  %2369 = vmatpush2.msra.mxu0 %v6467_v4  ;;  %v6482_v30 = vld [vmem:[#allocation20_spill] sm:$0xff] }
 0x105   : > { %2690 = vmatpush2.msra.mxu1 %v6468_v5  ;;  %2370 = vmatprep.subr.mxu0 %v6194_v7  ;;  %v6484_v5 = vand.u32 4294901760, %v6469_v35 }
 0x106   : > { %v591_v17 = vpop.f32.mrf.mxu0  ;;  %1704 = vmatmul.mubr.f32.gmra.mxu0 %v6469_v35  ;;  %2691 = vmatprep.subr.mxu1 %v6194_v7 }
 0x107   : > { %v1208_v18 = vpop.f32.mrf.mxu1  ;;  %2095 = vmatmul.mubr.f32.gmra.mxu1 %v6470_v33  ;;  %1710 = vmatprep.mubr.f32.mxu0 %v6471_v25  ;;  %v592_v52 = vadd.f32 %v5108_v56, %v591_v17  ;;  %v6485_v17 = vld [vmem:[#allocation112_spill] sm:$0xff] }
 0x108   : > { %v5130_v32 = vadd.f32 %v1208_v18, %v562_v62  ;;  %v593_v6 = vpop.f32.mrf.mxu0  ;;  %2102 = vmatprep.mubr.f32.mxu1 %v6472_v34  ;;  %2374 = vmatpush2.msra.mxu0 %v6474_v28  ;;  %v6481_v62 = vand.u32 4294901760, %v6480_v54  ;;  %v6489_v28 = vld [vmem:[#allocation113_spill] sm:$0xff]  ;;  %v6495_v54 = vld [vmem:[#allocation116_spill] sm:$0xff] }
 0x109   : > { %v1210_v2 = vpop.f32.mrf.mxu1  ;;  %2693 = vmatpush2.msra.mxu1 %v6475_v13  ;;  %2375 = vmatprep.subr.mxu0 %v6194_v7  ;;  %v6487_v6 = vand.u32 4294901760, %v6356_v55  ;;  %v6490_v13 = vand.u32 4294901760, %v6476_v10 }
 0x10a   : > { %v606_v20 = vpop.f32.mrf.mxu0  ;;  %1713 = vmatmul.mubr.f32.gmra.mxu0 %v6476_v10  ;;  %2694 = vmatprep.subr.mxu1 %v6194_v7 }
 0x10b   : > { %v1215_v0 = vpop.f32.mrf.mxu1  ;;  %2106 = vmatmul.mubr.f32.gmra.mxu1 %v6477_v15  ;;  %1719 = vmatprep.mubr.f32.mxu0 %v6478_v57  ;;  %v607_v14 = vadd.f32 %v5108_v56, %v606_v20  ;;  %v6491_v20 = vld [vmem:[#allocation115_spill] sm:$0xff]  ;;  %v6492_v15 = vand.u32 4294901760, %v6478_v57 }
 0x10c   : > { %v5144_v38 = vadd.f32 %v1215_v0, %v577_v45  ;;  %v608_v21 = vpop.f32.mrf.mxu0  ;;  %2113 = vmatprep.mubr.f32.mxu1 %v6479_v58  ;;  %2379 = vmatpush2.msra.mxu0 %v6481_v62  ;;  %v6486_v45 = vand.u32 4294901760, %v6471_v25  ;;  %v6494_v58 = vld [vmem:[#allocation32_spill] sm:$0xff] }
 0x10d   : > { %v1217_v12 = vpop.f32.mrf.mxu1  ;;  %2696 = vmatpush2.msra.mxu1 %v6482_v30  ;;  %2380 = vmatprep.subr.mxu0 %v6194_v7  ;;  %v6497_v30 = vld [vmem:[#allocation118_spill] sm:$0xff] }
 0x10e   : > { %v621_v16 = vpop.f32.mrf.mxu0  ;;  %1722 = vmatmul.mubr.f32.gmra.mxu0 %v6483_v59  ;;  %2697 = vmatprep.subr.mxu1 %v6194_v7  ;;  %v6496_v12 = vand.u32 4294901760, %v6483_v59 }
 0x10f   : > { %v1222_v4 = vpop.f32.mrf.mxu1  ;;  %2117 = vmatmul.mubr.f32.gmra.mxu1 %v6484_v5  ;;  %1728 = vmatprep.mubr.f32.mxu0 %v6485_v17  ;;  %v622_v25 = vadd.f32 %v5108_v56, %v621_v16  ;;  %v6499_v5 = vld [vmem:[#allocation38_spill] sm:$0xff] }
 0x110   : > { %v5158_v18 = vadd.f32 %v1222_v4, %v592_v52  ;;  %v623_v33 = vpop.f32.mrf.mxu0  ;;  %2124 = vmatprep.mubr.f32.mxu1 %v6486_v45  ;;  %2384 = vmatpush2.msra.mxu0 %v6487_v6  ;;  %v6493_v52 = vand.u32 4294901760, %v6361_v47  ;;  %v6498_v4 = vand.u32 4294901760, %v6485_v17  ;;  %v6501_v45 = vld [vmem:[#allocation33_spill] sm:$0xff]  ;;  %v6502_v6 = vld [vmem:[#allocation119_spill] sm:$0xff] }
 0x111   : > { %v1224_v34 = vpop.f32.mrf.mxu1  ;;  %2699 = vmatpush2.msra.mxu1 %v6488_v49  ;;  %2385 = vmatprep.subr.mxu0 %v6194_v7  ;;  %v6504_v49 = vld [vmem:[#allocation120_spill] sm:$0xff] }
 0x112   : > { %v636_v35 = vpop.f32.mrf.mxu0  ;;  %1731 = vmatmul.mubr.f32.gmra.mxu0 %v6489_v28  ;;  %2700 = vmatprep.subr.mxu1 %v6194_v7  ;;  %v6503_v34 = vand.u32 4294901760, %v6489_v28  ;;  %v6508_v28 = vld [vmem:[#allocation122_spill] sm:$0xff] }
 0x113   : > { %v1229_v2 = vpop.f32.mrf.mxu1  ;;  %2128 = vmatmul.mubr.f32.gmra.mxu1 %v6490_v13  ;;  %1737 = vmatprep.mubr.f32.mxu0 %v6491_v20  ;;  %v637_v57 = vadd.f32 %v5108_v56, %v636_v35  ;;  %v6505_v13 = vand.u32 4294901760, %v6491_v20 }
 0x114   : > { %v5172_v55 = vadd.f32 %v1229_v2, %v607_v14  ;;  %v638_v0 = vpop.f32.mrf.mxu0  ;;  %2135 = vmatprep.mubr.f32.mxu1 %v6492_v15  ;;  %2389 = vmatpush2.msra.mxu0 %v6493_v52  ;;  %v6500_v14 = vand.u32 4294901760, %v6499_v5  ;;  %v6506_v15 = vld [vmem:[#allocation121_spill] sm:$0xff]  ;;  %v6511_v5 = vand.u32 4294901760, %v6502_v6 }
 0x115   : > { %v1231_v21 = vpop.f32.mrf.mxu1  ;;  %2390 = vmatprep.subr.mxu0 %v6194_v7  ;;  %2702 = vmatpush2.msra.mxu1 %v6494_v58 }
 0x116   : > { %v651_v10 = vpop.f32.mrf.mxu0  ;;  %1740 = vmatmul.mubr.f32.gmra.mxu0 %v6495_v54  ;;  %2703 = vmatprep.subr.mxu1 %v6194_v7  ;;  %v6507_v21 = vand.u32 4294901760, %v6495_v54  ;;  %v6512_v54 = vld [vmem:[#allocation124_spill] sm:$0xff] }
 0x117   : > { %v1236_v62 = vpop.f32.mrf.mxu1  ;;  %2139 = vmatmul.mubr.f32.gmra.mxu1 %v6496_v12  ;;  %1746 = vmatprep.mubr.f32.mxu0 %v6497_v30  ;;  %v652_v35 = vadd.f32 %v5108_v56, %v651_v10  ;;  %v6509_v12 = vand.u32 4294901760, %v6497_v30 }
 0x118   : > { %v5186_v47 = vadd.f32 %v1236_v62, %v622_v25  ;;  %v653_v16 = vpop.f32.mrf.mxu0  ;;  %2146 = vmatprep.mubr.f32.mxu1 %v6498_v4  ;;  %2394 = vmatpush2.msra.mxu0 %v6500_v14 }
 0x119   : > { %v1238_v33 = vpop.f32.mrf.mxu1  ;;  %2705 = vmatpush2.msra.mxu1 %v6501_v45  ;;  %v6510_v16 = vld [vmem:[#allocation123_spill] sm:$0xff] }
 0x11a   : > { %v666_v7 = vpop.f32.mrf.mxu0  ;;  %1749 = vmatmul.mubr.f32.gmra.mxu0 %v6502_v6  ;;  %v6516_v6 = vld [vmem:[#allocation125_spill] sm:$0xff] }
 0x11b   : > { %v1243_v59 = vpop.f32.mrf.mxu1  ;;  %2150 = vmatmul.mubr.f32.gmra.mxu1 %v6503_v34  ;;  %1755 = vmatprep.mubr.f32.mxu0 %v6504_v49  ;;  %v667_v58 = vadd.f32 %v5108_v56, %v666_v7  ;;  %v6513_v7 = vand.u32 4294901760, %v6504_v49  ;;  %v6514_v34 = vld [vmem:[#allocation31_spill] sm:$0xff] }
 0x11c   : > { %v5198_v2 = vadd.f32 %v1243_v59, %v637_v57  ;;  %v668_v17 = vpop.f32.mrf.mxu0  ;;  %2157 = vmatprep.mubr.f32.mxu1 %v6505_v13 }
 0x11d   : > { %v1245_v25 = vpop.f32.mrf.mxu1  ;;  %v6515_v17 = vand.u32 4294901760, %v6506_v15 }
 0x11e   : > { %v681_v0 = vpop.f32.mrf.mxu0  ;;  %1758 = vmatmul.mubr.f32.gmra.mxu0 %v6506_v15 }
 0x11f   : > { %v1250_v52 = vpop.f32.mrf.mxu1  ;;  %2161 = vmatmul.mubr.f32.gmra.mxu1 %v6507_v21  ;;  %1764 = vmatprep.mubr.f32.mxu0 %v6508_v28  ;;  %v682_v14 = vadd.f32 %v5108_v56, %v681_v0 }
 0x120   : > { %v5207_v62 = vadd.f32 %v1250_v52, %v652_v35  ;;  %v683_v10 = vpop.f32.mrf.mxu0  ;;  %2168 = vmatprep.mubr.f32.mxu1 %v6509_v12  ;;  %v6517_v52 = vand.u32 4294901760, %v6508_v28 }
 0x121   : > { %v1252_v20 = vpop.f32.mrf.mxu1  ;;  %v6518_v10 = vand.u32 4294901760, %v6510_v16 }
 0x122   : > { %v696_v57 = vpop.f32.mrf.mxu0  ;;  %1767 = vmatmul.mubr.f32.gmra.mxu0 %v6510_v16 }
 0x123   : > { %v1257_v4 = vpop.f32.mrf.mxu1  ;;  %2172 = vmatmul.mubr.f32.gmra.mxu1 %v6511_v5  ;;  %1773 = vmatprep.mubr.f32.mxu0 %v6512_v54  ;;  %v697_v13 = vadd.f32 %v5108_v56, %v696_v57  ;;  %v6519_v57 = vand.u32 4294901760, %v6512_v54 }
 0x124   : > { %v5216_v33 = vadd.f32 %v1257_v4, %v667_v58  ;;  %v698_v45 = vpop.f32.mrf.mxu0  ;;  %2179 = vmatprep.mubr.f32.mxu1 %v6513_v7 }
 0x125   : > { %v1259_v30 = vpop.f32.mrf.mxu1 }
 0x126   : > { %v711_v59 = vpop.f32.mrf.mxu0  ;;  %1776 = vmatmul.mubr.f32.gmra.mxu0 %v6514_v34  ;;  %v6521_v30 = vand.u32 4294901760, %v6516_v6 }
 0x127   : > { %v1264_v35 = vpop.f32.mrf.mxu1  ;;  %2183 = vmatmul.mubr.f32.gmra.mxu1 %v6515_v17  ;;  %1782 = vmatprep.mubr.f32.mxu0 %v6516_v6  ;;  %v712_v15 = vadd.f32 %v5108_v56, %v711_v59  ;;  %v6522_v17 = vand.u32 4294901760, %v4803_v39 }
 0x128   : > { %v5225_v25 = vadd.f32 %v1264_v35, %v682_v14  ;;  %v713_v0 = vpop.f32.mrf.mxu0  ;;  %2190 = vmatprep.mubr.f32.mxu1 %v6517_v52  ;;  %v6520_v14 = vand.u32 4294901760, %v6514_v34  ;;  %v6523_v52 = vand.u32 4294901760, %v4822_v36 }
 0x129   : > { %v1266_v49 = vpop.f32.mrf.mxu1 }
 0x12a   : > { %v726_v21 = vpop.f32.mrf.mxu0  ;;  %1785 = vmatmul.mubr.f32.gmra.mxu0 %v4803_v39 }
 0x12b   : > { %v1271_v58 = vpop.f32.mrf.mxu1  ;;  %2194 = vmatmul.mubr.f32.gmra.mxu1 %v6518_v10  ;;  %1791 = vmatprep.mubr.f32.mxu0 %v4822_v36  ;;  %v727_v16 = vadd.f32 %v5108_v56, %v726_v21 }
 0x12c   : > { %v5234_v12 = vadd.f32 %v1271_v58, %v697_v13  ;;  %v728_v20 = vpop.f32.mrf.mxu0  ;;  %2201 = vmatprep.mubr.f32.mxu1 %v6519_v57  ;;  %v6524_v58 = vand.u32 4294901760, %v4835_v19 }
 0x12d   : > { %v1273_v28 = vpop.f32.mrf.mxu1  ;;  %v6525_v20 = vand.u32 4294901760, %v4844_v24 }
 0x12e   : > { %v741_v4 = vpop.f32.mrf.mxu0  ;;  %1794 = vmatmul.mubr.f32.gmra.mxu0 %v4835_v19  ;;  %v6527_v19 = vld [vmem:[#allocation22_spill] sm:$0xff] }
 0x12f   : > { %v1278_v5 = vpop.f32.mrf.mxu1  ;;  %2205 = vmatmul.mubr.f32.gmra.mxu1 %v6520_v14  ;;  %1800 = vmatprep.mubr.f32.mxu0 %v4844_v24  ;;  %v742_v34 = vadd.f32 %v5108_v56, %v741_v4  ;;  %v6526_v4 = vand.u32 4294901760, %v4863_v46 }
 0x130   : > { %v5243_v45 = vadd.f32 %v1278_v5, %v712_v15  ;;  %v743_v7 = vpop.f32.mrf.mxu0  ;;  %2212 = vmatprep.mubr.f32.mxu1 %v6521_v30 }
 0x131   : > { %v1280_v54 = vpop.f32.mrf.mxu1  ;;  %v6528_v7 = vand.u32 4294901760, %v4872_v44 }
 0x132   : > { %v756_v59 = vpop.f32.mrf.mxu0  ;;  %1803 = vmatmul.mubr.f32.gmra.mxu0 %v4863_v46  ;;  %v6529_v54 = vld [vmem:[#allocation25_spill] sm:$0xff]  ;;  %v6530_v46 = vld [vmem:[#allocation27_spill] sm:$0xff] }
 0x133   : > { %v1285_v35 = vpop.f32.mrf.mxu1  ;;  %2216 = vmatmul.mubr.f32.gmra.mxu1 %v6522_v17  ;;  %1809 = vmatprep.mubr.f32.mxu0 %v4872_v44  ;;  %v757_v39 = vadd.f32 %v5108_v56, %v756_v59 }
 0x134   : > { %v5252_v13 = vadd.f32 %v1285_v35, %v727_v16  ;;  %v758_v0 = vpop.f32.mrf.mxu0  ;;  %2223 = vmatprep.mubr.f32.mxu1 %v6523_v52  ;;  %v6531_v52 = vld [vmem:[#allocation29_spill] sm:$0xff] }
 0x135   : > { %v1287_v6 = vpop.f32.mrf.mxu1 }
 0x136   : > { %v771_v49 = vpop.f32.mrf.mxu0  ;;  %1812 = vmatmul.mubr.f32.gmra.mxu0 %v4884_v51  ;;  %v6532_v51 = vld [vmem:[#allocation34_spill] sm:$0xff] }
 0x137   : > { %v1292_v21 = vpop.f32.mrf.mxu1  ;;  %2227 = vmatmul.mubr.f32.gmra.mxu1 %v6524_v58  ;;  %1818 = vmatprep.mubr.f32.mxu0 %v4894_v48  ;;  %v772_v5 = vadd.f32 %v5108_v56, %v771_v49 }
 0x138   : > { %v5261_v10 = vadd.f32 %v1292_v21, %v742_v34  ;;  %v773_v15 = vpop.f32.mrf.mxu0  ;;  %2234 = vmatprep.mubr.f32.mxu1 %v6525_v20 }
 0x139   : > { %v1294_v36 = vpop.f32.mrf.mxu1  ;;  %v6534_v15 = vld [vmem:[#allocation40_spill] sm:$0xff] }
 0x13a   : > { %v786_v57 = vpop.f32.mrf.mxu0  ;;  %1821 = vmatmul.mubr.f32.gmra.mxu0 %v4902_v63 }
 0x13b   : > { %v1299_v28 = vpop.f32.mrf.mxu1  ;;  %2238 = vmatmul.mubr.f32.gmra.mxu1 %v6526_v4  ;;  %2396 = vmatprep.mubr.f32.mxu0 %v6527_v19  ;;  %v787_v35 = vadd.f32 %v5108_v56, %v786_v57 }
 0x13c   : > { %v5270_v14 = vadd.f32 %v1299_v28, %v757_v39  ;;  %v788_v16 = vpop.f32.mrf.mxu0  ;;  %2245 = vmatprep.mubr.f32.mxu1 %v6528_v7  ;;  %v6535_v28 = vld [vmem:[#allocation41_spill] sm:$0xff] }
 0x13d   : > { %v1301_v24 = vpop.f32.mrf.mxu1 }
 0x13e   : > { %v801_v30 = vpop.f32.mrf.mxu0  ;;  %2398 = vmatmul.mubr.f32.vlgmr.msra.gmra.mxu0 %v6529_v54 }
 0x13f   : > { %v1306_v59 = vpop.f32.mrf.mxu1  ;;  %2249 = vmatmul.mubr.f32.gmra.mxu1 %v1007_v40  ;;  %2403 = vmatprep.mubr.f32.mxu0 %v6530_v46  ;;  %v802_v40 = vadd.f32 %v5108_v56, %v801_v30 }
 0x140   : > { %v5279_v17 = vadd.f32 %v1306_v59, %v772_v5  ;;  %v803_v34 = vpop.f32.mrf.mxu0  ;;  %2256 = vmatprep.mubr.f32.mxu1 %v1016_v29  ;;  %v6533_v29 = vld [vmem:[#allocation39_spill] sm:$0xff] }
 0x141   : > { %v1308_v44 = vpop.f32.mrf.mxu1 }
 0x142   : > { %v816_v0 = vpop.f32.mrf.mxu0  ;;  %2405 = vmatmul.mubr.f32.gmra.mxu0 %v6531_v52 }
 0x143   : > { %v1313_v6 = vpop.f32.mrf.mxu1  ;;  %2260 = vmatmul.mubr.f32.gmra.mxu1 %v1022_v8  ;;  %2410 = vmatprep.mubr.f32.mxu0 %v6532_v51  ;;  %v817_v63 = vadd.f32 %v5108_v56, %v816_v0 }
 0x144   : > { %v5288_v49 = vadd.f32 %v1313_v6, %v787_v35  ;;  %v818_v21 = vpop.f32.mrf.mxu0  ;;  %2707 = vmatprep.mubr.f32.mxu1 %v6527_v19  ;;  %v6536_v19 = vld [vmem:[#allocation42_spill] sm:$0xff]  ;;  %v6539_v6 = vld [vmem:[#allocation48_spill] sm:$0xff] }
 0x145   : > { %v1315_v58 = vpop.f32.mrf.mxu1 }
 0x146   : > { %v831_v48 = vpop.f32.mrf.mxu0  ;;  %2412 = vmatmul.mubr.f32.gmra.mxu0 %v6533_v29 }
 0x147   : > { %v1320_v39 = vpop.f32.mrf.mxu1  ;;  %2709 = vmatmul.mubr.f32.vlgmr.msra.gmra.mxu1 %v6529_v54  ;;  %2417 = vmatprep.mubr.f32.mxu0 %v6534_v15  ;;  %v832_v5 = vadd.f32 %v5108_v56, %v831_v48  ;;  %v6537_v54 = vld [vmem:[#allocation44_spill] sm:$0xff] }
 0x148   : > { %v5295_v8 = vadd.f32 %v1320_v39, %v802_v40  ;;  %v833_v20 = vpop.f32.mrf.mxu0  ;;  %2714 = vmatprep.mubr.f32.mxu1 %v6530_v46  ;;  %v6538_v46 = vld [vmem:[#allocation46_spill] sm:$0xff] }
 0x149   : > { %v1322_v36 = vpop.f32.mrf.mxu1  ;;  %v6540_v40 = vld [vmem:[#allocation50_spill] sm:$0xff]  ;;  %v6542_v20 = vld [vmem:[#allocation52_spill] sm:$0xff] }
 0x14a   : > { %v846_v57 = vpop.f32.mrf.mxu0  ;;  %2419 = vmatmul.mubr.f32.gmra.mxu0 %v6535_v28 }
 0x14b   : > { %v1327_v4 = vpop.f32.mrf.mxu1  ;;  %2716 = vmatmul.mubr.f32.gmra.mxu1 %v6531_v52  ;;  %2424 = vmatprep.mubr.f32.mxu0 %v6536_v19  ;;  %v847_v35 = vadd.f32 %v5108_v56, %v846_v57 }
 0x14c   : > { %v5302_v16 = vadd.f32 %v1327_v4, %v817_v63  ;;  %v848_v7 = vpop.f32.mrf.mxu0  ;;  %2721 = vmatprep.mubr.f32.mxu1 %v6532_v51  ;;  %v6541_v63 = vld [vmem:[#allocation51_spill] sm:$0xff] }
 0x14d   : > { %v1329_v24 = vpop.f32.mrf.mxu1  ;;  %v6543_v7 = vld [vmem:[#allocation55_spill] sm:$0xff] }
 0x14e   : > { %v861_v30 = vpop.f32.mrf.mxu0  ;;  %2426 = vmatmul.mubr.f32.gmra.mxu0 %v6537_v54  ;;  %v6544_v24 = vld [vmem:[#allocation57_spill] sm:$0xff] }
 0x14f   : > { %v1334_v59 = vpop.f32.mrf.mxu1  ;;  %2723 = vmatmul.mubr.f32.gmra.mxu1 %v6533_v29  ;;  %2431 = vmatprep.mubr.f32.mxu0 %v6538_v46  ;;  %v862_v21 = vadd.f32 %v5108_v56, %v861_v30 }
 0x150   : > { %v5309_v34 = vadd.f32 %v1334_v59, %v832_v5  ;;  %v863_v44 = vpop.f32.mrf.mxu0  ;;  %2728 = vmatprep.mubr.f32.mxu1 %v6534_v15 }
 0x151   : > { %v1336_v0 = vpop.f32.mrf.mxu1 }
 0x152   : > { %v876_v52 = vpop.f32.mrf.mxu0  ;;  %2433 = vmatmul.mubr.f32.gmra.mxu0 %v6539_v6  ;;  %v6545_v0 = vld [vmem:[#allocation59_spill] sm:$0xff] }
 0x153   : > { %v1341_v51 = vpop.f32.mrf.mxu1  ;;  %2730 = vmatmul.mubr.f32.gmra.mxu1 %v6535_v28  ;;  %2438 = vmatprep.mubr.f32.mxu0 %v6540_v40  ;;  %v877_v36 = vadd.f32 %v5108_v56, %v876_v52  ;;  %v6546_v52 = vld [vmem:[#allocation60_spill] sm:$0xff] }
 0x154   : > { %v5316_v58 = vadd.f32 %v1341_v51, %v847_v35  ;;  %v878_v48 = vpop.f32.mrf.mxu0  ;;  %2735 = vmatprep.mubr.f32.mxu1 %v6536_v19 }
 0x155   : > { %v1343_v29 = vpop.f32.mrf.mxu1 }
 0x156   : > { %v891_v39 = vpop.f32.mrf.mxu0  ;;  %2440 = vmatmul.mubr.f32.gmra.mxu0 %v6541_v63 }
 0x157   : > { %v1348_v15 = vpop.f32.mrf.mxu1  ;;  %2737 = vmatmul.mubr.f32.gmra.mxu1 %v6537_v54  ;;  %2445 = vmatprep.mubr.f32.mxu0 %v6542_v20  ;;  %v892_v30 = vadd.f32 %v5108_v56, %v891_v39  ;;  %v6547_v39 = vld [vmem:[#allocation63_spill] sm:$0xff] }
 0x158   : > { %v5323_v57 = vadd.f32 %v1348_v15, %v862_v21  ;;  %v893_v28 = vpop.f32.mrf.mxu0  ;;  %2742 = vmatprep.mubr.f32.mxu1 %v6538_v46  ;;  %v6548_v15 = vld [vmem:[#allocation65_spill] sm:$0xff] }
 0x159   : > { %v1350_v4 = vpop.f32.mrf.mxu1 }
 0x15a   : > { %v906_v5 = vpop.f32.mrf.mxu0  ;;  %2447 = vmatmul.mubr.f32.gmra.mxu0 %v6543_v7 }
 0x15b   : > { %v1355_v19 = vpop.f32.mrf.mxu1  ;;  %2744 = vmatmul.mubr.f32.gmra.mxu1 %v6539_v6  ;;  %2452 = vmatprep.mubr.f32.mxu0 %v6544_v24  ;;  %v907_v6 = vadd.f32 %v5108_v56, %v906_v5 }
 0x15c   : > { %v5330_v54 = vadd.f32 %v1355_v19, %v877_v36  ;;  %v908_v59 = vpop.f32.mrf.mxu0  ;;  %2749 = vmatprep.mubr.f32.mxu1 %v6540_v40  ;;  %v6549_v19 = vld [vmem:[#allocation66_spill] sm:$0xff] }
 0x15d   : > { %v1357_v35 = vpop.f32.mrf.mxu1 }
 0x15e   : > { %v921_v44 = vpop.f32.mrf.mxu0  ;;  %2454 = vmatmul.mubr.f32.gmra.mxu0 %v6545_v0 }
 0x15f   : > { %v1362_v46 = vpop.f32.mrf.mxu1  ;;  %2751 = vmatmul.mubr.f32.gmra.mxu1 %v6541_v63  ;;  %2459 = vmatprep.mubr.f32.mxu0 %v6546_v52  ;;  %v922_v63 = vadd.f32 %v5108_v56, %v921_v44 }
 0x160   : > { %v5337_v51 = vadd.f32 %v1362_v46, %v892_v30  ;;  %v923_v21 = vpop.f32.mrf.mxu0  ;;  %2756 = vmatprep.mubr.f32.mxu1 %v6542_v20  ;;  %v6550_v30 = vld [vmem:[#allocation68_spill] sm:$0xff] }
 0x161   : > { %v1364_v48 = vpop.f32.mrf.mxu1  ;;  %v6552_v21 = vld [vmem:[#allocation71_spill] sm:$0xff] }
 0x162   : > { %v936_v29 = vpop.f32.mrf.mxu0  ;;  %2461 = vmatmul.mubr.f32.gmra.mxu0 %v6547_v39 }
 0x163   : > { %v1369_v40 = vpop.f32.mrf.mxu1  ;;  %2758 = vmatmul.mubr.f32.gmra.mxu1 %v6543_v7  ;;  %2466 = vmatprep.mubr.f32.mxu0 %v6548_v15  ;;  %v937_v7 = vadd.f32 %v5108_v56, %v936_v29 }
 0x164   : > { %v5344_v36 = vadd.f32 %v1369_v40, %v907_v6  ;;  %v938_v28 = vpop.f32.mrf.mxu0  ;;  %2763 = vmatprep.mubr.f32.mxu1 %v6544_v24  ;;  %v6551_v6 = vld [vmem:[#allocation69_spill] sm:$0xff] }
 0x165   : > { %v1371_v4 = vpop.f32.mrf.mxu1  ;;  %v6553_v28 = vld [vmem:[#allocation74_spill] sm:$0xff] }
 0x166   : > { %v951_v5 = vpop.f32.mrf.mxu0  ;;  %2468 = vmatmul.mubr.f32.gmra.mxu0 %v6549_v19  ;;  %v6554_v4 = vld [vmem:[#allocation76_spill] sm:$0xff] }
 0x167   : > { %v1376_v20 = vpop.f32.mrf.mxu1  ;;  %2765 = vmatmul.mubr.f32.gmra.mxu1 %v6545_v0  ;;  %2473 = vmatprep.mubr.f32.mxu0 %v6550_v30  ;;  %v952_v0 = vadd.f32 %v5108_v56, %v951_v5 }
 0x168   : > { %v5351_v59 = vadd.f32 %v1376_v20, %v922_v63  ;;  %v953_v35 = vpop.f32.mrf.mxu0  ;;  %2770 = vmatprep.mubr.f32.mxu1 %v6546_v52 }
 0x169   : > { %v1378_v44 = vpop.f32.mrf.mxu1 }
 0x16a   : > { %v966_v46 = vpop.f32.mrf.mxu0  ;;  %2475 = vmatmul.mubr.f32.gmra.mxu0 %v6551_v6  ;;  %v6556_v44 = vld [vmem:[#allocation78_spill] sm:$0xff] }
 0x16b   : > { %v1383_v24 = vpop.f32.mrf.mxu1  ;;  %2772 = vmatmul.mubr.f32.gmra.mxu1 %v6547_v39  ;;  %2480 = vmatprep.mubr.f32.mxu0 %v6552_v21  ;;  %v967_v39 = vadd.f32 %v5108_v56, %v966_v46 }
 0x16c   : > { %v5358_v48 = vadd.f32 %v1383_v24, %v937_v7  ;;  %v968_v40 = vpop.f32.mrf.mxu0  ;;  %2777 = vmatprep.mubr.f32.mxu1 %v6548_v15  ;;  %v6557_v24 = vld [vmem:[#allocation79_spill] sm:$0xff] }
 0x16d   : > { %v1385_v29 = vpop.f32.mrf.mxu1 }
 0x16e   : > { %v981_v63 = vpop.f32.mrf.mxu0  ;;  %2482 = vmatmul.mubr.f32.gmra.mxu0 %v6553_v28 }
 0x16f   : > { %v1390_v52 = vpop.f32.mrf.mxu1  ;;  %2779 = vmatmul.mubr.f32.gmra.mxu1 %v6549_v19  ;;  %2487 = vmatprep.mubr.f32.mxu0 %v6554_v4  ;;  %v982_v19 = vadd.f32 %v5108_v56, %v981_v63 }
 0x170   : > { %v5365_v20 = vadd.f32 %v1390_v52, %v952_v0  ;;  %v983_v35 = vpop.f32.mrf.mxu0  ;;  %2784 = vmatprep.mubr.f32.mxu1 %v6550_v30  ;;  %v6559_v52 = vld [vmem:[#allocation82_spill] sm:$0xff] }
 0x171   : > { %v1392_v5 = vpop.f32.mrf.mxu1  ;;  %v6560_v35 = vld [vmem:[#allocation84_spill] sm:$0xff] }
 0x172   : > { %6555 = vst [vmem:[#allocation37_spill] sm:$0xff] %v5365_v20  ;;  %v996_v7 = vpop.f32.mrf.mxu0  ;;  %2489 = vmatmul.mubr.f32.gmra.mxu0 %v6556_v44 }
 0x173   : > { %v1397_v15 = vpop.f32.mrf.mxu1  ;;  %2786 = vmatmul.mubr.f32.gmra.mxu1 %v6551_v6  ;;  %2494 = vmatprep.mubr.f32.mxu0 %v6557_v24  ;;  %v997_v6 = vadd.f32 %v5108_v56, %v996_v7 }
 0x174   : > { %v5372_v40 = vadd.f32 %v1397_v15, %v967_v39  ;;  %v998_v29 = vpop.f32.mrf.mxu0  ;;  %2791 = vmatprep.mubr.f32.mxu1 %v6552_v21  ;;  %v6562_v15 = vld [vmem:[#allocation86_spill] sm:$0xff] }
 0x175   : > { %v1399_v46 = vpop.f32.mrf.mxu1  ;;  %v6563_v29 = vld [vmem:[#allocation88_spill] sm:$0xff] }
 0x176   : > { %6558 = vst [vmem:[#allocation23_spill] sm:$0xff] %v5372_v40  ;;  %v1011_v0 = vpop.f32.mrf.mxu0  ;;  %2496 = vmatmul.mubr.f32.gmra.mxu0 %v6559_v52 }
 0x177   : > { %v1404_v30 = vpop.f32.mrf.mxu1  ;;  %2793 = vmatmul.mubr.f32.gmra.mxu1 %v6553_v28  ;;  %2501 = vmatprep.mubr.f32.mxu0 %v6560_v35  ;;  %v1012_v28 = vadd.f32 %v5108_v56, %v1011_v0 }
 0x178   : > { %v5379_v5 = vadd.f32 %v1404_v30, %v982_v19  ;;  %v1013_v20 = vpop.f32.mrf.mxu0  ;;  %2798 = vmatprep.mubr.f32.mxu1 %v6554_v4  ;;  %v6564_v19 = vld [vmem:[#allocation89_spill] sm:$0xff] }
 0x179   : > { %v1406_v63 = vpop.f32.mrf.mxu1 }
 0x17a   : > { %6561 = vst [vmem:[#allocation28_spill] sm:$0xff] %v5379_v5  ;;  %v1026_v39 = vpop.f32.mrf.mxu0  ;;  %2503 = vmatmul.mubr.f32.gmra.mxu0 %v6562_v15  ;;  %v6565_v63 = vld [vmem:[#allocation91_spill] sm:$0xff] }
 0x17b   : > { %v1411_v21 = vpop.f32.mrf.mxu1  ;;  %2800 = vmatmul.mubr.f32.gmra.mxu1 %v6556_v44  ;;  %2508 = vmatprep.mubr.f32.mxu0 %v6563_v29  ;;  %v1027_v44 = vadd.f32 %v5108_v56, %v1026_v39 }
 0x17c   : > { %v5386_v46 = vadd.f32 %v1411_v21, %v997_v6  ;;  %v1028_v40 = vpop.f32.mrf.mxu0  ;;  %2805 = vmatprep.mubr.f32.mxu1 %v6557_v24  ;;  %v6566_v6 = vld [vmem:[#allocation94_spill] sm:$0xff] }
 0x17d   : > { %v1413_v7 = vpop.f32.mrf.mxu1 }
 0x17e   : > { %v1543_v20 = vpop.f32.mrf.mxu0  ;;  %2510 = vmatmul.mubr.f32.gmra.mxu0 %v6564_v19 }
 0x17f   : > { %v1418_v4 = vpop.f32.mrf.mxu1  ;;  %v1544_v30 = vadd.f32 %v1543_v20, %v5130_v32  ;;  %2807 = vmatmul.mubr.f32.gmra.mxu1 %v6559_v52  ;;  %2515 = vmatprep.mubr.f32.mxu0 %v6565_v63  ;;  %v6567_v32 = vld [vmem:[#allocation96_spill] sm:$0xff] }
 0x180   : > { %v5394_v5 = vadd.f32 %v1418_v4, %v1012_v28  ;;  %v1545_v0 = vpop.f32.mrf.mxu0  ;;  %2812 = vmatprep.mubr.f32.mxu1 %v6560_v35  ;;  %v6568_v28 = vld [vmem:[#allocation98_spill] sm:$0xff] }
 0x181   : > { %v1420_v40 = vpop.f32.mrf.mxu1  ;;  %v6569_v0 = vld [vmem:[#allocation99_spill] sm:$0xff] }
 0x182   : > { %v1552_v24 = vpop.f32.mrf.mxu0  ;;  %2517 = vmatmul.mubr.f32.gmra.mxu0 %v6566_v6 }
 0x183   : > { %v1425_v21 = vpop.f32.mrf.mxu1  ;;  %v1553_v7 = vadd.f32 %v1552_v24, %v5144_v38  ;;  %2814 = vmatmul.mubr.f32.gmra.mxu1 %v6562_v15  ;;  %2522 = vmatprep.mubr.f32.mxu0 %v6567_v32  ;;  %v6570_v24 = vld [vmem:[#allocation102_spill] sm:$0xff] }
 0x184   : > { %v5401_v52 = vadd.f32 %v1425_v21, %v1027_v44  ;;  %v1554_v20 = vpop.f32.mrf.mxu0  ;;  %2819 = vmatprep.mubr.f32.mxu1 %v6563_v29 }
 0x185   : > { %v1427_v56 = vpop.f32.mrf.mxu1 }
 0x186   : > { %v1561_v39 = vpop.f32.mrf.mxu0  ;;  %2524 = vmatmul.mubr.f32.gmra.mxu0 %v6568_v28 }
 0x187   : > { %v1562_v35 = vadd.f32 %v1561_v39, %v5158_v18  ;;  %v1920_v4 = vpop.f32.mrf.mxu1  ;;  %2821 = vmatmul.mubr.f32.gmra.mxu1 %v6564_v19  ;;  %2529 = vmatprep.mubr.f32.mxu0 %v6569_v0  ;;  %v6571_v18 = vld [vmem:[#allocation104_spill] sm:$0xff]  ;;  %v6572_v39 = vld [vmem:[#allocation106_spill] sm:$0xff] }
 0x188   : > { %v5408_v38 = vadd.f32 %v1920_v4, %v1544_v30  ;;  %v1563_v15 = vpop.f32.mrf.mxu0  ;;  %2826 = vmatprep.mubr.f32.mxu1 %v6565_v63 }
 0x189   : > { %v1922_v44 = vpop.f32.mrf.mxu1 }
 0x18a   : > { %v1570_v40 = vpop.f32.mrf.mxu0  ;;  %2531 = vmatmul.mubr.f32.gmra.mxu0 %v6570_v24 }
 0x18b   : > { %v1571_v29 = vadd.f32 %v1570_v40, %v5172_v55  ;;  %v1931_v21 = vpop.f32.mrf.mxu1  ;;  %2828 = vmatmul.mubr.f32.gmra.mxu1 %v6566_v6  ;;  %2536 = vmatprep.mubr.f32.mxu0 %v6571_v18  ;;  %v6573_v55 = vld [vmem:[#allocation108_spill] sm:$0xff]  ;;  %v6574_v40 = vld [vmem:[#allocation109_spill] sm:$0xff] }
 0x18c   : > { %v5415_v20 = vadd.f32 %v1931_v21, %v1553_v7  ;;  %v1572_v19 = vpop.f32.mrf.mxu0  ;;  %2833 = vmatprep.mubr.f32.mxu1 %v6567_v32 }
 0x18d   : > { %v1933_v30 = vpop.f32.mrf.mxu1 }
 0x18e   : > { %v1579_v56 = vpop.f32.mrf.mxu0  ;;  %2538 = vmatmul.mubr.f32.gmra.mxu0 %v6572_v39 }
 0x18f   : > { %v1580_v63 = vadd.f32 %v1579_v56, %v5186_v47  ;;  %v1942_v4 = vpop.f32.mrf.mxu1  ;;  %2835 = vmatmul.mubr.f32.gmra.mxu1 %v6568_v28  ;;  %2543 = vmatprep.mubr.f32.mxu0 %v6573_v55  ;;  %v6575_v47 = vld [vmem:[#allocation111_spill] sm:$0xff]  ;;  %v6576_v56 = vld [vmem:[#allocation114_spill] sm:$0xff] }
 0x190   : > { %v5422_v15 = vadd.f32 %v1942_v4, %v1562_v35  ;;  %v1581_v6 = vpop.f32.mrf.mxu0  ;;  %2840 = vmatprep.mubr.f32.mxu1 %v6569_v0 }
 0x191   : > { %v1944_v7 = vpop.f32.mrf.mxu1 }
 0x192   : > { %v1588_v44 = vpop.f32.mrf.mxu0  ;;  %2545 = vmatmul.mubr.f32.gmra.mxu0 %v6574_v40 }
 0x193   : > { %v1589_v32 = vadd.f32 %v1588_v44, %v5198_v2  ;;  %v1953_v21 = vpop.f32.mrf.mxu1  ;;  %2842 = vmatmul.mubr.f32.gmra.mxu1 %v6570_v24  ;;  %2550 = vmatprep.mubr.f32.mxu0 %v6575_v47 }
 0x194   : > { %v5429_v19 = vadd.f32 %v1953_v21, %v1571_v29  ;;  %v1590_v28 = vpop.f32.mrf.mxu0  ;;  %2847 = vmatprep.mubr.f32.mxu1 %v6571_v18 }
 0x195   : > { %v1955_v35 = vpop.f32.mrf.mxu1 }
 0x196   : > { %v1597_v30 = vpop.f32.mrf.mxu0  ;;  %2552 = vmatmul.mubr.f32.gmra.mxu0 %v6576_v56 }
 0x197   : > { %v1598_v0 = vadd.f32 %v1597_v30, %v5207_v62  ;;  %v1964_v4 = vpop.f32.mrf.mxu1  ;;  %2849 = vmatmul.mubr.f32.gmra.mxu1 %v6572_v39  ;;  %2557 = vmatprep.mubr.f32.mxu0 %v4650_v53  ;;  %v6577_v62 = vld [vmem:[#allocation117_spill] sm:$0xff] }
 0x198   : > { %v5436_v2 = vadd.f32 %v1964_v4, %v1580_v63  ;;  %v1599_v24 = vpop.f32.mrf.mxu0  ;;  %2854 = vmatprep.mubr.f32.mxu1 %v6573_v55 }
 0x199   : > { %v1966_v29 = vpop.f32.mrf.mxu1 }
 0x19a   : > { %v1606_v6 = vpop.f32.mrf.mxu0  ;;  %2559 = vmatmul.mubr.f32.gmra.mxu0 %v4660_v31 }
 0x19b   : > { %v1607_v18 = vadd.f32 %v1606_v6, %v5216_v33  ;;  %v1975_v7 = vpop.f32.mrf.mxu1  ;;  %2856 = vmatmul.mubr.f32.gmra.mxu1 %v6574_v40  ;;  %2564 = vmatprep.mubr.f32.mxu0 %v6577_v62 }
 0x19c   : > { %v5443_v44 = vadd.f32 %v1975_v7, %v1589_v32  ;;  %v1608_v39 = vpop.f32.mrf.mxu0  ;;  %2861 = vmatprep.mubr.f32.mxu1 %v6575_v47 }
 0x19d   : > { %v1977_v63 = vpop.f32.mrf.mxu1 }
 0x19e   : > { %v1615_v21 = vpop.f32.mrf.mxu0  ;;  %2566 = vmatmul.mubr.f32.gmra.mxu0 %v4692_v61 }
 0x19f   : > { %v1616_v55 = vadd.f32 %v1615_v21, %v5225_v25  ;;  %v1986_v28 = vpop.f32.mrf.mxu1  ;;  %2863 = vmatmul.mubr.f32.gmra.mxu1 %v6576_v56  ;;  %2571 = vmatprep.mubr.f32.mxu0 %v4706_v50 }
 0x1a0   : > { %v5450_v33 = vadd.f32 %v1986_v28, %v1598_v0  ;;  %v1617_v40 = vpop.f32.mrf.mxu0  ;;  %2868 = vmatprep.mubr.f32.mxu1 %v4650_v53 }
 0x1a1   : > { %v1988_v32 = vpop.f32.mrf.mxu1 }
 0x1a2   : > { %v1624_v35 = vpop.f32.mrf.mxu0  ;;  %2573 = vmatmul.mubr.f32.gmra.mxu0 %v4725_v41 }
 0x1a3   : > { %v1625_v47 = vadd.f32 %v1624_v35, %v5234_v12  ;;  %v1997_v30 = vpop.f32.mrf.mxu1  ;;  %2870 = vmatmul.mubr.f32.gmra.mxu1 %v4660_v31  ;;  %2578 = vmatprep.mubr.f32.mxu0 %v4737_v3 }
 0x1a4   : > { %v5457_v25 = vadd.f32 %v1997_v30, %v1607_v18  ;;  %v1626_v56 = vpop.f32.mrf.mxu0  ;;  %2875 = vmatprep.mubr.f32.mxu1 %v6577_v62 }
 0x1a5   : > { %v1999_v0 = vpop.f32.mrf.mxu1 }
 0x1a6   : > { %v1633_v4 = vpop.f32.mrf.mxu0  ;;  %2580 = vmatmul.mubr.f32.gmra.mxu0 %v4747_v22 }
 0x1a7   : > { %v1634_v53 = vadd.f32 %v1633_v4, %v5243_v45  ;;  %v2008_v24 = vpop.f32.mrf.mxu1  ;;  %2877 = vmatmul.mubr.f32.gmra.mxu1 %v4692_v61  ;;  %2585 = vmatprep.mubr.f32.mxu0 %v4758_v27 }
 0x1a8   : > { %v5464_v12 = vadd.f32 %v2008_v24, %v1616_v55  ;;  %v1635_v31 = vpop.f32.mrf.mxu0  ;;  %2882 = vmatprep.mubr.f32.mxu1 %v4706_v50 }
 0x1a9   : > { %v2010_v29 = vpop.f32.mrf.mxu1 }
 0x1aa   : > { %v1642_v6 = vpop.f32.mrf.mxu0  ;;  %2587 = vmatmul.mubr.f32.gmra.mxu0 %v4779_v37 }
 0x1ab   : > { %v1643_v18 = vadd.f32 %v1642_v6, %v5252_v13  ;;  %v2019_v7 = vpop.f32.mrf.mxu1  ;;  %2884 = vmatmul.mubr.f32.gmra.mxu1 %v4725_v41  ;;  %2592 = vmatprep.mubr.f32.mxu0 %v4795_v9 }
 0x1ac   : > { %v5471_v45 = vadd.f32 %v2019_v7, %v1625_v47  ;;  %v1644_v61 = vpop.f32.mrf.mxu0  ;;  %2889 = vmatprep.mubr.f32.mxu1 %v4737_v3 }
 0x1ad   : > { %v2021_v62 = vpop.f32.mrf.mxu1 }
 0x1ae   : > { %v1651_v39 = vpop.f32.mrf.mxu0  ;;  %2594 = vmatmul.mubr.f32.gmra.mxu0 %v4805_v42 }
 0x1af   : > { %v1652_v50 = vadd.f32 %v1651_v39, %v5261_v10  ;;  %v2030_v63 = vpop.f32.mrf.mxu1  ;;  %2891 = vmatmul.mubr.f32.gmra.mxu1 %v4747_v22  ;;  %2599 = vmatprep.mubr.f32.mxu0 %v4814_v60 }
 0x1b0   : > { %v5478_v13 = vadd.f32 %v2030_v63, %v1634_v53  ;;  %v1653_v41 = vpop.f32.mrf.mxu0  ;;  %2896 = vmatprep.mubr.f32.mxu1 %v4758_v27 }
 0x1b1   : > { %v2032_v21 = vpop.f32.mrf.mxu1 }
 0x1b2   : > { %v1660_v55 = vpop.f32.mrf.mxu0  ;;  %2601 = vmatmul.mubr.f32.gmra.mxu0 %v4846_v43 }
 0x1b3   : > { %v1661_v3 = vadd.f32 %v1660_v55, %v5270_v14  ;;  %v2041_v28 = vpop.f32.mrf.mxu1  ;;  %2898 = vmatmul.mubr.f32.gmra.mxu1 %v4779_v37  ;;  %2606 = vmatprep.mubr.f32.mxu0 %v4850_v11 }
 0x1b4   : > { %v5485_v10 = vadd.f32 %v2041_v28, %v1643_v18  ;;  %v1662_v22 = vpop.f32.mrf.mxu0  ;;  %2903 = vmatprep.mubr.f32.mxu1 %v4795_v9 }
 0x1b5   : > { %v2043_v40 = vpop.f32.mrf.mxu1 }
 0x1b6   : > { %v1669_v32 = vpop.f32.mrf.mxu0  ;;  %2608 = vmatmul.mubr.f32.gmra.mxu0 %v4865_v1 }
 0x1b7   : > { %v1670_v27 = vadd.f32 %v1669_v32, %v5279_v17  ;;  %v2052_v35 = vpop.f32.mrf.mxu1  ;;  %2905 = vmatmul.mubr.f32.gmra.mxu1 %v4805_v42  ;;  %2613 = vmatprep.mubr.f32.mxu0 %v4874_v23 }
 0x1b8   : > { %v5492_v14 = vadd.f32 %v2052_v35, %v1652_v50  ;;  %v1671_v37 = vpop.f32.mrf.mxu0  ;;  %2910 = vmatprep.mubr.f32.mxu1 %v4814_v60 }
 0x1b9   : > { %v2054_v47 = vpop.f32.mrf.mxu1 }
 0x1ba   : > { %v1678_v30 = vpop.f32.mrf.mxu0  ;;  %2615 = vmatmul.mubr.f32.gmra.mxu0 %v4886_v26 }
 0x1bb   : > { %v1679_v9 = vadd.f32 %v1678_v30, %v5288_v49  ;;  %v2063_v56 = vpop.f32.mrf.mxu1  ;;  %2912 = vmatmul.mubr.f32.gmra.mxu1 %v4846_v43 }
 0x1bc   : > { %v5498_v17 = vadd.f32 %v2063_v56, %v1661_v3  ;;  %v1680_v0 = vpop.f32.mrf.mxu0  ;;  %2917 = vmatprep.mubr.f32.mxu1 %v4850_v11 }
 0x1bd   : > { %v2065_v42 = vpop.f32.mrf.mxu1 }
 0x1be   : > { %v1687_v4 = vpop.f32.mrf.mxu0 }
 0x1bf   : > { %v1688_v53 = vadd.f32 %v1687_v4, %v5295_v8  ;;  %v2074_v24 = vpop.f32.mrf.mxu1  ;;  %2919 = vmatmul.mubr.f32.gmra.mxu1 %v4865_v1 }
 0x1c0   : > { %v5503_v60 = vadd.f32 %v2074_v24, %v1670_v27  ;;  %v1689_v31 = vpop.f32.mrf.mxu0  ;;  %2924 = vmatprep.mubr.f32.mxu1 %v4874_v23 }
 0x1c1   : > { %v2076_v49 = vpop.f32.mrf.mxu1 }
 0x1c2   : > { %v1696_v29 = vpop.f32.mrf.mxu0 }
 0x1c3   : > { %v1697_v43 = vadd.f32 %v1696_v29, %v5302_v16  ;;  %v2085_v6 = vpop.f32.mrf.mxu1  ;;  %2926 = vmatmul.mubr.f32.gmra.mxu1 %v4886_v26 }
 0x1c4   : > { %v5508_v11 = vadd.f32 %v2085_v6, %v1679_v9  ;;  %v1698_v18 = vpop.f32.mrf.mxu0 }
 0x1c5   : > { %v2087_v7 = vpop.f32.mrf.mxu1 }
 0x1c6   : > { %v1705_v8 = vpop.f32.mrf.mxu0 }
 0x1c7   : > { %v1706_v61 = vadd.f32 %v1705_v8, %v5309_v34  ;;  %v2096_v1 = vpop.f32.mrf.mxu1 }
 0x1c8   : > { %v5511_v62 = vadd.f32 %v2096_v1, %v1688_v53  ;;  %v1707_v39 = vpop.f32.mrf.mxu0 }
 0x1c9   : > { %v2098_v50 = vpop.f32.mrf.mxu1 }
 0x1ca   : > { %v1714_v23 = vpop.f32.mrf.mxu0 }
 0x1cb   : > { %v1715_v63 = vadd.f32 %v1714_v23, %v5316_v58  ;;  %v2107_v41 = vpop.f32.mrf.mxu1 }
 0x1cc   : > { %v5514_v16 = vadd.f32 %v2107_v41, %v1697_v43  ;;  %v1716_v21 = vpop.f32.mrf.mxu0 }
 0x1cd   : > { %v2109_v26 = vpop.f32.mrf.mxu1 }
 0x1ce   : > { %v1723_v55 = vpop.f32.mrf.mxu0 }
 0x1cf   : > { %v1724_v3 = vadd.f32 %v1723_v55, %v5323_v57  ;;  %v2118_v28 = vpop.f32.mrf.mxu1 }
 0x1d0   : > { %v5517_v22 = vadd.f32 %v2118_v28, %v1706_v61  ;;  %v1725_v34 = vpop.f32.mrf.mxu0  ;;  %v6579_v28 = vld [vmem:[#allocation23_spill] sm:$0xff] }
 0x1d1   : > { %v2120_v40 = vpop.f32.mrf.mxu1 }
 0x1d2   : > { %v1732_v32 = vpop.f32.mrf.mxu0 }
 0x1d3   : > { %v1733_v27 = vadd.f32 %v1732_v32, %v5330_v54  ;;  %v2129_v35 = vpop.f32.mrf.mxu1 }
 0x1d4   : > { %v5520_v37 = vadd.f32 %v2129_v35, %v1715_v63  ;;  %v1734_v58 = vpop.f32.mrf.mxu0  ;;  %v6578_v63 = vld [vmem:[#allocation37_spill] sm:$0xff] }
 0x1d5   : > { %v2131_v47 = vpop.f32.mrf.mxu1  ;;  %v6580_v58 = vld [vmem:[#allocation28_spill] sm:$0xff] }
 0x1d6   : > { %v1741_v30 = vpop.f32.mrf.mxu0 }
 0x1d7   : > { %v1742_v9 = vadd.f32 %v1741_v30, %v5337_v51  ;;  %v2140_v56 = vpop.f32.mrf.mxu1 }
 0x1d8   : > { %v5523_v0 = vadd.f32 %v2140_v56, %v1724_v3  ;;  %v1743_v57 = vpop.f32.mrf.mxu0 }
 0x1d9   : > { %v2142_v42 = vpop.f32.mrf.mxu1 }
 0x1da   : > { %v1750_v4 = vpop.f32.mrf.mxu0 }
 0x1db   : > { %v1751_v53 = vadd.f32 %v1750_v4, %v5344_v36  ;;  %v2151_v24 = vpop.f32.mrf.mxu1 }
 0x1dc   : > { %v5526_v31 = vadd.f32 %v2151_v24, %v1733_v27  ;;  %v1752_v54 = vpop.f32.mrf.mxu0 }
 0x1dd   : > { %v2153_v49 = vpop.f32.mrf.mxu1 }
 0x1de   : > { %v1759_v29 = vpop.f32.mrf.mxu0 }
 0x1df   : > { %v1760_v43 = vadd.f32 %v1759_v29, %v5351_v59  ;;  %v2162_v6 = vpop.f32.mrf.mxu1 }
 0x1e0   : > { %v5529_v18 = vadd.f32 %v2162_v6, %v1742_v9  ;;  %v1761_v51 = vpop.f32.mrf.mxu0 }
 0x1e1   : > { %v2164_v7 = vpop.f32.mrf.mxu1 }
 0x1e2   : > { %v1768_v8 = vpop.f32.mrf.mxu0 }
 0x1e3   : > { %v1769_v61 = vadd.f32 %v1768_v8, %v5358_v48  ;;  %v2173_v1 = vpop.f32.mrf.mxu1 }
 0x1e4   : > { %v5532_v39 = vadd.f32 %v2173_v1, %v1751_v53  ;;  %v1770_v36 = vpop.f32.mrf.mxu0 }
 0x1e5   : > { %v2175_v50 = vpop.f32.mrf.mxu1 }
 0x1e6   : > { %v1777_v23 = vpop.f32.mrf.mxu0 }
 0x1e7   : > { %v1778_v41 = vadd.f32 %v1777_v23, %v6578_v63  ;;  %v2184_v21 = vpop.f32.mrf.mxu1 }
 0x1e8   : > { %v5535_v26 = vadd.f32 %v2184_v21, %v1760_v43  ;;  %v1779_v59 = vpop.f32.mrf.mxu0 }
 0x1e9   : > { %v2186_v55 = vpop.f32.mrf.mxu1 }
 0x1ea   : > { %v1786_v3 = vpop.f32.mrf.mxu0 }
 0x1eb   : > { %v1787_v34 = vadd.f32 %v1786_v3, %v6579_v28  ;;  %v2195_v40 = vpop.f32.mrf.mxu1 }
 0x1ec   : > { %v5538_v32 = vadd.f32 %v2195_v40, %v1769_v61  ;;  %v1788_v48 = vpop.f32.mrf.mxu0 }
 0x1ed   : > { %v2197_v27 = vpop.f32.mrf.mxu1 }
 0x1ee   : > { %v1795_v35 = vpop.f32.mrf.mxu0 }
 0x1ef   : > { %v1796_v47 = vadd.f32 %v1795_v35, %v6580_v58  ;;  %v2206_v30 = vpop.f32.mrf.mxu1 }
 0x1f0   : > { %v5541_v9 = vadd.f32 %v2206_v30, %v1778_v41  ;;  %v1797_v56 = vpop.f32.mrf.mxu0 }
 0x1f1   : > { %v2208_v57 = vpop.f32.mrf.mxu1 }
 0x1f2   : > { %v1804_v42 = vpop.f32.mrf.mxu0 }
 0x1f3   : > { %v1805_v4 = vadd.f32 %v1804_v42, %v5386_v46  ;;  %v2217_v53 = vpop.f32.mrf.mxu1 }
 0x1f4   : > { %v5544_v24 = vadd.f32 %v2217_v53, %v1787_v34  ;;  %v1806_v54 = vpop.f32.mrf.mxu0 }
 0x1f5   : > { %v2219_v49 = vpop.f32.mrf.mxu1 }
 0x1f6   : > { %v1813_v29 = vpop.f32.mrf.mxu0 }
 0x1f7   : > { %v1814_v43 = vadd.f32 %v1813_v29, %v5394_v5  ;;  %v2228_v6 = vpop.f32.mrf.mxu1 }
 0x1f8   : > { %v5547_v51 = vadd.f32 %v2228_v6, %v1796_v47  ;;  %v1815_v7 = vpop.f32.mrf.mxu0 }
 0x1f9   : > { %v2230_v8 = vpop.f32.mrf.mxu1 }
 0x1fa   : > { %v1822_v61 = vpop.f32.mrf.mxu0  ;;  %v3488_v8 = vld [vmem:[%s3854_s21 + $0x10] sm:$0xff] }
 0x1fb   : > { %v1823_v1 = vadd.f32 %v1822_v61, %v5401_v52  ;;  %v2239_v36 = vpop.f32.mrf.mxu1 }
 0x1fc   : > { %v5550_v50 = vadd.f32 %v2239_v36, %v1805_v4  ;;  %v1824_v46 = vpop.f32.mrf.mxu0  ;;  %v3487_v4 = vld [vmem:[%s3854_s21] sm:$0xff] }
 0x1fd   : > { %v2241_v23 = vpop.f32.mrf.mxu1 }
 0x1fe   : > { %v2399_v63 = vpop.f32.mrf.mxu0 }
 0x1ff   : > { %v2250_v41 = vpop.f32.mrf.mxu1  ;;  %v2400_v52 = vadd.f32 %v2399_v63, %v5408_v38 }
 0x200   : > { %v5552_v21 = vadd.f32 %v2250_v41, %v1814_v43  ;;  %v2401_v59 = vpop.f32.mrf.mxu0 }
 0x201   : > { %v2252_v5 = vpop.f32.mrf.mxu1  ;;  %v3489_v59 = vld [vmem:[%s3854_s21 + $0x20] sm:$0xff] }
 0x202   : > { %v2406_v55 = vpop.f32.mrf.mxu0 }
 0x203   : > { %v2261_v3 = vpop.f32.mrf.mxu1  ;;  %v2407_v30 = vadd.f32 %v2406_v55, %v5415_v20 }
 0x204   : > { %v5554_v28 = vadd.f32 %v2261_v3, %v1823_v1  ;;  %v2408_v34 = vpop.f32.mrf.mxu0 }
 0x205   : > { %v2263_v40 = vpop.f32.mrf.mxu1 }
 0x206   : > { %v2413_v48 = vpop.f32.mrf.mxu0 }
 0x207   : > { %v2710_v27 = vpop.f32.mrf.mxu1  ;;  %v2414_v20 = vadd.f32 %v2413_v48, %v5422_v15 }
 0x208   : > { %v2711_v35 = vadd.f32 %v2710_v27, %v2400_v52  ;;  %v2415_v58 = vpop.f32.mrf.mxu0  ;;  %v3490_v27 = vld [vmem:[%s3854_s21 + $0x30] sm:$0xff] }
 0x209   : > { %v2712_v47 = vpop.f32.mrf.mxu1 }
 0x20a   : > { %v2931_v56 = vmax.f32 %v2711_v35, 0.0  ;;  %v2420_v57 = vpop.f32.mrf.mxu0 }
 0x20b   : > { %v2717_v42 = vpop.f32.mrf.mxu1  ;;  %v2421_v23 = vadd.f32 %v2420_v57, %v5429_v19 }
 0x20c   : > { %v2963_v54 = vsel %vm267_vm2, %v3487_v4, %v2931_v56  ;;  %v2718_v49 = vadd.f32 %v2717_v42, %v2407_v30  ;;  %v2422_v29 = vpop.f32.mrf.mxu0  ;;  %v3491_v4 = vld [vmem:[%s3854_s21 + $0x40] sm:$0xff] }
 0x20d   : > { %2996 = vst.msk [vmem:[%s5562_s12] sm:$0xff] %vm2995_vm3, %v2963_v54  ;;  %v2719_v38 = vpop.f32.mrf.mxu1 }
 0x20e   : > { %v2932_v43 = vmax.f32 %v2718_v49, 0.0  ;;  %v2427_v6 = vpop.f32.mrf.mxu0 }
 0x20f   : > { %v2724_v7 = vpop.f32.mrf.mxu1  ;;  %v2428_v40 = vadd.f32 %v2427_v6, %v5436_v2 }
 0x210   : > { %v2964_v61 = vsel %vm267_vm2, %v3488_v8, %v2932_v43  ;;  %v2725_v1 = vadd.f32 %v2724_v7, %v2414_v20  ;;  %v2429_v36 = vpop.f32.mrf.mxu0  ;;  %v3492_v7 = vld [vmem:[%s3854_s21 + $0x50] sm:$0xff] }
 0x211   : > { %2997 = vst.msk [vmem:[%s5562_s12 + $0x8] sm:$0xff] %vm2995_vm3, %v2964_v61  ;;  %v2726_v46 = vpop.f32.mrf.mxu1 }
 0x212   : > { %v2933_v63 = vmax.f32 %v2725_v1, 0.0  ;;  %v2434_v41 = vpop.f32.mrf.mxu0 }
 0x213   : > { %v2731_v15 = vpop.f32.mrf.mxu1  ;;  %v2435_v56 = vadd.f32 %v2434_v41, %v5443_v44  ;;  %v3493_v41 = vld [vmem:[%s3854_s21 + $0x60] sm:$0xff] }
 0x214   : > { %v2965_v5 = vsel %vm267_vm2, %v3489_v59, %v2933_v63  ;;  %v2732_v55 = vadd.f32 %v2731_v15, %v2421_v23  ;;  %v2436_v3 = vpop.f32.mrf.mxu0 }
 0x215   : > { %2998 = vst.msk [vmem:[%s5562_s12 + $0x10] sm:$0xff] %vm2995_vm3, %v2965_v5  ;;  %v2733_v34 = vpop.f32.mrf.mxu1 }
 0x216   : > { %v2934_v52 = vmax.f32 %v2732_v55, 0.0  ;;  %v2441_v48 = vpop.f32.mrf.mxu0 }
 0x217   : > { %v2738_v19 = vpop.f32.mrf.mxu1  ;;  %v2442_v20 = vadd.f32 %v2441_v48, %v5450_v33 }
 0x218   : > { %v2966_v35 = vsel %vm267_vm2, %v3490_v27, %v2934_v52  ;;  %v2739_v58 = vadd.f32 %v2738_v19, %v2428_v40  ;;  %v2443_v47 = vpop.f32.mrf.mxu0  ;;  %v3494_v52 = vld [vmem:[%s3854_s21 + $0x70] sm:$0xff] }
 0x219   : > { %2999 = vst.msk [vmem:[%s5562_s12 + $0x18] sm:$0xff] %vm2995_vm3, %v2966_v35  ;;  %v2740_v30 = vpop.f32.mrf.mxu1 }
 0x21a   : > { %v2935_v57 = vmax.f32 %v2739_v58, 0.0  ;;  %v2448_v42 = vpop.f32.mrf.mxu0 }
 0x21b   : > { %v2745_v2 = vpop.f32.mrf.mxu1  ;;  %v2449_v46 = vadd.f32 %v2448_v42, %v5457_v25 }
 0x21c   : > { %v2967_v54 = vsel %vm267_vm2, %v3491_v4, %v2935_v57  ;;  %v2746_v49 = vadd.f32 %v2745_v2, %v2435_v56  ;;  %v2450_v29 = vpop.f32.mrf.mxu0  ;;  %v3495_v56 = vld [vmem:[%s3854_s21 + $0x80] sm:$0xff] }
 0x21d   : > { %3000 = vst.msk [vmem:[%s5562_s12 + $0x20] sm:$0xff] %vm2995_vm3, %v2967_v54  ;;  %v2747_v38 = vpop.f32.mrf.mxu1 }
 0x21e   : > { %v2936_v43 = vmax.f32 %v2746_v49, 0.0  ;;  %v2455_v6 = vpop.f32.mrf.mxu0  ;;  %v3496_v38 = vld [vmem:[%s3854_s21 + $0x90] sm:$0xff] }
 0x21f   : > { %v2752_v44 = vpop.f32.mrf.mxu1  ;;  %v2456_v3 = vadd.f32 %v2455_v6, %v5464_v12 }
 0x220   : > { %v2968_v8 = vsel %vm267_vm2, %v3492_v7, %v2936_v43  ;;  %v2753_v61 = vadd.f32 %v2752_v44, %v2442_v20  ;;  %v2457_v1 = vpop.f32.mrf.mxu0 }
 0x221   : > { %3001 = vst.msk [vmem:[%s5562_s12 + $0x28] sm:$0xff] %vm2995_vm3, %v2968_v8  ;;  %v2754_v36 = vpop.f32.mrf.mxu1  ;;  %v3497_v1 = vld [vmem:[%s3854_s21 + $0xa0] sm:$0xff] }
 0x222   : > { %v2937_v23 = vmax.f32 %v2753_v61, 0.0  ;;  %v2462_v63 = vpop.f32.mrf.mxu0 }
 0x223   : > { %v2759_v33 = vpop.f32.mrf.mxu1  ;;  %v2463_v58 = vadd.f32 %v2462_v63, %v5471_v45 }
 0x224   : > { %v2969_v15 = vsel %vm267_vm2, %v3493_v41, %v2937_v23  ;;  %v2760_v59 = vadd.f32 %v2759_v33, %v2449_v46  ;;  %v2464_v5 = vpop.f32.mrf.mxu0 }
 0x225   : > { %3002 = vst.msk [vmem:[%s5562_s12 + $0x30] sm:$0xff] %vm2995_vm3, %v2969_v15  ;;  %v2761_v55 = vpop.f32.mrf.mxu1 }
 0x226   : > { %v2938_v34 = vmax.f32 %v2760_v59, 0.0  ;;  %v2469_v40 = vpop.f32.mrf.mxu0  ;;  %v3498_v59 = vld [vmem:[%s3854_s21 + $0xb0] sm:$0xff] }
 0x227   : > { %v2766_v25 = vpop.f32.mrf.mxu1  ;;  %v2470_v54 = vadd.f32 %v2469_v40, %v5478_v13 }
 0x228   : > { %v2970_v48 = vsel %vm267_vm2, %v3494_v52, %v2938_v34  ;;  %v2767_v19 = vadd.f32 %v2766_v25, %v2456_v3  ;;  %v2471_v27 = vpop.f32.mrf.mxu0 }
 0x229   : > { %3003 = vst.msk [vmem:[%s5562_s12 + $0x38] sm:$0xff] %vm2995_vm3, %v2970_v48  ;;  %v2768_v35 = vpop.f32.mrf.mxu1  ;;  %v3499_v48 = vld [vmem:[%s3854_s21 + $0xc0] sm:$0xff] }
 0x22a   : > { %v2939_v47 = vmax.f32 %v2767_v19, 0.0  ;;  %v2476_v30 = vpop.f32.mrf.mxu0 }
 0x22b   : > { %v2773_v12 = vpop.f32.mrf.mxu1  ;;  %v2477_v7 = vadd.f32 %v2476_v30, %v5485_v10 }
 0x22c   : > { %v2971_v57 = vsel %vm267_vm2, %v3495_v56, %v2939_v47  ;;  %v2774_v42 = vadd.f32 %v2773_v12, %v2463_v58  ;;  %v2478_v2 = vpop.f32.mrf.mxu0  ;;  %v3500_v56 = vld [vmem:[%s3854_s21 + $0xd0] sm:$0xff] }
 0x22d   : > { %3004 = vst.msk [vmem:[%s5562_s12 + $0x40] sm:$0xff] %vm2995_vm3, %v2971_v57  ;;  %v2775_v4 = vpop.f32.mrf.mxu1 }
 0x22e   : > { %v2940_v49 = vmax.f32 %v2774_v42, 0.0  ;;  %v2483_v29 = vpop.f32.mrf.mxu0 }
 0x22f   : > { %v2780_v45 = vpop.f32.mrf.mxu1  ;;  %v2484_v33 = vadd.f32 %v2483_v29, %v5492_v14 }
 0x230   : > { %v2972_v20 = vsel %vm267_vm2, %v3496_v38, %v2940_v49  ;;  %v2781_v43 = vadd.f32 %v2780_v45, %v2470_v54  ;;  %v2485_v6 = vpop.f32.mrf.mxu0  ;;  %v3501_v45 = vld [vmem:[%s3854_s21 + $0xe0] sm:$0xff] }
 0x231   : > { %3005 = vst.msk [vmem:[%s5562_s12 + $0x48] sm:$0xff] %vm2995_vm3, %v2972_v20  ;;  %v2782_v44 = vpop.f32.mrf.mxu1 }
 0x232   : > { %v2941_v8 = vmax.f32 %v2781_v43, 0.0  ;;  %v2490_v61 = vpop.f32.mrf.mxu0 }
 0x233   : > { %v2787_v13 = vpop.f32.mrf.mxu1  ;;  %v2491_v40 = vadd.f32 %v2490_v61, %v5498_v17  ;;  %v3502_v61 = vld [vmem:[%s3854_s21 + $0xf0] sm:$0xff] }
 0x234   : > { %v2973_v36 = vsel %vm267_vm2, %v3497_v1, %v2941_v8  ;;  %v2788_v46 = vadd.f32 %v2787_v13, %v2477_v7  ;;  %v2492_v23 = vpop.f32.mrf.mxu0 }
 0x235   : > { %3006 = vst.msk [vmem:[%s5562_s12 + $0x50] sm:$0xff] %vm2995_vm3, %v2973_v36  ;;  %v2789_v63 = vpop.f32.mrf.mxu1 }
 0x236   : > { %v2942_v41 = vmax.f32 %v2788_v46, 0.0  ;;  %v2497_v15 = vpop.f32.mrf.mxu0 }
 0x237   : > { %v2794_v10 = vpop.f32.mrf.mxu1  ;;  %v2498_v47 = vadd.f32 %v2497_v15, %v5503_v60 }
 0x238   : > { %v2974_v5 = vsel %vm267_vm2, %v3498_v59, %v2942_v41  ;;  %v2795_v55 = vadd.f32 %v2794_v10, %v2484_v33  ;;  %v2499_v3 = vpop.f32.mrf.mxu0  ;;  %v3503_v41 = vld [vmem:[%s3854_s21 + $0x100] sm:$0xff] }
 0x239   : > { %3007 = vst.msk [vmem:[%s5562_s12 + $0x58] sm:$0xff] %vm2995_vm3, %v2974_v5  ;;  %v2796_v34 = vpop.f32.mrf.mxu1 }
 0x23a   : > { %v2943_v25 = vmax.f32 %v2795_v55, 0.0  ;;  %v2504_v52 = vpop.f32.mrf.mxu0 }
 0x23b   : > { %v2801_v14 = vpop.f32.mrf.mxu1  ;;  %v2505_v54 = vadd.f32 %v2504_v52, %v5508_v11 }
 0x23c   : > { %v2975_v19 = vsel %vm267_vm2, %v3499_v48, %v2943_v25  ;;  %v2802_v27 = vadd.f32 %v2801_v14, %v2491_v40  ;;  %v2506_v35 = vpop.f32.mrf.mxu0  ;;  %v3504_v40 = vld [vmem:[%s3854_s21 + $0x110] sm:$0xff] }
 0x23d   : > { %3008 = vst.msk [vmem:[%s5562_s12 + $0x60] sm:$0xff] %vm2995_vm3, %v2975_v19  ;;  %v2803_v58 = vpop.f32.mrf.mxu1 }
 0x23e   : > { %v2944_v30 = vmax.f32 %v2802_v27, 0.0  ;;  %v2511_v12 = vpop.f32.mrf.mxu0  ;;  %v3505_v58 = vld [vmem:[%s3854_s21 + $0x120] sm:$0xff] }
 0x23f   : > { %v2808_v17 = vpop.f32.mrf.mxu1  ;;  %v2512_v44 = vadd.f32 %v2511_v12, %v5511_v62 }
 0x240   : > { %v2976_v57 = vsel %vm267_vm2, %v3500_v56, %v2944_v30  ;;  %v2809_v42 = vadd.f32 %v2808_v17, %v2498_v47  ;;  %v2513_v2 = vpop.f32.mrf.mxu0 }
 0x241   : > { %3009 = vst.msk [vmem:[%s5562_s12 + $0x68] sm:$0xff] %vm2995_vm3, %v2976_v57  ;;  %v2810_v4 = vpop.f32.mrf.mxu1  ;;  %v3506_v2 = vld [vmem:[%s3854_s21 + $0x130] sm:$0xff] }
 0x242   : > { %v2945_v49 = vmax.f32 %v2809_v42, 0.0  ;;  %v2518_v29 = vpop.f32.mrf.mxu0 }
 0x243   : > { %v2815_v60 = vpop.f32.mrf.mxu1  ;;  %v2519_v23 = vadd.f32 %v2518_v29, %v5514_v16 }
 0x244   : > { %v2977_v38 = vsel %vm267_vm2, %v3501_v45, %v2945_v49  ;;  %v2816_v20 = vadd.f32 %v2815_v60, %v2505_v54  ;;  %v2520_v43 = vpop.f32.mrf.mxu0 }
 0x245   : > { %3010 = vst.msk [vmem:[%s5562_s12 + $0x70] sm:$0xff] %vm2995_vm3, %v2977_v38  ;;  %v2817_v6 = vpop.f32.mrf.mxu1 }
 0x246   : > { %v2946_v7 = vmax.f32 %v2816_v20, 0.0  ;;  %v2525_v8 = vpop.f32.mrf.mxu0  ;;  %v3507_v20 = vld [vmem:[%s3854_s21 + $0x140] sm:$0xff] }
 0x247   : > { %v2822_v11 = vpop.f32.mrf.mxu1  ;;  %v2526_v55 = vadd.f32 %v2525_v8, %v5517_v22 }
 0x248   : > { %v2978_v13 = vsel %vm267_vm2, %v3502_v61, %v2946_v7  ;;  %v2823_v1 = vadd.f32 %v2822_v11, %v2512_v44  ;;  %v2527_v36 = vpop.f32.mrf.mxu0 }
 0x249   : > { %3011 = vst.msk [vmem:[%s5562_s12 + $0x78] sm:$0xff] %vm2995_vm3, %v2978_v13  ;;  %v2824_v46 = vpop.f32.mrf.mxu1  ;;  %v3508_v13 = vld [vmem:[%s3854_s21 + $0x150] sm:$0xff] }
 0x24a   : > { %v2947_v63 = vmax.f32 %v2823_v1, 0.0  ;;  %v2532_v33 = vpop.f32.mrf.mxu0 }
 0x24b   : > { %v2829_v62 = vpop.f32.mrf.mxu1  ;;  %v2533_v19 = vadd.f32 %v2532_v33, %v5520_v37 }
 0x24c   : > { %v2979_v15 = vsel %vm267_vm2, %v3503_v41, %v2947_v63  ;;  %v2830_v10 = vadd.f32 %v2829_v62, %v2519_v23  ;;  %v2534_v59 = vpop.f32.mrf.mxu0  ;;  %v3509_v41 = vld [vmem:[%s3854_s21 + $0x160] sm:$0xff] }
 0x24d   : > { %3012 = vst.msk [vmem:[%s5562_s12 + $0x80] sm:$0xff] %vm2995_vm3, %v2979_v15  ;;  %v2831_v5 = vpop.f32.mrf.mxu1 }
 0x24e   : > { %v2948_v3 = vmax.f32 %v2830_v10, 0.0  ;;  %v2539_v34 = vpop.f32.mrf.mxu0 }
 0x24f   : > { %v2836_v16 = vpop.f32.mrf.mxu1  ;;  %v2540_v56 = vadd.f32 %v2539_v34, %v5523_v0 }
 0x250   : > { %v2980_v25 = vsel %vm267_vm2, %v3504_v40, %v2948_v3  ;;  %v2837_v52 = vadd.f32 %v2836_v16, %v2526_v55  ;;  %v2541_v14 = vpop.f32.mrf.mxu0  ;;  %v3510_v16 = vld [vmem:[%s3854_s21 + $0x170] sm:$0xff] }
 0x251   : > { %3013 = vst.msk [vmem:[%s5562_s12 + $0x88] sm:$0xff] %vm2995_vm3, %v2980_v25  ;;  %v2838_v48 = vpop.f32.mrf.mxu1 }
 0x252   : > { %v2949_v27 = vmax.f32 %v2837_v52, 0.0  ;;  %v2546_v35 = vpop.f32.mrf.mxu0 }
 0x253   : > { %v2843_v22 = vpop.f32.mrf.mxu1  ;;  %v2547_v60 = vadd.f32 %v2546_v35, %v5526_v31  ;;  %v3511_v35 = vld [vmem:[%s3854_s21 + $0x180] sm:$0xff] }
 0x254   : > { %v2981_v47 = vsel %vm267_vm2, %v3505_v58, %v2949_v27  ;;  %v2844_v30 = vadd.f32 %v2843_v22, %v2533_v19  ;;  %v2548_v12 = vpop.f32.mrf.mxu0 }
 0x255   : > { %3014 = vst.msk [vmem:[%s5562_s12 + $0x90] sm:$0xff] %vm2995_vm3, %v2981_v47  ;;  %v2845_v17 = vpop.f32.mrf.mxu1 }
 0x256   : > { %v2950_v57 = vmax.f32 %v2844_v30, 0.0  ;;  %v2553_v42 = vpop.f32.mrf.mxu0 }
 0x257   : > { %v2850_v37 = vpop.f32.mrf.mxu1  ;;  %v2554_v8 = vadd.f32 %v2553_v42, %v5529_v18 }
 0x258   : > { %v2982_v4 = vsel %vm267_vm2, %v3506_v2, %v2950_v57  ;;  %v2851_v54 = vadd.f32 %v2850_v37, %v2540_v56  ;;  %v2555_v49 = vpop.f32.mrf.mxu0  ;;  %v3512_v57 = vld [vmem:[%s3854_s21 + $0x190] sm:$0xff] }
 0x259   : > { %3015 = vst.msk [vmem:[%s5562_s12 + $0x98] sm:$0xff] %vm2995_vm3, %v2982_v4  ;;  %v2852_v29 = vpop.f32.mrf.mxu1 }
 0x25a   : > { %v2951_v45 = vmax.f32 %v2851_v54, 0.0  ;;  %v2560_v38 = vpop.f32.mrf.mxu0 }
 0x25b   : > { %v2857_v0 = vpop.f32.mrf.mxu1  ;;  %v2561_v63 = vadd.f32 %v2560_v38, %v5532_v39 }
 0x25c   : > { %v2983_v43 = vsel %vm267_vm2, %v3507_v20, %v2951_v45  ;;  %v2858_v6 = vadd.f32 %v2857_v0, %v2547_v60  ;;  %v2562_v44 = vpop.f32.mrf.mxu0  ;;  %v3513_v60 = vld [vmem:[%s3854_s21 + $0x1a0] sm:$0xff] }
 0x25d   : > { %3016 = vst.msk [vmem:[%s5562_s12 + $0xa0] sm:$0xff] %vm2995_vm3, %v2983_v43  ;;  %v2859_v7 = vpop.f32.mrf.mxu1 }
 0x25e   : > { %v2952_v11 = vmax.f32 %v2858_v6, 0.0  ;;  %v2567_v61 = vpop.f32.mrf.mxu0  ;;  %v3514_v7 = vld [vmem:[%s3854_s21 + $0x1b0] sm:$0xff] }
 0x25f   : > { %v2864_v31 = vpop.f32.mrf.mxu1  ;;  %v2568_v55 = vadd.f32 %v2567_v61, %v5535_v26 }
 0x260   : > { %v2984_v1 = vsel %vm267_vm2, %v3508_v13, %v2952_v11  ;;  %v2865_v36 = vadd.f32 %v2864_v31, %v2554_v8  ;;  %v2569_v46 = vpop.f32.mrf.mxu0 }
 0x261   : > { %3017 = vst.msk [vmem:[%s5562_s12 + $0xa8] sm:$0xff] %vm2995_vm3, %v2984_v1  ;;  %v2866_v23 = vpop.f32.mrf.mxu1  ;;  %v3515_v46 = vld [vmem:[%s3854_s21 + $0x1c0] sm:$0xff] }
 0x262   : > { %v2953_v33 = vmax.f32 %v2865_v36, 0.0  ;;  %v2574_v62 = vpop.f32.mrf.mxu0 }
 0x263   : > { %v2871_v18 = vpop.f32.mrf.mxu1  ;;  %v2575_v48 = vadd.f32 %v2574_v62, %v5538_v32 }
 0x264   : > { %v2985_v15 = vsel %vm267_vm2, %v3509_v41, %v2953_v33  ;;  %v2872_v10 = vadd.f32 %v2871_v18, %v2561_v63  ;;  %v2576_v59 = vpop.f32.mrf.mxu0 }
 0x265   : > { %3018 = vst.msk [vmem:[%s5562_s12 + $0xb0] sm:$0xff] %vm2995_vm3, %v2985_v15  ;;  %v2873_v5 = vpop.f32.mrf.mxu1  ;;  %v3516_v15 = vld [vmem:[%s3854_s21 + $0x1d0] sm:$0xff] }
 0x266   : > { %v2954_v3 = vmax.f32 %v2872_v10, 0.0  ;;  %v2581_v34 = vpop.f32.mrf.mxu0 }
 0x267   : > { %v2878_v39 = vpop.f32.mrf.mxu1  ;;  %v2582_v12 = vadd.f32 %v2581_v34, %v5541_v9 }
 0x268   : > { %v2986_v40 = vsel %vm267_vm2, %v3510_v16, %v2954_v3  ;;  %v2879_v25 = vadd.f32 %v2878_v39, %v2568_v55  ;;  %v2583_v52 = vpop.f32.mrf.mxu0  ;;  %v3517_v39 = vld [vmem:[%s3854_s21 + $0x1e0] sm:$0xff] }
 0x269   : > { %3019 = vst.msk [vmem:[%s5562_s12 + $0xb8] sm:$0xff] %vm2995_vm3, %v2986_v40  ;;  %v2880_v14 = vpop.f32.mrf.mxu1  ;;  %v3518_v52 = vld [vmem:[%s3854_s21 + $0x1f0] sm:$0xff] }
 0x26a   : > { %v2955_v19 = vmax.f32 %v2879_v25, 0.0  ;;  %v2588_v27 = vpop.f32.mrf.mxu0 }
 0x26b   : > { %v2885_v26 = vpop.f32.mrf.mxu1  ;;  %v2589_v54 = vadd.f32 %v2588_v27, %v5544_v24 }
 0x26c   : > { %v2987_v22 = vsel %vm267_vm2, %v3511_v35, %v2955_v19  ;;  %v2886_v58 = vadd.f32 %v2885_v26, %v2575_v48  ;;  %v2590_v47 = vpop.f32.mrf.mxu0 }
 0x26d   : > { %3020 = vst.msk [vmem:[%s5562_s12 + $0xc0] sm:$0xff] %vm2995_vm3, %v2987_v22  ;;  %v2887_v30 = vpop.f32.mrf.mxu1 }
 0x26e   : > { %v2956_v17 = vmax.f32 %v2886_v58, 0.0  ;;  %v2595_v56 = vpop.f32.mrf.mxu0 }
 0x26f   : > { %v2892_v32 = vpop.f32.mrf.mxu1  ;;  %v2596_v43 = vadd.f32 %v2595_v56, %v5547_v51 }
 0x270   : > { %v2988_v42 = vsel %vm267_vm2, %v3512_v57, %v2956_v17  ;;  %v2893_v37 = vadd.f32 %v2892_v32, %v2582_v12  ;;  %v2597_v2 = vpop.f32.mrf.mxu0 }
 0x271   : > { %3021 = vst.msk [vmem:[%s5562_s12 + $0xc8] sm:$0xff] %vm2995_vm3, %v2988_v42  ;;  %v2894_v4 = vpop.f32.mrf.mxu1 }
 0x272   : > { %v2957_v49 = vmax.f32 %v2893_v37, 0.0  ;;  %v2602_v29 = vpop.f32.mrf.mxu0 }
 0x273   : > { %v2899_v9 = vpop.f32.mrf.mxu1  ;;  %v2603_v13 = vadd.f32 %v2602_v29, %v5550_v50 }
 0x274   : > { %v2989_v45 = vsel %vm267_vm2, %v3513_v60, %v2957_v49  ;;  %v2900_v38 = vadd.f32 %v2899_v9, %v2589_v54  ;;  %v2604_v0 = vpop.f32.mrf.mxu0 }
 0x275   : > { %3022 = vst.msk [vmem:[%s5562_s12 + $0xd0] sm:$0xff] %vm2995_vm3, %v2989_v45  ;;  %v2901_v20 = vpop.f32.mrf.mxu1 }
 0x276   : > { %v2958_v6 = vmax.f32 %v2900_v38, 0.0  ;;  %v2609_v44 = vpop.f32.mrf.mxu0 }
 0x277   : > { %v2906_v24 = vpop.f32.mrf.mxu1  ;;  %v2610_v18 = vadd.f32 %v2609_v44, %v5552_v21 }
 0x278   : > { %v2990_v8 = vsel %vm267_vm2, %v3514_v7, %v2958_v6  ;;  %v2907_v11 = vadd.f32 %v2906_v24, %v2596_v43  ;;  %v2611_v61 = vpop.f32.mrf.mxu0 }
 0x279   : > { %3023 = vst.msk [vmem:[%s5562_s12 + $0xd8] sm:$0xff] %vm2995_vm3, %v2990_v8  ;;  %v2908_v31 = vpop.f32.mrf.mxu1 }
 0x27a   : > { %v2959_v1 = vmax.f32 %v2907_v11, 0.0  ;;  %v2616_v36 = vpop.f32.mrf.mxu0 }
 0x27b   : > { %v2913_v51 = vpop.f32.mrf.mxu1  ;;  %v2617_v55 = vadd.f32 %v2616_v36, %v5554_v28 }
 0x27c   : > { %v2991_v23 = vsel %vm267_vm2, %v3515_v46, %v2959_v1  ;;  %v2914_v63 = vadd.f32 %v2913_v51, %v2603_v13  ;;  %v2618_v33 = vpop.f32.mrf.mxu0 }
 0x27d   : > { %3024 = vst.msk [vmem:[%s5562_s12 + $0xe0] sm:$0xff] %vm2995_vm3, %v2991_v23  ;;  %v2915_v62 = vpop.f32.mrf.mxu1 }
 0x27e   : > { %v2960_v41 = vmax.f32 %v2914_v63, 0.0 }
 0x27f   : > { %v2920_v50 = vpop.f32.mrf.mxu1 }
 0x280   : > { %v2992_v10 = vsel %vm267_vm2, %v3516_v15, %v2960_v41  ;;  %v2921_v59 = vadd.f32 %v2920_v50, %v2610_v18 }
 0x281   : > { %3025 = vst.msk [vmem:[%s5562_s12 + $0xe8] sm:$0xff] %vm2995_vm3, %v2992_v10  ;;  %v2922_v5 = vpop.f32.mrf.mxu1 }
 0x282   : > { %v2961_v3 = vmax.f32 %v2921_v59, 0.0 }
 0x283   : > { %v2927_v34 = vpop.f32.mrf.mxu1 }
 0x284   : > { %v2993_v21 = vsel %vm267_vm2, %v3517_v39, %v2961_v3  ;;  %v2928_v16 = vadd.f32 %v2927_v34, %v2617_v55 }
 0x285   : > { %3026 = vst.msk [vmem:[%s5562_s12 + $0xf0] sm:$0xff] %vm2995_vm3, %v2993_v21  ;;  %v2929_v40 = vpop.f32.mrf.mxu1  ;;  %3034 = sbr.rel (!%p3653_p4) target bundleno = 698 (0x2ba), region = 36 }
 0x286   : > { %v2962_v25 = vmax.f32 %v2928_v16, 0.0 }
 0x288   : > { %v2994_v14 = vsel %vm267_vm2, %v3518_v52, %v2962_v25 }
 0x289   : > { %3027 = vst.msk [vmem:[%s5562_s12 + $0xf8] sm:$0xff] %vm2995_vm3, %v2994_v14 }
 0x28a   : > { %s6591_s7 = smov (!%p3037_p8, %s3036_s7), 32 }
 0x28b   : > { %s3379_s17 = sshll.u32 %s6591_s7, 7 }
 0x28c   : > { %p3382_p9 = scmp.eq.s32.totalorder %s3379_s17, 0 }
 0x28d   : > { %s5764_s18 = sshrl.u32 (!%p3382_p9), %s6591_s7, 5 }
 0x28e   : > { %3045 = sbr.rel (%p3382_p9) target bundleno = 698 (0x2ba), region = 40  ;;  %p3383_p10 = scmp.le.s32.totalorder (!%p3382_p9), %s5764_s18, 0 }
 0x293   : > { %3324 = sbr.rel (%p3383_p10) target bundleno = 681 (0x2a9), region = 116  ;;  %s6582_s15 = smov (!%p3383_p10), %s5758_s11 }
 0x294   : > { %s6583_s20 = smov (!%p3383_p10), %s5562_s12  ;;  %s5773_s14 = smov (!%p3383_p10), 0  }
 0x295   : > { %s5775_s21 = smov (!%p3383_p10), 0  }
 0x298 LB: >> { %v3170_v28 = vld [vmem:[%s3581_s20] sm:$0xff]  ;;  %v3172_v53 = vld [vmem:[%s3581_s20 + $0x8] sm:$0xff]  ;;  %v3174_v48 = vld [vmem:[%s3581_s20 + $0x10] sm:$0xff]  ;;  %s3234_s22 = sadd.s32 1, %s3585_s14  ;;  %s3164_s21 = sadd.s32 1, %s3589_s21   ;;  %s3589_s21 = sphi %s5775_s21, %s3164_s21   ;;  %s3585_s14 = sphi %s5773_s14, %s6586_s14   ;;  %s3581_s20 = sphi %s6583_s20, %s6585_s20   ;;  %s3577_s15 = sphi %s6582_s15, %s6584_s15  }
 0x299   : >> { %3171 = vst [vmem:[%s3577_s15] sm:$0xff] %v3170_v28  ;;  %3173 = vst [vmem:[%s3577_s15 + $0x8] sm:$0xff] %v3172_v53  ;;  %v3176_v19 = vld [vmem:[%s3581_s20 + $0x18] sm:$0xff]  ;;  %v3178_v27 = vld [vmem:[%s3581_s20 + $0x20] sm:$0xff]  ;;  %p3235_p11 = scmp.ge.s32.totalorder %s3234_s22, %s5764_s18  ;;  %p3163_p12 = scmp.ge.s32.totalorder %s3164_s21, %s5764_s18 }
 0x29a   : >> { %3175 = vst [vmem:[%s3577_s15 + $0x10] sm:$0xff] %v3174_v48  ;;  %v3180_v26 = vld [vmem:[%s3581_s20 + $0x28] sm:$0xff]  ;;  %3177 = vst [vmem:[%s3577_s15 + $0x18] sm:$0xff] %v3176_v19  ;;  %v3182_v35 = vld [vmem:[%s3581_s20 + $0x30] sm:$0xff] }
 0x29b   : >> { %3179 = vst [vmem:[%s3577_s15 + $0x20] sm:$0xff] %v3178_v27  ;;  %3181 = vst [vmem:[%s3577_s15 + $0x28] sm:$0xff] %v3180_v26  ;;  %v3184_v22 = vld [vmem:[%s3581_s20 + $0x38] sm:$0xff]  ;;  %v3186_v58 = vld [vmem:[%s3581_s20 + $0x40] sm:$0xff]  ;;  %s6593_s22 = smov (%p3235_p11, %s3234_s22), 0 }
 0x29c   : >> { %3183 = vst [vmem:[%s3577_s15 + $0x30] sm:$0xff] %v3182_v35  ;;  %3185 = vst [vmem:[%s3577_s15 + $0x38] sm:$0xff] %v3184_v22  ;;  %v3188_v47 = vld [vmem:[%s3581_s20 + $0x48] sm:$0xff]  ;;  %v3190_v30 = vld [vmem:[%s3581_s20 + $0x50] sm:$0xff]  ;;  %s3384_s23 = sshll.u32 %s6593_s22, 8  ;;  %s6586_s14 = smov %s6593_s22 }
 0x29d   : >> { %3187 = vst [vmem:[%s3577_s15 + $0x40] sm:$0xff] %v3186_v58  ;;  %v3192_v12 = vld [vmem:[%s3581_s20 + $0x58] sm:$0xff]  ;;  %3189 = vst [vmem:[%s3577_s15 + $0x48] sm:$0xff] %v3188_v47  ;;  %v3194_v17 = vld [vmem:[%s3581_s20 + $0x60] sm:$0xff]  ;;  %s5831_s24 = scalar_lea.vmem %s5562_s12, %s3384_s23 [#allocation2]   ;;  %s3240_s25 = scalar_lea.vmem %s5758_s11, %s3384_s23  }
 0x29e   : >> { %3191 = vst [vmem:[%s3577_s15 + $0x50] sm:$0xff] %v3190_v30  ;;  %3193 = vst [vmem:[%s3577_s15 + $0x58] sm:$0xff] %v3192_v12  ;;  %v3196_v56 = vld [vmem:[%s3581_s20 + $0x68] sm:$0xff]  ;;  %v3198_v32 = vld [vmem:[%s3581_s20 + $0x70] sm:$0xff] }
 0x29f   : >> { %3195 = vst [vmem:[%s3577_s15 + $0x60] sm:$0xff] %v3194_v17  ;;  %3197 = vst [vmem:[%s3577_s15 + $0x68] sm:$0xff] %v3196_v56  ;;  %v3200_v57 = vld [vmem:[%s3581_s20 + $0x78] sm:$0xff]  ;;  %v3202_v42 = vld [vmem:[%s3581_s20 + $0x80] sm:$0xff] }
 0x2a0   : >> { %3199 = vst [vmem:[%s3577_s15 + $0x70] sm:$0xff] %v3198_v32  ;;  %v3204_v37 = vld [vmem:[%s3581_s20 + $0x88] sm:$0xff]  ;;  %3201 = vst [vmem:[%s3577_s15 + $0x78] sm:$0xff] %v3200_v57  ;;  %v3206_v2 = vld [vmem:[%s3581_s20 + $0x90] sm:$0xff] }
 0x2a1   : >> { %3203 = vst [vmem:[%s3577_s15 + $0x80] sm:$0xff] %v3202_v42  ;;  %3205 = vst [vmem:[%s3577_s15 + $0x88] sm:$0xff] %v3204_v37  ;;  %v3208_v4 = vld [vmem:[%s3581_s20 + $0x98] sm:$0xff]  ;;  %v3210_v54 = vld [vmem:[%s3581_s20 + $0xa0] sm:$0xff] }
 0x2a2   : >> { %3207 = vst [vmem:[%s3577_s15 + $0x90] sm:$0xff] %v3206_v2  ;;  %3209 = vst [vmem:[%s3577_s15 + $0x98] sm:$0xff] %v3208_v4  ;;  %v3212_v49 = vld [vmem:[%s3581_s20 + $0xa8] sm:$0xff]  ;;  %v3214_v29 = vld [vmem:[%s3581_s20 + $0xb0] sm:$0xff] }
 0x2a3   : >> { %3211 = vst [vmem:[%s3577_s15 + $0xa0] sm:$0xff] %v3210_v54  ;;  %v3216_v9 = vld [vmem:[%s3581_s20 + $0xb8] sm:$0xff]  ;;  %3213 = vst [vmem:[%s3577_s15 + $0xa8] sm:$0xff] %v3212_v49  ;;  %v3218_v60 = vld [vmem:[%s3581_s20 + $0xc0] sm:$0xff] }
 0x2a4   : >> { %3215 = vst [vmem:[%s3577_s15 + $0xb0] sm:$0xff] %v3214_v29  ;;  %3217 = vst [vmem:[%s3577_s15 + $0xb8] sm:$0xff] %v3216_v9  ;;  %v3220_v45 = vld [vmem:[%s3581_s20 + $0xc8] sm:$0xff]  ;;  %v3222_v38 = vld [vmem:[%s3581_s20 + $0xd0] sm:$0xff]  ;;  %3166 = sbr.rel (!%p3163_p12) target bundleno = 664 (0x298), region = 122 }
 0x2a5   : >> { %3219 = vst [vmem:[%s3577_s15 + $0xc0] sm:$0xff] %v3218_v60  ;;  %3221 = vst [vmem:[%s3577_s15 + $0xc8] sm:$0xff] %v3220_v45  ;;  %v3224_v0 = vld [vmem:[%s3581_s20 + $0xd8] sm:$0xff]  ;;  %v3226_v20 = vld [vmem:[%s3581_s20 + $0xe0] sm:$0xff] }
 0x2a6   : >> { %3223 = vst [vmem:[%s3577_s15 + $0xd0] sm:$0xff] %v3222_v38  ;;  %v3228_v43 = vld [vmem:[%s3581_s20 + $0xe8] sm:$0xff]  ;;  %3225 = vst [vmem:[%s3577_s15 + $0xd8] sm:$0xff] %v3224_v0  ;;  %v3230_v6 = vld [vmem:[%s3581_s20 + $0xf0] sm:$0xff] }
 0x2a7   : >> { %3227 = vst [vmem:[%s3577_s15 + $0xe0] sm:$0xff] %v3226_v20  ;;  %3229 = vst [vmem:[%s3577_s15 + $0xe8] sm:$0xff] %v3228_v43  ;;  %v3232_v44 = vld [vmem:[%s3581_s20 + $0xf8] sm:$0xff]  ;;  %s6585_s20 = smov %s5831_s24 }
 0x2a8   : >> { %3231 = vst [vmem:[%s3577_s15 + $0xf0] sm:$0xff] %v3230_v6  ;;  %3233 = vst [vmem:[%s3577_s15 + $0xf8] sm:$0xff] %v3232_v44  ;;  %s6584_s15 = smov %s3240_s25 }
 0x2a9 PF: > { %s5872_s26 = sand.u32 31, %s6591_s7   ;;  %s3396_s27 = sshll.u32 %s5764_s18, 8 }
 0x2aa   : > { %s3245_s28 = scalar_lea.vmem %s5562_s12, %s3396_s27 [#allocation2]   ;;  %s3247_s29 = scalar_lea.vmem %s5758_s11, %s3396_s27  }
 0x2ab   : > { %p3389_p13 = scmp.le.s32.totalorder %s5872_s26, 0 }
 0x2ac   : > { %s3591_s30 = smov (!%p3389_p13), %s3247_s29   ;;  %s3595_s4 = smov (!%p3389_p13), %s3245_s28  }
 0x2ad   : > { %3338 = sbr.rel (%p3389_p13) target bundleno = 698 (0x2ba), region = 127  ;;  %s3599_s5 = smov (!%p3389_p13), 0  }
 0x2ae   : > { %s3603_s6 = smov (!%p3389_p13), 0  }
 0x2b2 LB: >> { %v3257_v24 = vld [vmem:[%s3597_s4] sm:$0xff]  ;;  %s3259_s7 = sadd.s32 1, %s3601_s5  ;;  %s3251_s6 = sadd.s32 1, %s3605_s6   ;;  %s3605_s6 = sphi %s3603_s6, %s3251_s6   ;;  %s3601_s5 = sphi %s3599_s5, %s3600_s5   ;;  %s3597_s4 = sphi %s3595_s4, %s3264_s4   ;;  %s3593_s30 = sphi %s3591_s30, %s3265_s30  }
 0x2b3   : >> { %3258 = vst [vmem:[%s3593_s30] sm:$0xff] %v3257_v24  ;;  %p3260_p0 = scmp.ge.s32.totalorder %s3259_s7, %s5872_s26  ;;  %p3250_p1 = scmp.ge.s32.totalorder %s3251_s6, %s5872_s26 }
 0x2b5   : >> { %s6595_s7 = smov (%p3260_p0, %s3259_s7), 0  ;;  %3253 = sbr.rel (!%p3250_p1) target bundleno = 690 (0x2b2), region = 133 }
 0x2b6   : >> { %s3390_s12 = sshll.u32 %s6595_s7, 3  ;;  %s3600_s5 = smov %s6595_s7  }
 0x2b7   : >> { %s3264_s4 = scalar_lea.vmem %s3245_s28, %s3390_s12 [#allocation2]   ;;  %s3265_s30 = scalar_lea.vmem %s3247_s29, %s3390_s12  }
 0x2ba PF: > { %p10_p2 = scmp.ge.s32.totalorder %s3643_s16, 4   ;;  %s6587_s12 = smov %s3569_s13 }
 0x2bb   : > { %s6588_s13 = smov %s3651_s19  ;;  %s6589_s14 = smov %s3643_s16 }
 0x2bc   :  { %12 = sbr.rel (!%p10_p2) target bundleno = 2 (0x2), region = 144 }

</bundles_post_ra>
